<compile_context>
chip_gen: v7x
topology: tpu7x:2x2x1
jax: 0.10.0
libtpu: 0.0.40
codegen_flags: <defaults>
</compile_context>

<pallas_src>
import jax
import jax.numpy as jnp
from jax import lax
from jax.experimental import pallas as pl
from jax.experimental.pallas import tpu as pltpu

NUM_CLASSES = 10
C_IN, C_OUT, K = 32, 64, 5
H_IN = W_IN = 12                    # conv: 12 -> 8, pool: 8 -> 4 => 64*4*4 = 1024 features
H_CONV = W_CONV = H_IN - K + 1      # 8
H_POOL = W_POOL = H_CONV // 2       # 4
FLAT = C_OUT * H_POOL * W_POOL      # 1024
HIDDEN = 128
KKC = K * K * C_IN                  # 800 (im2col contraction depth)
OUT_PAD = 128                       # fc2 output padded to a full lane width
B_TILE = 16                         # images per grid step (M = 256 rows per conv matmul)
POOL_ROWS = B_TILE * H_POOL * W_POOL  # 256


def edge_fused_kernel(p_ref, cw_ref, cb_ref, w1_ref, b1_ref, w2_ref, b2_ref,
                      o_ref, flat_ref):
    """Fused conv+bias+ReLU+pool+flatten+fc1+ReLU+fc2 for one batch tile.

    p_ref:  (4, 16, B_TILE, 800) bf16  im2col patches; dim0 = pool-window element j,
                                       dim1 = pooled position p = ph*4+pw, dim2 = batch.
    cw_ref: (800, 64)  bf16   conv weight (kh, kw, cin)-major rows.
    cb_ref: (1, 64)    f32    conv bias.
    w1_ref: (1024,128) bf16   fc1 weight, rows permuted to (h, w, c) flatten order.
    b1_ref: (1, 128)   f32    fc1 bias.
    w2_ref: (128, 128) bf16   fc2 weight zero-padded to 128 output columns.
    b2_ref: (1, 128)   f32    fc2 bias zero-padded.
    o_ref:  (B_TILE, 128) f32 padded logits (first 10 columns are real).
    flat_ref: (B_TILE, 1024) f32 VMEM scratch for the flattened pooled activations.
    """
    cw = cw_ref[...]
    # Conv as 4 fat im2col matmuls (one per 2x2-pool window element), fused with the
    # max-pool: the pool is just an elementwise max across the 4 matmul results.
    pooled = jnp.dot(p_ref[0].reshape(POOL_ROWS, KKC), cw,
                     preferred_element_type=jnp.float32)
    for j in range(1, 4):
        cj = jnp.dot(p_ref[j].reshape(POOL_ROWS, KKC), cw,
                     preferred_element_type=jnp.float32)
        pooled = jnp.maximum(pooled, cj)
    # Bias + ReLU after the max (equivalent: max is monotone, bias is per-channel).
    pooled = jnp.maximum(pooled + cb_ref[...], 0.0)       # (256, 64), row = p*B_TILE + b

    # Flatten to (B_TILE, 1024) in (h, w, c) order via aligned row-slices -> lane-slices.
    # fc1 weights were row-permuted in the wrapper to match this order.
    for p in range(H_POOL * W_POOL):
        flat_ref[:, p * C_OUT:(p + 1) * C_OUT] = pooled[p * B_TILE:(p + 1) * B_TILE, :]

    flat = flat_ref[...].astype(jnp.bfloat16)             # (16, 1024)
    h = jnp.dot(flat, w1_ref[...], preferred_element_type=jnp.float32) + b1_ref[...]
    h = jnp.maximum(h, 0.0).astype(jnp.bfloat16)
    # TODO(synk): nn.Dropout(0.5) is eval-mode identity here; training-mode stochastic
    # masking (pltpu.prng_*) is not implemented.
    o_ref[...] = (jnp.dot(h, w2_ref[...], preferred_element_type=jnp.float32)
                  + b2_ref[...])


def edge_model_forward(x_nchw, params):
    """PyTorch-style NCHW input (B, 32, 12, 12) -> logits (B, 10)."""
    B = x_nchw.shape[0]
    B_pad = ((B + B_TILE - 1) // B_TILE) * B_TILE
    x = jnp.transpose(x_nchw, (0, 2, 3, 1)).astype(jnp.float32)   # NHWC (B,12,12,32)
    if B_pad != B:
        x = jnp.pad(x, ((0, B_pad - B), (0, 0), (0, 0), (0, 0)))

    # im2col grouped by pooling-window element j = oh_lo*2 + ow_lo:
    # patches[j, ph*4+pw, b, (kh*5+kw)*32+cin] = x[b, 2*ph+oh_lo+kh, 2*pw+ow_lo+kw, cin]
    slabs = []
    for oh_lo in range(2):
        for ow_lo in range(2):
            taps = [x[:, oh_lo + kh: oh_lo + kh + 2 * H_POOL: 2,
                       ow_lo + kw: ow_lo + kw + 2 * W_POOL: 2, :]
                    for kh in range(K) for kw in range(K)]        # each (B_pad,4,4,32)
            slab = jnp.concatenate(taps, axis=-1)                 # (B_pad,4,4,800)
            slabs.append(jnp.transpose(slab, (1, 2, 0, 3))
                         .reshape(H_POOL * W_POOL, B_pad, KKC))
    patches = jnp.stack(slabs, axis=0).astype(jnp.bfloat16)       # (4,16,B_pad,800)

    # Weight prep (bf16 matmul operands, f32 biases).
    conv_w = params["conv_w"].reshape(KKC, C_OUT).astype(jnp.bfloat16)
    conv_b = params["conv_b"].astype(jnp.float32)                 # (1, 64)
    # Permute fc1 rows from torch NCHW-flat (c,h,w) to the kernel's (h,w,c) order.
    fc1_w = (params["fc1_w"].reshape(C_OUT, H_POOL, W_POOL, HIDDEN)
             .transpose(1, 2, 0, 3).reshape(FLAT, HIDDEN).astype(jnp.bfloat16))
    fc1_b = params["fc1_b"].astype(jnp.float32)                   # (1, 128)
    # Pad fc2 to 128 output columns for lane-dense MXU output / stores.
    fc2_w = jnp.pad(params["fc2_w"],
                    ((0, 0), (0, OUT_PAD - NUM_CLASSES))).astype(jnp.bfloat16)
    fc2_b = jnp.pad(params["fc2_b"],
                    ((0, 0), (0, OUT_PAD - NUM_CLASSES))).astype(jnp.float32)

    out_pad = pl.pallas_call(
        edge_fused_kernel,
        out_shape=jax.ShapeDtypeStruct((B_pad, OUT_PAD), jnp.float32),
        grid_spec=pltpu.PrefetchScalarGridSpec(
            num_scalar_prefetch=0,
            grid=(B_pad // B_TILE,),
            in_specs=[
                pl.BlockSpec((4, H_POOL * W_POOL, B_TILE, KKC),
                             lambda b: (0, 0, b, 0)),
                pl.BlockSpec((KKC, C_OUT), lambda b: (0, 0)),
                pl.BlockSpec((1, C_OUT), lambda b: (0, 0)),
                pl.BlockSpec((FLAT, HIDDEN), lambda b: (0, 0)),
                pl.BlockSpec((1, HIDDEN), lambda b: (0, 0)),
                pl.BlockSpec((HIDDEN, OUT_PAD), lambda b: (0, 0)),
                pl.BlockSpec((1, OUT_PAD), lambda b: (0, 0)),
            ],
            out_specs=pl.BlockSpec((B_TILE, OUT_PAD), lambda b: (b, 0)),
            scratch_shapes=[pltpu.VMEM((B_TILE, FLAT), jnp.float32)],
        ),
        compiler_params=pltpu.CompilerParams(
            dimension_semantics=("parallel",)),
    )(patches, conv_w, conv_b, fc1_w, fc1_b, fc2_w, fc2_b)

    return out_pad[:B, :NUM_CLASSES]


def reference_forward(x_nchw, params):
    """Pure-JAX f32 reference mirroring the PyTorch module (NCHW)."""
    w_oihw = jnp.transpose(params["conv_w"], (3, 2, 0, 1))
    y = lax.conv_general_dilated(
        x_nchw.astype(jnp.float32), w_oihw, window_strides=(1, 1), padding="VALID",
        dimension_numbers=("NCHW", "OIHW", "NCHW"))
    y = jax.nn.relu(y + params["conv_b"].reshape(1, C_OUT, 1, 1))
    y = lax.reduce_window(y, -jnp.inf, lax.max,
                          (1, 1, 2, 2), (1, 1, 2, 2), "VALID")
    f = y.reshape(y.shape[0], FLAT)
    h = jax.nn.relu(f @ params["fc1_w"] + params["fc1_b"][0])
    return h @ params["fc2_w"] + params["fc2_b"][0]


def init_params(key):
    ks = jax.random.split(key, 6)
    scale = 0.05
    return {
        # HWIO conv weight
        "conv_w": scale * jax.random.normal(ks[0], (K, K, C_IN, C_OUT), jnp.float32),
        "conv_b": scale * jax.random.normal(ks[1], (1, C_OUT), jnp.float32),
        # fc weights stored already-transposed: x @ W
        "fc1_w": scale * jax.random.normal(ks[2], (FLAT, HIDDEN), jnp.float32),
        "fc1_b": scale * jax.random.normal(ks[3], (1, HIDDEN), jnp.float32),
        "fc2_w": scale * jax.random.normal(ks[4], (HIDDEN, NUM_CLASSES), jnp.float32),
        "fc2_b": scale * jax.random.normal(ks[5], (1, NUM_CLASSES), jnp.float32),
    }


if __name__ == "__main__":
    key = jax.random.PRNGKey(0)
    k_x1, k_x2, k_p = jax.random.split(key, 3)
    params = init_params(k_p)
    fwd = jax.jit(edge_model_forward)

    # Small batch (pads up to one 16-image tile) and a multi-tile batch.
    for B, kx in ((2, k_x1), (32, k_x2)):
        x = jax.random.normal(kx, (B, C_IN, H_IN, W_IN), jnp.float32)
        out = jax.block_until_ready(fwd(x, params))
        ref = jax.block_until_ready(reference_forward(x, params))
        assert out.shape == (B, NUM_CLASSES)
        err = jnp.max(jnp.abs(out - ref))
        assert jnp.allclose(out, ref, rtol=5e-2, atol=5e-2), (
            f"B={B}: max abs err {err}")

    print("KERNEL_OK")
</pallas_src>

<mosaic_0001>
module attributes {stable_mosaic.version = 11 : i64} {
  func.func @edge_fused_kernel(%arg0: i32, %arg1: memref<4x16x16x800xbf16, #tpu.memory_space<vmem>>, %arg2: memref<800x64xbf16, #tpu.memory_space<vmem>>, %arg3: memref<1x64xf32, #tpu.memory_space<vmem>>, %arg4: memref<1024x128xbf16, #tpu.memory_space<vmem>>, %arg5: memref<1x128xf32, #tpu.memory_space<vmem>>, %arg6: memref<128x128xbf16, #tpu.memory_space<vmem>>, %arg7: memref<1x128xf32, #tpu.memory_space<vmem>>, %arg8: memref<16x128xf32, #tpu.memory_space<vmem>>, %arg9: memref<16x1024xf32, #tpu.memory_space<vmem>>) attributes {dimension_semantics = [#tpu.dimension_semantics<parallel>], iteration_bounds = array<i64: 1>, scalar_prefetch = 0 : i64, scratch_operands = 1 : i64, tpu.core_type = #tpu.core_type<tc>, window_params = [{transform_indices = @transform_0, window_bounds = array<i64: 4, 16, 16, 800>}, {pipeline_mode = #tpu.pipeline_mode<synchronous>, transform_indices = @transform_1, window_bounds = array<i64: 800, 64>}, {pipeline_mode = #tpu.pipeline_mode<synchronous>, transform_indices = @transform_2, window_bounds = array<i64: 1, 64>}, {pipeline_mode = #tpu.pipeline_mode<synchronous>, transform_indices = @transform_3, window_bounds = array<i64: 1024, 128>}, {pipeline_mode = #tpu.pipeline_mode<synchronous>, transform_indices = @transform_4, window_bounds = array<i64: 1, 128>}, {pipeline_mode = #tpu.pipeline_mode<synchronous>, transform_indices = @transform_5, window_bounds = array<i64: 128, 128>}, {pipeline_mode = #tpu.pipeline_mode<synchronous>, transform_indices = @transform_6, window_bounds = array<i64: 1, 128>}, {transform_indices = @transform_7, window_bounds = array<i64: 16, 128>}]} {
    %c0 = arith.constant 0 : index
    %c0_0 = arith.constant 0 : index
    %0 = vector.load %arg2[%c0, %c0_0] : memref<800x64xbf16, #tpu.memory_space<vmem>>, vector<800x64xbf16>
    %c0_1 = arith.constant 0 : index
    %c0_2 = arith.constant 0 : index
    %c0_3 = arith.constant 0 : index
    %c0_4 = arith.constant 0 : index
    %1 = vector.load %arg1[%c0_1, %c0_2, %c0_3, %c0_4] : memref<4x16x16x800xbf16, #tpu.memory_space<vmem>>, vector<1x16x16x800xbf16>
    %2 = vector.shape_cast %1 : vector<1x16x16x800xbf16> to vector<16x16x800xbf16>
    %3 = vector.shape_cast %2 : vector<16x16x800xbf16> to vector<256x800xbf16>
    %cst = arith.constant dense<0.000000e+00> : vector<256x64xf32>
    %4 = tpu.matmul %3, %0, %cst {dimension_numbers = #tpu.dot_dimension_numbers<[1], [0], [0], [1], [0, 0, 1, 1], [], []>} : vector<256x800xbf16>, vector<800x64xbf16>, vector<256x64xf32> -> vector<256x64xf32>
    %c1 = arith.constant 1 : index
    %c0_5 = arith.constant 0 : index
    %c0_6 = arith.constant 0 : index
    %c0_7 = arith.constant 0 : index
    %5 = vector.load %arg1[%c1, %c0_5, %c0_6, %c0_7] : memref<4x16x16x800xbf16, #tpu.memory_space<vmem>>, vector<1x16x16x800xbf16>
    %6 = vector.shape_cast %5 : vector<1x16x16x800xbf16> to vector<16x16x800xbf16>
    %7 = vector.shape_cast %6 : vector<16x16x800xbf16> to vector<256x800xbf16>
    %cst_8 = arith.constant dense<0.000000e+00> : vector<256x64xf32>
    %8 = tpu.matmul %7, %0, %cst_8 {dimension_numbers = #tpu.dot_dimension_numbers<[1], [0], [0], [1], [0, 0, 1, 1], [], []>} : vector<256x800xbf16>, vector<800x64xbf16>, vector<256x64xf32> -> vector<256x64xf32>
    %9 = arith.maximumf %4, %8 : vector<256x64xf32>
    %c2 = arith.constant 2 : index
    %c0_9 = arith.constant 0 : index
    %c0_10 = arith.constant 0 : index
    %c0_11 = arith.constant 0 : index
    %10 = vector.load %arg1[%c2, %c0_9, %c0_10, %c0_11] : memref<4x16x16x800xbf16, #tpu.memory_space<vmem>>, vector<1x16x16x800xbf16>
    %11 = vector.shape_cast %10 : vector<1x16x16x800xbf16> to vector<16x16x800xbf16>
    %12 = vector.shape_cast %11 : vector<16x16x800xbf16> to vector<256x800xbf16>
    %cst_12 = arith.constant dense<0.000000e+00> : vector<256x64xf32>
    %13 = tpu.matmul %12, %0, %cst_12 {dimension_numbers = #tpu.dot_dimension_numbers<[1], [0], [0], [1], [0, 0, 1, 1], [], []>} : vector<256x800xbf16>, vector<800x64xbf16>, vector<256x64xf32> -> vector<256x64xf32>
    %14 = arith.maximumf %9, %13 : vector<256x64xf32>
    %c3 = arith.constant 3 : index
    %c0_13 = arith.constant 0 : index
    %c0_14 = arith.constant 0 : index
    %c0_15 = arith.constant 0 : index
    %15 = vector.load %arg1[%c3, %c0_13, %c0_14, %c0_15] : memref<4x16x16x800xbf16, #tpu.memory_space<vmem>>, vector<1x16x16x800xbf16>
    %16 = vector.shape_cast %15 : vector<1x16x16x800xbf16> to vector<16x16x800xbf16>
    %17 = vector.shape_cast %16 : vector<16x16x800xbf16> to vector<256x800xbf16>
    %cst_16 = arith.constant dense<0.000000e+00> : vector<256x64xf32>
    %18 = tpu.matmul %17, %0, %cst_16 {dimension_numbers = #tpu.dot_dimension_numbers<[1], [0], [0], [1], [0, 0, 1, 1], [], []>} : vector<256x800xbf16>, vector<800x64xbf16>, vector<256x64xf32> -> vector<256x64xf32>
    %19 = arith.maximumf %14, %18 : vector<256x64xf32>
    %c0_17 = arith.constant 0 : index
    %c0_18 = arith.constant 0 : index
    %20 = vector.load %arg3[%c0_17, %c0_18] : memref<1x64xf32, #tpu.memory_space<vmem>>, vector<1x64xf32>
    %21 = vector.broadcast %20 : vector<1x64xf32> to vector<256x64xf32>
    %22 = arith.addf %19, %21 : vector<256x64xf32>
    %cst_19 = arith.constant 0.000000e+00 : f32
    %23 = vector.broadcast %cst_19 : f32 to vector<256x64xf32>
    %24 = arith.maximumf %22, %23 : vector<256x64xf32>
    %25 = vector.extract_strided_slice %24 {offsets = [0, 0], sizes = [16, 64], strides = [1, 1]} : vector<256x64xf32> to vector<16x64xf32>
    %c0_20 = arith.constant 0 : index
    %c0_21 = arith.constant 0 : index
    %26 = vector.load %arg9[%c0_20, %c0_21] : memref<16x1024xf32, #tpu.memory_space<vmem>>, vector<16x64xf32>
    tpu.vector_store %arg9[%c0_20, %c0_21], %25 {strides = array<i32>} : memref<16x1024xf32, #tpu.memory_space<vmem>>, vector<16x64xf32>,
    %27 = vector.extract_strided_slice %24 {offsets = [16, 0], sizes = [16, 64], strides = [1, 1]} : vector<256x64xf32> to vector<16x64xf32>
    %c0_22 = arith.constant 0 : index
    %c64 = arith.constant 64 : index
    %28 = vector.load %arg9[%c0_22, %c64] : memref<16x1024xf32, #tpu.memory_space<vmem>>, vector<16x64xf32>
    tpu.vector_store %arg9[%c0_22, %c64], %27 {strides = array<i32>} : memref<16x1024xf32, #tpu.memory_space<vmem>>, vector<16x64xf32>,
    %29 = vector.extract_strided_slice %24 {offsets = [32, 0], sizes = [16, 64], strides = [1, 1]} : vector<256x64xf32> to vector<16x64xf32>
    %c0_23 = arith.constant 0 : index
    %c128 = arith.constant 128 : index
    %30 = vector.load %arg9[%c0_23, %c128] : memref<16x1024xf32, #tpu.memory_space<vmem>>, vector<16x64xf32>
    tpu.vector_store %arg9[%c0_23, %c128], %29 {strides = array<i32>} : memref<16x1024xf32, #tpu.memory_space<vmem>>, vector<16x64xf32>,
    %31 = vector.extract_strided_slice %24 {offsets = [48, 0], sizes = [16, 64], strides = [1, 1]} : vector<256x64xf32> to vector<16x64xf32>
    %c0_24 = arith.constant 0 : index
    %c192 = arith.constant 192 : index
    %32 = vector.load %arg9[%c0_24, %c192] : memref<16x1024xf32, #tpu.memory_space<vmem>>, vector<16x64xf32>
    tpu.vector_store %arg9[%c0_24, %c192], %31 {strides = array<i32>} : memref<16x1024xf32, #tpu.memory_space<vmem>>, vector<16x64xf32>,
    %33 = vector.extract_strided_slice %24 {offsets = [64, 0], sizes = [16, 64], strides = [1, 1]} : vector<256x64xf32> to vector<16x64xf32>
    %c0_25 = arith.constant 0 : index
    %c256 = arith.constant 256 : index
    %34 = vector.load %arg9[%c0_25, %c256] : memref<16x1024xf32, #tpu.memory_space<vmem>>, vector<16x64xf32>
    tpu.vector_store %arg9[%c0_25, %c256], %33 {strides = array<i32>} : memref<16x1024xf32, #tpu.memory_space<vmem>>, vector<16x64xf32>,
    %35 = vector.extract_strided_slice %24 {offsets = [80, 0], sizes = [16, 64], strides = [1, 1]} : vector<256x64xf32> to vector<16x64xf32>
    %c0_26 = arith.constant 0 : index
    %c320 = arith.constant 320 : index
    %36 = vector.load %arg9[%c0_26, %c320] : memref<16x1024xf32, #tpu.memory_space<vmem>>, vector<16x64xf32>
    tpu.vector_store %arg9[%c0_26, %c320], %35 {strides = array<i32>} : memref<16x1024xf32, #tpu.memory_space<vmem>>, vector<16x64xf32>,
    %37 = vector.extract_strided_slice %24 {offsets = [96, 0], sizes = [16, 64], strides = [1, 1]} : vector<256x64xf32> to vector<16x64xf32>
    %c0_27 = arith.constant 0 : index
    %c384 = arith.constant 384 : index
    %38 = vector.load %arg9[%c0_27, %c384] : memref<16x1024xf32, #tpu.memory_space<vmem>>, vector<16x64xf32>
    tpu.vector_store %arg9[%c0_27, %c384], %37 {strides = array<i32>} : memref<16x1024xf32, #tpu.memory_space<vmem>>, vector<16x64xf32>,
    %39 = vector.extract_strided_slice %24 {offsets = [112, 0], sizes = [16, 64], strides = [1, 1]} : vector<256x64xf32> to vector<16x64xf32>
    %c0_28 = arith.constant 0 : index
    %c448 = arith.constant 448 : index
    %40 = vector.load %arg9[%c0_28, %c448] : memref<16x1024xf32, #tpu.memory_space<vmem>>, vector<16x64xf32>
    tpu.vector_store %arg9[%c0_28, %c448], %39 {strides = array<i32>} : memref<16x1024xf32, #tpu.memory_space<vmem>>, vector<16x64xf32>,
    %41 = vector.extract_strided_slice %24 {offsets = [128, 0], sizes = [16, 64], strides = [1, 1]} : vector<256x64xf32> to vector<16x64xf32>
    %c0_29 = arith.constant 0 : index
    %c512 = arith.constant 512 : index
    %42 = vector.load %arg9[%c0_29, %c512] : memref<16x1024xf32, #tpu.memory_space<vmem>>, vector<16x64xf32>
    tpu.vector_store %arg9[%c0_29, %c512], %41 {strides = array<i32>} : memref<16x1024xf32, #tpu.memory_space<vmem>>, vector<16x64xf32>,
    %43 = vector.extract_strided_slice %24 {offsets = [144, 0], sizes = [16, 64], strides = [1, 1]} : vector<256x64xf32> to vector<16x64xf32>
    %c0_30 = arith.constant 0 : index
    %c576 = arith.constant 576 : index
    %44 = vector.load %arg9[%c0_30, %c576] : memref<16x1024xf32, #tpu.memory_space<vmem>>, vector<16x64xf32>
    tpu.vector_store %arg9[%c0_30, %c576], %43 {strides = array<i32>} : memref<16x1024xf32, #tpu.memory_space<vmem>>, vector<16x64xf32>,
    %45 = vector.extract_strided_slice %24 {offsets = [160, 0], sizes = [16, 64], strides = [1, 1]} : vector<256x64xf32> to vector<16x64xf32>
    %c0_31 = arith.constant 0 : index
    %c640 = arith.constant 640 : index
    %46 = vector.load %arg9[%c0_31, %c640] : memref<16x1024xf32, #tpu.memory_space<vmem>>, vector<16x64xf32>
    tpu.vector_store %arg9[%c0_31, %c640], %45 {strides = array<i32>} : memref<16x1024xf32, #tpu.memory_space<vmem>>, vector<16x64xf32>,
    %47 = vector.extract_strided_slice %24 {offsets = [176, 0], sizes = [16, 64], strides = [1, 1]} : vector<256x64xf32> to vector<16x64xf32>
    %c0_32 = arith.constant 0 : index
    %c704 = arith.constant 704 : index
    %48 = vector.load %arg9[%c0_32, %c704] : memref<16x1024xf32, #tpu.memory_space<vmem>>, vector<16x64xf32>
    tpu.vector_store %arg9[%c0_32, %c704], %47 {strides = array<i32>} : memref<16x1024xf32, #tpu.memory_space<vmem>>, vector<16x64xf32>,
    %49 = vector.extract_strided_slice %24 {offsets = [192, 0], sizes = [16, 64], strides = [1, 1]} : vector<256x64xf32> to vector<16x64xf32>
    %c0_33 = arith.constant 0 : index
    %c768 = arith.constant 768 : index
    %50 = vector.load %arg9[%c0_33, %c768] : memref<16x1024xf32, #tpu.memory_space<vmem>>, vector<16x64xf32>
    tpu.vector_store %arg9[%c0_33, %c768], %49 {strides = array<i32>} : memref<16x1024xf32, #tpu.memory_space<vmem>>, vector<16x64xf32>,
    %51 = vector.extract_strided_slice %24 {offsets = [208, 0], sizes = [16, 64], strides = [1, 1]} : vector<256x64xf32> to vector<16x64xf32>
    %c0_34 = arith.constant 0 : index
    %c832 = arith.constant 832 : index
    %52 = vector.load %arg9[%c0_34, %c832] : memref<16x1024xf32, #tpu.memory_space<vmem>>, vector<16x64xf32>
    tpu.vector_store %arg9[%c0_34, %c832], %51 {strides = array<i32>} : memref<16x1024xf32, #tpu.memory_space<vmem>>, vector<16x64xf32>,
    %53 = vector.extract_strided_slice %24 {offsets = [224, 0], sizes = [16, 64], strides = [1, 1]} : vector<256x64xf32> to vector<16x64xf32>
    %c0_35 = arith.constant 0 : index
    %c896 = arith.constant 896 : index
    %54 = vector.load %arg9[%c0_35, %c896] : memref<16x1024xf32, #tpu.memory_space<vmem>>, vector<16x64xf32>
    tpu.vector_store %arg9[%c0_35, %c896], %53 {strides = array<i32>} : memref<16x1024xf32, #tpu.memory_space<vmem>>, vector<16x64xf32>,
    %55 = vector.extract_strided_slice %24 {offsets = [240, 0], sizes = [16, 64], strides = [1, 1]} : vector<256x64xf32> to vector<16x64xf32>
    %c0_36 = arith.constant 0 : index
    %c960 = arith.constant 960 : index
    %56 = vector.load %arg9[%c0_36, %c960] : memref<16x1024xf32, #tpu.memory_space<vmem>>, vector<16x64xf32>
    tpu.vector_store %arg9[%c0_36, %c960], %55 {strides = array<i32>} : memref<16x1024xf32, #tpu.memory_space<vmem>>, vector<16x64xf32>,
    %c0_37 = arith.constant 0 : index
    %c0_38 = arith.constant 0 : index
    %57 = vector.load %arg9[%c0_37, %c0_38] : memref<16x1024xf32, #tpu.memory_space<vmem>>, vector<16x1024xf32>
    %58 = arith.truncf %57 : vector<16x1024xf32> to vector<16x1024xbf16>
    %c0_39 = arith.constant 0 : index
    %c0_40 = arith.constant 0 : index
    %59 = vector.load %arg4[%c0_39, %c0_40] : memref<1024x128xbf16, #tpu.memory_space<vmem>>, vector<1024x128xbf16>
    %cst_41 = arith.constant dense<0.000000e+00> : vector<16x128xf32>
    %60 = tpu.matmul %58, %59, %cst_41 {dimension_numbers = #tpu.dot_dimension_numbers<[1], [0], [0], [1], [0, 0, 1, 1], [], []>} : vector<16x1024xbf16>, vector<1024x128xbf16>, vector<16x128xf32> -> vector<16x128xf32>
    %c0_42 = arith.constant 0 : index
    %c0_43 = arith.constant 0 : index
    %61 = vector.load %arg5[%c0_42, %c0_43] : memref<1x128xf32, #tpu.memory_space<vmem>>, vector<1x128xf32>
    %62 = vector.broadcast %61 : vector<1x128xf32> to vector<16x128xf32>
    %63 = arith.addf %60, %62 : vector<16x128xf32>
    %cst_44 = arith.constant 0.000000e+00 : f32
    %64 = vector.broadcast %cst_44 : f32 to vector<16x128xf32>
    %65 = arith.maximumf %63, %64 : vector<16x128xf32>
    %66 = arith.truncf %65 : vector<16x128xf32> to vector<16x128xbf16>
    %c0_45 = arith.constant 0 : index
    %c0_46 = arith.constant 0 : index
    %67 = vector.load %arg6[%c0_45, %c0_46] : memref<128x128xbf16, #tpu.memory_space<vmem>>, vector<128x128xbf16>
    %cst_47 = arith.constant dense<0.000000e+00> : vector<16x128xf32>
    %68 = tpu.matmul %66, %67, %cst_47 {dimension_numbers = #tpu.dot_dimension_numbers<[1], [0], [0], [1], [0, 0, 1, 1], [], []>} : vector<16x128xbf16>, vector<128x128xbf16>, vector<16x128xf32> -> vector<16x128xf32>
    %c0_48 = arith.constant 0 : index
    %c0_49 = arith.constant 0 : index
    %69 = vector.load %arg7[%c0_48, %c0_49] : memref<1x128xf32, #tpu.memory_space<vmem>>, vector<1x128xf32>
    %70 = vector.broadcast %69 : vector<1x128xf32> to vector<16x128xf32>
    %71 = arith.addf %68, %70 : vector<16x128xf32>
    %c0_50 = arith.constant 0 : index
    %c0_51 = arith.constant 0 : index
    %72 = vector.load %arg8[%c0_50, %c0_51] : memref<16x128xf32, #tpu.memory_space<vmem>>, vector<16x128xf32>
    tpu.vector_store %arg8[%c0_50, %c0_51], %71 {strides = array<i32>} : memref<16x128xf32, #tpu.memory_space<vmem>>, vector<16x128xf32>,
    return
  }
  func.func @transform_0(%arg0: i32) -> (i32, i32, i32, i32) {
    %c0_i32 = arith.constant 0 : i32
    %c0_i32_0 = arith.constant 0 : i32
    %c0_i32_1 = arith.constant 0 : i32
    %c0_i32_2 = arith.constant 0 : i32
    return %c0_i32, %c0_i32_0, %arg0, %c0_i32_1 : i32, i32, i32, i32
  }
  func.func @transform_1(%arg0: i32) -> (i32, i32) {
    %c0_i32 = arith.constant 0 : i32
    %c0_i32_0 = arith.constant 0 : i32
    %c0_i32_1 = arith.constant 0 : i32
    return %c0_i32, %c0_i32_0 : i32, i32
  }
  func.func @transform_2(%arg0: i32) -> (i32, i32) {
    %c0_i32 = arith.constant 0 : i32
    %c0_i32_0 = arith.constant 0 : i32
    %c0_i32_1 = arith.constant 0 : i32
    return %c0_i32, %c0_i32_0 : i32, i32
  }
  func.func @transform_3(%arg0: i32) -> (i32, i32) {
    %c0_i32 = arith.constant 0 : i32
    %c0_i32_0 = arith.constant 0 : i32
    %c0_i32_1 = arith.constant 0 : i32
    return %c0_i32, %c0_i32_0 : i32, i32
  }
  func.func @transform_4(%arg0: i32) -> (i32, i32) {
    %c0_i32 = arith.constant 0 : i32
    %c0_i32_0 = arith.constant 0 : i32
    %c0_i32_1 = arith.constant 0 : i32
    return %c0_i32, %c0_i32_0 : i32, i32
  }
  func.func @transform_5(%arg0: i32) -> (i32, i32) {
    %c0_i32 = arith.constant 0 : i32
    %c0_i32_0 = arith.constant 0 : i32
    %c0_i32_1 = arith.constant 0 : i32
    return %c0_i32, %c0_i32_0 : i32, i32
  }
  func.func @transform_6(%arg0: i32) -> (i32, i32) {
    %c0_i32 = arith.constant 0 : i32
    %c0_i32_0 = arith.constant 0 : i32
    %c0_i32_1 = arith.constant 0 : i32
    return %c0_i32, %c0_i32_0 : i32, i32
  }
  func.func @transform_7(%arg0: i32) -> (i32, i32) {
    %c0_i32 = arith.constant 0 : i32
    %c0_i32_0 = arith.constant 0 : i32
    return %arg0, %c0_i32 : i32, i32
  }
}

</mosaic_0001>

<bundles_post_ra>
// kernel: edge_model_forward.1
= control target key start
LH: loop header
LB: loop body
LE: loop exit
PB: predicated region body
PF: predicated region fallthrough
CT: control target
= control target key end

     0   :  { %vm1115_vm0 = vcmask 261120   ;;  %vm6118_vm1 = vcmask 523264   ;;  %s10671_s17 = smov 64   ;;  %vm6129_vm2 = vcmask 1048064   ;;  %vm10673_vm3 = vmmov 0   ;;  %s14241_s1 = inlined_call_operand.vmem [shape: bf16[800,64], index: 1, kind: input, shape index: {}]   ;;  %s14242_s0 = inlined_call_operand.vmem [shape: bf16[4,16,16,800], index: 0, kind: input, shape index: {}]   ;;  %s14243_s3 = inlined_call_operand.vmem [shape: bf16[1024,128], index: 3, kind: input, shape index: {}]   ;;  %s14244_s2 = inlined_call_operand.vmem [shape: f32[1,64], index: 2, kind: input, shape index: {}]   ;;  %s14245_s5 = inlined_call_operand.vmem [shape: bf16[128,128], index: 5, kind: input, shape index: {}]   ;;  %s14246_s4 = inlined_call_operand.vmem [shape: f32[1,128], index: 4, kind: input, shape index: {}]   ;;  %s14247_s6 = inlined_call_operand.vmem [shape: f32[1,128], index: 6, kind: input, shape index: {}]   ;;  %s14248_s7 = inlined_call_operand.vmem [shape: f32[16,128], index: 7, kind: output, shape index: {}]  }
   0x1   :  { %v9761_v0 = vld [vmem:[%s14241_s1 + $0x40] sm:$0xff]   ;;  %v9765_v4 = vld [vmem:[%s14241_s1 + $0x48] sm:$0xff]   ;;  %v9769_v8 = vld [vmem:[%s14241_s1 + $0x50] sm:$0xff]  }
   0x2   :  { %v10720_v1 = vld [vmem:[%s14241_s1 + $0xc0] sm:$0xff]   ;;  %8065 = vmatprep.subr.bf16.mxu0 %v9761_v0  ;;  %v9766_v5 = vld [vmem:[%s14241_s1 + $0xc8] sm:$0xff]   ;;  %v9770_v9 = vld [vmem:[%s14241_s1 + $0xd0] sm:$0xff]  }
   0x3   :  { %v9763_v2 = vld [vmem:[%s14241_s1] sm:$0xff]   ;;  %8177 = vmatprep.subr.bf16.mxu1 %v10720_v1  ;;  %v9767_v6 = vld [vmem:[%s14241_s1 + $0x8] sm:$0xff]   ;;  %v9771_v10 = vld [vmem:[%s14241_s1 + $0x10] sm:$0xff]  }
   0x4   :  { %v9764_v3 = vld [vmem:[%s14241_s1 + $0x80] sm:$0xff]   ;;  %8066 = vmatpush3.bf16.msra.mxu0 %v9763_v2  ;;  %v9768_v7 = vld [vmem:[%s14241_s1 + $0x88] sm:$0xff]   ;;  %v9772_v11 = vld [vmem:[%s14241_s1 + $0x90] sm:$0xff]  }
   0x5   :  { %8178 = vmatpush3.bf16.msra.mxu1 %v9764_v3  ;;  %8067 = vmatprep.subr.bf16.mxu0 %v9765_v4  ;;  %v9773_v12 = vld [vmem:[%s14241_s1 + $0x58] sm:$0xff]   ;;  %v9777_v16 = vld [vmem:[%s14241_s1 + $0x60] sm:$0xff]   ;;  %v9781_v20 = vld [vmem:[%s14241_s1 + $0x68] sm:$0xff]  }
   0x6   :  { %8179 = vmatprep.subr.bf16.mxu1 %v9766_v5  ;;  %v9774_v13 = vld [vmem:[%s14241_s1 + $0xd8] sm:$0xff]   ;;  %v9778_v17 = vld [vmem:[%s14241_s1 + $0xe0] sm:$0xff]   ;;  %v9782_v21 = vld [vmem:[%s14241_s1 + $0xe8] sm:$0xff]  }
   0x7   :  { %v9775_v14 = vld [vmem:[%s14241_s1 + $0x18] sm:$0xff]   ;;  %v9779_v18 = vld [vmem:[%s14241_s1 + $0x20] sm:$0xff]   ;;  %v9783_v22 = vld [vmem:[%s14241_s1 + $0x28] sm:$0xff]  }
   0x8   :  { %8068 = vmatpush3.bf16.msra.mxu0 %v9767_v6  ;;  %v9776_v15 = vld [vmem:[%s14241_s1 + $0x98] sm:$0xff]   ;;  %v9780_v19 = vld [vmem:[%s14241_s1 + $0xa0] sm:$0xff]   ;;  %v9784_v23 = vld [vmem:[%s14241_s1 + $0xa8] sm:$0xff]  }
   0x9   :  { %8180 = vmatpush3.bf16.msra.mxu1 %v9768_v7  ;;  %8069 = vmatprep.subr.bf16.mxu0 %v9769_v8  ;;  %v9785_v24 = vld [vmem:[%s14241_s1 + $0x70] sm:$0xff]   ;;  %v9789_v28 = vld [vmem:[%s14241_s1 + $0x78] sm:$0xff]   ;;  %v9795_v33 = vld [vmem:[%s14242_s0 + $0x4] ss:$28 sps:$4 sm:$0xff]  }
   0xa   :  { %8181 = vmatprep.subr.bf16.mxu1 %v9770_v9  ;;  %v9786_v25 = vld [vmem:[%s14241_s1 + $0xf0] sm:$0xff]   ;;  %v9790_v29 = vld [vmem:[%s14241_s1 + $0xf8] sm:$0xff]   ;;  %v9796_v34 = vld [vmem:[%s14242_s0 + $0x8] ss:$28 sps:$4 sm:$0xff]   ;;  %1196 = vmatprep.mubr.bf16.mxu0 %v9795_v33 }
   0xb   :  { %v9787_v26 = vld [vmem:[%s14241_s1 + $0x30] sm:$0xff]   ;;  %v9791_v30 = vld [vmem:[%s14241_s1 + $0x38] sm:$0xff]   ;;  %v9798_v35 = vld [vmem:[%s14242_s0 + $0xc] ss:$28 sps:$4 sm:$0xff]  }
   0xc   :  { %8070 = vmatpush3.bf16.msra.mxu0 %v9771_v10  ;;  %v9788_v27 = vld [vmem:[%s14241_s1 + $0xb0] sm:$0xff]   ;;  %v9792_v31 = vld [vmem:[%s14241_s1 + $0xb8] sm:$0xff]   ;;  %v9799_v36 = vld [vmem:[%s14241_s1 + $0x140] sm:$0xff]   ;;  %1357 = vmatprep.mubr.bf16.mxu1 %v9798_v35 }
   0xd   :  { %8182 = vmatpush3.bf16.msra.mxu1 %v9772_v11  ;;  %8071 = vmatprep.subr.bf16.mxu0 %v9773_v12  ;;  %v9793_v32 = vld [vmem:[%s14242_s0] ss:$28 sps:$4 sm:$0xff]   ;;  %v9805_v40 = vld [vmem:[%s14242_s0 + $0x38] ss:$28 sps:$4 sm:$0xff]   ;;  %v9813_v44 = vld [vmem:[%s14241_s1 + $0x148] sm:$0xff]  }
   0xe   :  { %8183 = vmatprep.subr.bf16.mxu1 %v9774_v13  ;;  %v9800_v37 = vld [vmem:[%s14241_s1 + $0x100] sm:$0xff]   ;;  %v9801_v38 = vld [vmem:[%s14242_s0 + $0x3c] ss:$28 sps:$4 sm:$0xff]   ;;  %v9807_v42 = vld [vmem:[%s14242_s0 + $0x74] ss:$28 sps:$4 sm:$0xff]  }
   0xf   :  { %v9803_v39 = vld [vmem:[%s14242_s0 + $0x44] ss:$28 sps:$4 sm:$0xff]   ;;  %v9809_v43 = vld [vmem:[%s14242_s0 + $0x7c] ss:$28 sps:$4 sm:$0xff]   ;;  %v9814_v45 = vld [vmem:[%s14241_s1 + $0x108] sm:$0xff]  }
  0x10   :  { %8072 = vmatpush3.bf16.msra.mxu0 %v9775_v14  ;;  %v9806_v41 = vld [vmem:[%s14242_s0 + $0x40] ss:$28 sps:$4 sm:$0xff]   ;;  %v9811_v46 = vld [vmem:[%s14242_s0 + $0x70] ss:$28 sps:$4 sm:$0xff]   ;;  %v9812_v47 = vld [vmem:[%s14242_s0 + $0x78] ss:$28 sps:$4 sm:$0xff]  }
  0x11   :  { %8184 = vmatpush3.bf16.msra.mxu1 %v9776_v15  ;;  %8073 = vmatprep.subr.bf16.mxu0 %v9777_v16  ;;  %v9815_v48 = vld [vmem:[%s14242_s0 + $0xac] ss:$28 sps:$4 sm:$0xff]   ;;  %v9817_v49 = vld [vmem:[%s14242_s0 + $0xb4] ss:$28 sps:$4 sm:$0xff]   ;;  %v9821_v54 = vld [vmem:[%s14242_s0 + $0xe4] ss:$28 sps:$4 sm:$0xff]  }
  0x12   :  { %8185 = vmatprep.subr.bf16.mxu1 %v9778_v17  ;;  %v9827_v50 = vld [vmem:[%s14241_s1 + $0x150] sm:$0xff]   ;;  %v9819_v52 = vld [vmem:[%s14242_s0 + $0xa8] ss:$28 sps:$4 sm:$0xff]   ;;  %v9841_v56 = vld [vmem:[%s14241_s1 + $0x158] sm:$0xff]  }
  0x13   :  { %v9828_v51 = vld [vmem:[%s14241_s1 + $0x110] sm:$0xff]   ;;  %v9823_v55 = vld [vmem:[%s14242_s0 + $0xec] ss:$28 sps:$4 sm:$0xff]   ;;  %v9842_v57 = vld [vmem:[%s14241_s1 + $0x118] sm:$0xff]  }
  0x14   :  { %8074 = vmatpush3.bf16.msra.mxu0 %v9779_v18  ;;  %v9820_v53 = vld [vmem:[%s14242_s0 + $0xb0] ss:$28 sps:$4 sm:$0xff]   ;;  %v9825_v58 = vld [vmem:[%s14242_s0 + $0xe0] ss:$28 sps:$4 sm:$0xff]   ;;  %v9826_v59 = vld [vmem:[%s14242_s0 + $0xe8] ss:$28 sps:$4 sm:$0xff]  }
  0x15   :  { %8186 = vmatpush3.bf16.msra.mxu1 %v9780_v19  ;;  %8075 = vmatprep.subr.bf16.mxu0 %v9781_v20  ;;  %v9829_v60 = vld [vmem:[%s14242_s0 + $0x11c] ss:$28 sps:$4 sm:$0xff]   ;;  %v9855_v61 = vld [vmem:[%s14241_s1 + $0x160] sm:$0xff]   ;;  %v9835_v3 = vld [vmem:[%s14242_s0 + $0x154] ss:$28 sps:$4 sm:$0xff]  }
  0x16   :  { %8187 = vmatprep.subr.bf16.mxu1 %v9782_v21  ;;  %v9856_v62 = vld [vmem:[%s14241_s1 + $0x120] sm:$0xff]   ;;  %v9833_v0 = vld [vmem:[%s14242_s0 + $0x118] ss:$28 sps:$4 sm:$0xff]   ;;  %v9869_v4 = vld [vmem:[%s14241_s1 + $0x168] sm:$0xff]  }
  0x17   :  { %v9831_v63 = vld [vmem:[%s14242_s0 + $0x124] ss:$28 sps:$4 sm:$0xff]   ;;  %v9870_v5 = vld [vmem:[%s14241_s1 + $0x128] sm:$0xff]   ;;  %v9837_v6 = vld [vmem:[%s14242_s0 + $0x15c] ss:$28 sps:$4 sm:$0xff]  }
  0x18   :  { %8076 = vmatpush3.bf16.msra.mxu0 %v9783_v22  ;;  %v9834_v2 = vld [vmem:[%s14242_s0 + $0x120] ss:$28 sps:$4 sm:$0xff]   ;;  %v9839_v7 = vld [vmem:[%s14242_s0 + $0x150] ss:$28 sps:$4 sm:$0xff]   ;;  %v9840_v8 = vld [vmem:[%s14242_s0 + $0x158] ss:$28 sps:$4 sm:$0xff]  }
  0x19   :  { %8188 = vmatpush3.bf16.msra.mxu1 %v9784_v23  ;;  %8077 = vmatprep.subr.bf16.mxu0 %v9785_v24  ;;  %v9883_v9 = vld [vmem:[%s14241_s1 + $0x170] sm:$0xff]   ;;  %v9843_v11 = vld [vmem:[%s14242_s0 + $0x18c] ss:$28 sps:$4 sm:$0xff]   ;;  %v9897_v14 = vld [vmem:[%s14241_s1 + $0x178] sm:$0xff]  }
  0x1a   :  { %8189 = vmatprep.subr.bf16.mxu1 %v9786_v25  ;;  %v9884_v10 = vld [vmem:[%s14241_s1 + $0x130] sm:$0xff]   ;;  %v9847_v13 = vld [vmem:[%s14242_s0 + $0x188] ss:$28 sps:$4 sm:$0xff]   ;;  %v9898_v15 = vld [vmem:[%s14241_s1 + $0x138] sm:$0xff]  }
  0x1b   :  { %v9845_v12 = vld [vmem:[%s14242_s0 + $0x194] ss:$28 sps:$4 sm:$0xff]   ;;  %v9849_v17 = vld [vmem:[%s14242_s0 + $0x1c4] ss:$28 sps:$4 sm:$0xff]   ;;  %v9851_v18 = vld [vmem:[%s14242_s0 + $0x1cc] ss:$28 sps:$4 sm:$0xff]  }
  0x1c   :  { %8078 = vmatpush3.bf16.msra.mxu0 %v9787_v26  ;;  %v9848_v16 = vld [vmem:[%s14242_s0 + $0x190] ss:$28 sps:$4 sm:$0xff]   ;;  %v10967_v19 = vld [vmem:[%s14241_s1 + $0x180] sm:$0xff]   ;;  %v9861_v23 = vld [vmem:[%s14242_s0 + $0x1f8] ss:$28 sps:$4 sm:$0xff]  }
  0x1d   :  { %8190 = vmatpush3.bf16.msra.mxu1 %v9788_v27  ;;  %8079 = vmatprep.subr.bf16.mxu0 %v9789_v28  ;;  %v9853_v20 = vld [vmem:[%s14242_s0 + $0x1c0] ss:$28 sps:$4 sm:$0xff]   ;;  %v9854_v21 = vld [vmem:[%s14242_s0 + $0x1c8] ss:$28 sps:$4 sm:$0xff]   ;;  %v9863_v25 = vld [vmem:[%s14242_s0 + $0x234] ss:$28 sps:$4 sm:$0xff]  }
  0x1e   :  { %8191 = vmatprep.subr.bf16.mxu1 %v9790_v29  ;;  %v9859_v22 = vld [vmem:[%s14242_s0 + $0x204] ss:$28 sps:$4 sm:$0xff]   ;;  %v9865_v26 = vld [vmem:[%s14242_s0 + $0x23c] ss:$28 sps:$4 sm:$0xff]   ;;  %v9867_v27 = vld [vmem:[%s14242_s0 + $0x230] ss:$28 sps:$4 sm:$0xff]  }
  0x1f   :  { %v9862_v24 = vld [vmem:[%s14242_s0 + $0x200] ss:$28 sps:$4 sm:$0xff]   ;;  %v9868_v28 = vld [vmem:[%s14242_s0 + $0x238] ss:$28 sps:$4 sm:$0xff]   ;;  %v9871_v29 = vld [vmem:[%s14242_s0 + $0x26c] ss:$28 sps:$4 sm:$0xff]  }
  0x20   :  { %8080 = vmatpush3.bf16.msra.mxu0 %v9791_v30  ;;  %v9873_v30 = vld [vmem:[%s14242_s0 + $0x274] ss:$28 sps:$4 sm:$0xff]   ;;  %v9877_v33 = vld [vmem:[%s14242_s0 + $0x2a4] ss:$28 sps:$4 sm:$0xff]  }
  0x21   :  { %8192 = vmatpush3.bf16.msra.mxu1 %v9792_v31  ;;  %8289 = vmatprep.subr.bf16.mxu0 %v9799_v36  ;;  %v9875_v31 = vld [vmem:[%s14242_s0 + $0x268] ss:$28 sps:$4 sm:$0xff]   ;;  %v9881_v35 = vld [vmem:[%s14242_s0 + $0x2a0] ss:$28 sps:$4 sm:$0xff]  }
  0x22   :  { %9742 = vmatprep.subr.bf16.mxu1 %v9799_v36  ;;  %v9882_v36 = vld [vmem:[%s14242_s0 + $0x2a8] ss:$28 sps:$4 sm:$0xff]  }
  0x23   :  { %1197 = vmatmul.mubr.bf16.vlgmr.msra.gmra.mrb[0].mxu0 %v9793_v32  ;;  %v9876_v32 = vld [vmem:[%s14242_s0 + $0x270] ss:$28 sps:$4 sm:$0xff]  }
  0x24   :  { %1358 = vmatmul.mubr.bf16.vlgmr.msra.gmra.mrb[0].mxu1 %v9796_v34  ;;  %1204 = vmatprep.mubr.bf16.mxu0 %v9801_v38  ;;  %v9879_v34 = vld [vmem:[%s14242_s0 + $0x2ac] ss:$28 sps:$4 sm:$0xff]   ;;  %v9887_v38 = vld [vmem:[%s14242_s0 + $0x2e4] ss:$28 sps:$4 sm:$0xff]  }
  0x25   :  { %9750 = vmatpush3.bf16.msra.mxu1 %v9800_v37  ;;  %8290 = vmatpush3.bf16.msra.mxu0 %v9800_v37  ;;  %v9885_v37 = vld [vmem:[%s14242_s0 + $0x2dc] ss:$28 sps:$4 sm:$0xff]  }
  0x26   :  { %1365 = vmatprep.mubr.bf16.mxu1 %v9803_v39  ;;  %9743 = vmatprep.subr.bf16.mxu1 %v9813_v44  ;;  %v9889_v39 = vld [vmem:[%s14242_s0 + $0x2d8] ss:$28 sps:$4 sm:$0xff]  }
  0x27   :  { %8291 = vmatprep.subr.bf16.mxu0 %v9813_v44  ;;  %v9896_v44 = vld [vmem:[%s14242_s0 + $0x318] ss:$28 sps:$4 sm:$0xff]  }
  0x29   :  { %9751 = vmatpush3.bf16.msra.mxu1 %v9814_v45  ;;  %8292 = vmatpush3.bf16.msra.mxu0 %v9814_v45  ;;  %v9899_v45 = vld [vmem:[%s14242_s0 + $0x34c] ss:$28 sps:$4 sm:$0xff]  }
  0x2a   :  { %9744 = vmatprep.subr.bf16.mxu1 %v9827_v50  ;;  %8293 = vmatprep.subr.bf16.mxu0 %v9827_v50  ;;  %v9910_v50 = vld [vmem:[%s14242_s0 + $0x324] ss:$28 sps:$4 sm:$0xff]  }
  0x2b   :  { %1205 = vmatmul.mubr.bf16.gmra.mrb[4].mxu0 %v9805_v40  ;;  %v9890_v40 = vld [vmem:[%s14242_s0 + $0x2e0] ss:$28 sps:$4 sm:$0xff]  }
  0x2c   :  { %1366 = vmatmul.mubr.bf16.gmra.mrb[4].mxu1 %v9806_v41  ;;  %1212 = vmatprep.mubr.bf16.mxu0 %v9807_v42  ;;  %v9891_v41 = vld [vmem:[%s14242_s0 + $0x314] ss:$28 sps:$4 sm:$0xff]   ;;  %v9893_v42 = vld [vmem:[%s14242_s0 + $0x31c] ss:$28 sps:$4 sm:$0xff]  }
  0x2d   :  { %1373 = vmatprep.mubr.bf16.mxu1 %v9809_v43  ;;  %9752 = vmatpush3.bf16.msra.mxu1 %v9828_v51  ;;  %v9895_v43 = vld [vmem:[%s14242_s0 + $0x310] ss:$28 sps:$4 sm:$0xff]  }
  0x2e   :  { %8294 = vmatpush3.bf16.msra.mxu0 %v9828_v51  ;;  %9745 = vmatprep.subr.bf16.mxu1 %v9841_v56  ;;  %v9905_v51 = vld [vmem:[%s14242_s0 + $0x10] ss:$28 sps:$4 sm:$0xff]  }
  0x2f   :  { %8295 = vmatprep.subr.bf16.mxu0 %v9841_v56  ;;  %v9916_v56 = vld [vmem:[%s14242_s0 + $0x48] ss:$28 sps:$4 sm:$0xff]  }
  0x31   :  { %9753 = vmatpush3.bf16.msra.mxu1 %v9842_v57 }
  0x32   :  { %8296 = vmatpush3.bf16.msra.mxu0 %v9842_v57  ;;  %9746 = vmatprep.subr.bf16.mxu1 %v9855_v61  ;;  %v9917_v57 = vld [vmem:[%s14242_s0 + $0x358] ss:$28 sps:$4 sm:$0xff]  }
  0x33   :  { %1213 = vmatmul.mubr.bf16.gmra.mrb[8].mxu0 %v9811_v46  ;;  %8297 = vmatprep.subr.bf16.mxu0 %v9855_v61  ;;  %v9901_v46 = vld [vmem:[%s14242_s0 + $0x354] ss:$28 sps:$4 sm:$0xff]  }
  0x34   :  { %1374 = vmatmul.mubr.bf16.gmra.mrb[8].mxu1 %v9812_v47  ;;  %1220 = vmatprep.mubr.bf16.mxu0 %v9815_v48  ;;  %v9903_v47 = vld [vmem:[%s14242_s0 + $0x348] ss:$28 sps:$4 sm:$0xff]   ;;  %v9904_v48 = vld [vmem:[%s14242_s0 + $0x350] ss:$28 sps:$4 sm:$0xff]   ;;  %v9921_v61 = vld [vmem:[%s14242_s0 + $0x18] ss:$28 sps:$4 sm:$0xff]  }
  0x35   :  { %1381 = vmatprep.mubr.bf16.mxu1 %v9817_v49  ;;  %9754 = vmatpush3.bf16.msra.mxu1 %v9856_v62  ;;  %v9907_v49 = vld [vmem:[%s14242_s0 + $0x14] ss:$28 sps:$4 sm:$0xff]  }
  0x36   :  { %8298 = vmatpush3.bf16.msra.mxu0 %v9856_v62  ;;  %9747 = vmatprep.subr.bf16.mxu1 %v9869_v4  ;;  %v11103_v62 = vld [vmem:[%s14241_s1 + $0x40] sm:$0xff]  }
  0x37   :  { %8299 = vmatprep.subr.bf16.mxu0 %v9869_v4  ;;  %v9924_v4 = vld [vmem:[%s14242_s0 + $0xbc] ss:$28 sps:$4 sm:$0xff]  }
  0x39   :  { %9755 = vmatpush3.bf16.msra.mxu1 %v9870_v5 }
  0x3a   :  { %8300 = vmatpush3.bf16.msra.mxu0 %v9870_v5  ;;  %9748 = vmatprep.subr.bf16.mxu1 %v9883_v9  ;;  %v10528_v5 = vld [vmem:[%s14241_s1 + $0x90] sm:$0xff]  }
  0x3b   :  { %1221 = vmatmul.mubr.bf16.gmra.mrb[12].mxu0 %v9819_v52  ;;  %8301 = vmatprep.subr.bf16.mxu0 %v9883_v9  ;;  %v9908_v52 = vld [vmem:[%s14242_s0 + $0x320] ss:$28 sps:$4 sm:$0xff]  }
  0x3c   :  { %1382 = vmatmul.mubr.bf16.gmra.mrb[12].mxu1 %v9820_v53  ;;  %1228 = vmatprep.mubr.bf16.mxu0 %v9821_v54  ;;  %v9912_v53 = vld [vmem:[%s14242_s0 + $0x4c] ss:$28 sps:$4 sm:$0xff]   ;;  %v9914_v54 = vld [vmem:[%s14242_s0 + $0x35c] ss:$28 sps:$4 sm:$0xff]   ;;  %v10531_v9 = vld [vmem:[%s14241_s1 + $0xe0] sm:$0xff]  }
  0x3d   :  { %1389 = vmatprep.mubr.bf16.mxu1 %v9823_v55  ;;  %9756 = vmatpush3.bf16.msra.mxu1 %v9884_v10  ;;  %v9918_v55 = vld [vmem:[%s14241_s1 + $0x188] sm:$0xff]  }
  0x3e   :  { %8302 = vmatpush3.bf16.msra.mxu0 %v9884_v10  ;;  %9749 = vmatprep.subr.bf16.mxu1 %v9897_v14  ;;  %v10532_v10 = vld [vmem:[%s14241_s1] sm:$0xff]  }
  0x3f   :  { %8303 = vmatprep.subr.bf16.mxu0 %v9897_v14  ;;  %v9929_v14 = vld [vmem:[%s14242_s0 + $0xf4] ss:$28 sps:$4 sm:$0xff]  }
  0x41   :  { %9757 = vmatpush3.bf16.msra.mxu1 %v9898_v15 }
  0x42   :  { %8304 = vmatpush3.bf16.msra.mxu0 %v9898_v15  ;;  %9578 = vmatprep.subr.bf16.mxu1 %v10967_v19  ;;  %v10534_v15 = vld [vmem:[%s14241_s1 + $0xa0] sm:$0xff]  }
  0x43   :  { %1229 = vmatmul.mubr.bf16.gmra.mrb[16].mxu0 %v9825_v58  ;;  %8531 = vmatprep.subr.bf16.mxu0 %v10720_v1  ;;  %v9857_v1 = vld [vmem:[%s14242_s0 + $0x1fc] ss:$28 sps:$4 sm:$0xff]   ;;  %v9919_v58 = vld [vmem:[%s14242_s0 + $0x84] ss:$28 sps:$4 sm:$0xff]  }
  0x44   :  { %1390 = vmatmul.mubr.bf16.gmra.mrb[16].mxu1 %v9826_v59  ;;  %1236 = vmatprep.mubr.bf16.mxu0 %v9829_v60  ;;  %v10523_v59 = vld [vmem:[%s14241_s1 + $0x80] sm:$0xff]   ;;  %v10524_v60 = vld [vmem:[%s14241_s1 + $0xc8] sm:$0xff]  }
  0x45   :  { %1397 = vmatprep.mubr.bf16.mxu1 %v9831_v63  ;;  %v10526_v63 = vld [vmem:[%s14241_s1 + $0x88] sm:$0xff]  }
  0x4b   :  { %1237 = vmatmul.mubr.bf16.gmra.mrb[20].mxu0 %v9833_v0  ;;  %v10527_v0 = vld [vmem:[%s14241_s1 + $0xd0] sm:$0xff]  }
  0x4c   :  { %1398 = vmatmul.mubr.bf16.gmra.mrb[20].mxu1 %v9834_v2  ;;  %1244 = vmatprep.mubr.bf16.mxu0 %v9835_v3  ;;  %v9922_v2 = vld [vmem:[%s14242_s0 + $0x80] ss:$28 sps:$4 sm:$0xff]   ;;  %v9923_v3 = vld [vmem:[%s14242_s0 + $0x50] ss:$28 sps:$4 sm:$0xff]  }
  0x4d   :  { %1405 = vmatprep.mubr.bf16.mxu1 %v9837_v6  ;;  %v10529_v6 = vld [vmem:[%s14241_s1 + $0xd8] sm:$0xff]  }
  0x53   :  { %1245 = vmatmul.mubr.bf16.gmra.mrb[24].mxu0 %v9839_v7  ;;  %v9926_v7 = vld [vmem:[%s14242_s0 + $0x88] ss:$28 sps:$4 sm:$0xff]  }
  0x54   :  { %1406 = vmatmul.mubr.bf16.gmra.mrb[24].mxu1 %v9840_v8  ;;  %1252 = vmatprep.mubr.bf16.mxu0 %v9843_v11  ;;  %v10530_v8 = vld [vmem:[%s14241_s1 + $0x98] sm:$0xff]  }
  0x55   :  { %1413 = vmatprep.mubr.bf16.mxu1 %v9845_v12  ;;  %v9927_v11 = vld [vmem:[%s14242_s0 + $0xb8] ss:$28 sps:$4 sm:$0xff]   ;;  %v9928_v12 = vld [vmem:[%s14242_s0 + $0xc0] ss:$28 sps:$4 sm:$0xff]  }
  0x5b   :  { %1253 = vmatmul.mubr.bf16.gmra.mrb[28].mxu0 %v9847_v13  ;;  %v10533_v13 = vld [vmem:[%s14241_s1 + $0x48] sm:$0xff]  }
  0x5c   :  { %1414 = vmatmul.mubr.bf16.gmra.mrb[28].mxu1 %v9848_v16  ;;  %1260 = vmatprep.mubr.bf16.mxu0 %v9849_v17  ;;  %v10535_v16 = vld [vmem:[%s14241_s1 + $0xe8] sm:$0xff]  }
  0x5d   :  { %1421 = vmatprep.mubr.bf16.mxu1 %v9851_v18  ;;  %v10536_v17 = vld [vmem:[%s14241_s1 + $0x8] sm:$0xff]   ;;  %v9931_v18 = vld [vmem:[%s14242_s0 + $0xf8] ss:$28 sps:$4 sm:$0xff]  }
  0x63   :  { %1261 = vmatmul.mubr.bf16.gmra.mrb[32].mxu0 %v9853_v20  ;;  %v10537_v20 = vld [vmem:[%s14241_s1 + $0x50] sm:$0xff]  }
  0x64   :  { %1422 = vmatmul.mubr.bf16.gmra.mrb[32].mxu1 %v9854_v21  ;;  %1268 = vmatprep.mubr.bf16.mxu0 %v9857_v1  ;;  %v10538_v21 = vld [vmem:[%s14241_s1 + $0xa8] sm:$0xff]   ;;  %v10539_v1 = vld [vmem:[%s14241_s1 + $0xf0] sm:$0xff]  }
  0x65   :  { %1429 = vmatprep.mubr.bf16.mxu1 %v9859_v22  ;;  %v9932_v22 = vld [vmem:[%s14242_s0 + $0xf0] ss:$28 sps:$4 sm:$0xff]  }
  0x6b   :  { %1269 = vmatmul.mubr.bf16.gmra.mrb[36].mxu0 %v9861_v23  ;;  %v10540_v23 = vld [vmem:[%s14241_s1 + $0x10] sm:$0xff]  }
  0x6c   :  { %1430 = vmatmul.mubr.bf16.gmra.mrb[36].mxu1 %v9862_v24  ;;  %1276 = vmatprep.mubr.bf16.mxu0 %v9863_v25  ;;  %v9933_v24 = vld [vmem:[%s14242_s0 + $0x130] ss:$28 sps:$4 sm:$0xff]  }
  0x6d   :  { %1437 = vmatprep.mubr.bf16.mxu1 %v9865_v26  ;;  %v9934_v25 = vld [vmem:[%s14242_s0 + $0x12c] ss:$28 sps:$4 sm:$0xff]   ;;  %v10541_v26 = vld [vmem:[%s14241_s1 + $0x58] sm:$0xff]  }
  0x73   :  { %1277 = vmatmul.mubr.bf16.gmra.mrb[40].mxu0 %v9867_v27  ;;  %v10542_v27 = vld [vmem:[%s14241_s1 + $0xb0] sm:$0xff]  }
  0x74   :  { %1438 = vmatmul.mubr.bf16.gmra.mrb[40].mxu1 %v9868_v28  ;;  %1284 = vmatprep.mubr.bf16.mxu0 %v9871_v29  ;;  %v10543_v28 = vld [vmem:[%s14241_s1 + $0xf8] sm:$0xff]   ;;  %v9936_v29 = vld [vmem:[%s14242_s0 + $0x168] ss:$28 sps:$4 sm:$0xff]  }
  0x75   :  { %1445 = vmatprep.mubr.bf16.mxu1 %v9873_v30  ;;  %v10544_v30 = vld [vmem:[%s14241_s1 + $0x18] sm:$0xff]  }
  0x7b   :  { %1285 = vmatmul.mubr.bf16.gmra.mrb[44].mxu0 %v9875_v31  ;;  %v10545_v31 = vld [vmem:[%s14241_s1 + $0x60] sm:$0xff]  }
  0x7c   :  { %1446 = vmatmul.mubr.bf16.gmra.mrb[44].mxu1 %v9876_v32  ;;  %1292 = vmatprep.mubr.bf16.mxu0 %v9877_v33  ;;  %v10546_v32 = vld [vmem:[%s14241_s1 + $0xb8] sm:$0xff]   ;;  %v9937_v33 = vld [vmem:[%s14242_s0 + $0x128] ss:$28 sps:$4 sm:$0xff]  }
  0x7d   :  { %1453 = vmatprep.mubr.bf16.mxu1 %v9879_v34  ;;  %v10547_v34 = vld [vmem:[%s14241_s1 + $0x20] sm:$0xff]  }
  0x83   :  { %1293 = vmatmul.mubr.bf16.gmra.mrb[48].mxu0 %v9881_v35  ;;  %v9938_v35 = vld [vmem:[%s14242_s0 + $0x1a0] ss:$28 sps:$4 sm:$0xff]  }
  0x84   :  { %1454 = vmatmul.mubr.bf16.gmra.mrb[48].mxu1 %v9882_v36  ;;  %1300 = vmatprep.mubr.bf16.mxu0 %v9885_v37  ;;  %v10548_v36 = vld [vmem:[%s14241_s1 + $0x68] sm:$0xff]   ;;  %v9941_v37 = vld [vmem:[%s14242_s0 + $0x1d8] ss:$28 sps:$4 sm:$0xff]  }
  0x85   :  { %1461 = vmatprep.mubr.bf16.mxu1 %v9887_v38  ;;  %v10549_v38 = vld [vmem:[%s14241_s1 + $0x28] sm:$0xff]  }
  0x8b   :  { %1301 = vmatmul.mubr.bf16.gmra.mrb[52].mxu0 %v9889_v39  ;;  %v10550_v39 = vld [vmem:[%s14241_s1 + $0x70] sm:$0xff]  }
  0x8c   :  { %1462 = vmatmul.mubr.bf16.gmra.mrb[52].mxu1 %v9890_v40  ;;  %1308 = vmatprep.mubr.bf16.mxu0 %v9891_v41  ;;  %v9942_v40 = vld [vmem:[%s14242_s0 + $0x160] ss:$28 sps:$4 sm:$0xff]   ;;  %v10551_v41 = vld [vmem:[%s14241_s1 + $0x30] sm:$0xff]  }
  0x8d   :  { %1469 = vmatprep.mubr.bf16.mxu1 %v9893_v42  ;;  %v9943_v42 = vld [vmem:[%s14242_s0 + $0x210] ss:$28 sps:$4 sm:$0xff]  }
  0x93   :  { %1309 = vmatmul.mubr.bf16.gmra.mrb[56].mxu0 %v9895_v43  ;;  %v9944_v43 = vld [vmem:[%s14242_s0 + $0x19c] ss:$28 sps:$4 sm:$0xff]  }
  0x94   :  { %1470 = vmatmul.mubr.bf16.gmra.mrb[56].mxu1 %v9896_v44  ;;  %1316 = vmatprep.mubr.bf16.mxu0 %v9899_v45  ;;  %v10552_v44 = vld [vmem:[%s14241_s1 + $0x78] sm:$0xff]   ;;  %v9946_v45 = vld [vmem:[%s14242_s0 + $0x248] ss:$28 sps:$4 sm:$0xff]  }
  0x95   :  { %1477 = vmatprep.mubr.bf16.mxu1 %v9901_v46  ;;  %v10553_v46 = vld [vmem:[%s14241_s1 + $0x38] sm:$0xff]  }
  0x9b   :  { %1317 = vmatmul.mubr.bf16.gmra.mrb[60].mxu0 %v9903_v47  ;;  %v10554_v47 = vld [vmem:[%s14241_s1 + $0x140] sm:$0xff]  }
  0x9c   :  { %1478 = vmatmul.mubr.bf16.gmra.mrb[60].mxu1 %v9904_v48  ;;  %1518 = vmatprep.mubr.bf16.mxu0 %v9907_v49  ;;  %v9947_v48 = vld [vmem:[%s14242_s0 + $0x198] ss:$28 sps:$4 sm:$0xff]   ;;  %v9948_v49 = vld [vmem:[%s14242_s0 + $0x280] ss:$28 sps:$4 sm:$0xff]  }
  0x9d   :  { %1630 = vmatprep.mubr.bf16.mxu1 %v9910_v50  ;;  %v9949_v50 = vld [vmem:[%s14242_s0 + $0x1d4] ss:$28 sps:$4 sm:$0xff]  }
  0xa3   :  { %1519 = vmatmul.mubr.bf16.vlgmr.msra.gmra.mrb[64].mxu0 %v9905_v51  ;;  %v9951_v51 = vld [vmem:[%s14242_s0 + $0x2b8] ss:$28 sps:$4 sm:$0xff]  }
  0xa4   :  { %1631 = vmatmul.mubr.bf16.vlgmr.msra.gmra.mrb[64].mxu1 %v9908_v52  ;;  %1526 = vmatprep.mubr.bf16.mxu0 %v9912_v53  ;;  %v9952_v52 = vld [vmem:[%s14242_s0 + $0x1d0] ss:$28 sps:$4 sm:$0xff]  }
  0xa5   :  { %9579 = vmatpush3.bf16.msra.mxu1 %v10967_v19  ;;  %1638 = vmatprep.mubr.bf16.mxu1 %v9914_v54  ;;  %v9953_v53 = vld [vmem:[%s14242_s0 + $0x2f0] ss:$28 sps:$4 sm:$0xff]  }
  0xa6   :  { %9580 = vmatprep.subr.bf16.mxu1 %v9918_v55  ;;  %8532 = vmatpush3.bf16.msra.mxu0 %v10523_v59  ;;  %v9954_v54 = vld [vmem:[%s14242_s0 + $0x20c] ss:$28 sps:$4 sm:$0xff]   ;;  %v9963_v59 = vld [vmem:[%s14242_s0 + $0x384] ss:$28 sps:$4 sm:$0xff]  }
  0xa7   :  { %8533 = vmatprep.subr.bf16.mxu0 %v10524_v60  ;;  %v9964_v60 = vld [vmem:[%s14242_s0 + $0x240] ss:$28 sps:$4 sm:$0xff]  }
  0xa9   :  { %9581 = vmatpush3.bf16.msra.mxu1 %v9918_v55  ;;  %v9956_v55 = vld [vmem:[%s14242_s0 + $0x328] ss:$28 sps:$4 sm:$0xff]  }
  0xaa   :  { %8419 = vmatprep.subr.bf16.mxu1 %v11103_v62  ;;  %8534 = vmatpush3.bf16.msra.mxu0 %v10526_v63  ;;  %v9965_v63 = vld [vmem:[%s14242_s0 + $0x27c] ss:$28 sps:$4 sm:$0xff]  }
  0xab   :  { %1527 = vmatmul.mubr.bf16.gmra.mrb[68].mxu0 %v9916_v56  ;;  %8535 = vmatprep.subr.bf16.mxu0 %v10527_v0  ;;  %v9957_v56 = vld [vmem:[%s14242_s0 + $0x208] ss:$28 sps:$4 sm:$0xff]   ;;  %v9967_v0 = vld [vmem:[%s14242_s0 + $0x3bc] ss:$28 sps:$4 sm:$0xff]  }
  0xac   :  { %1639 = vmatmul.mubr.bf16.gmra.mrb[68].mxu1 %v9917_v57  ;;  %1534 = vmatprep.mubr.bf16.mxu0 %v9919_v58  ;;  %v9958_v57 = vld [vmem:[%s14242_s0 + $0x360] ss:$28 sps:$4 sm:$0xff]  }
  0xad   :  { %9582 = vmatprep.mubr.msk.bf16.mxu1 %vm1115_vm0, %v9921_v61  ;;  %v9959_v58 = vld [vmem:[%s14242_s0 + $0x244] ss:$28 sps:$4 sm:$0xff]  }
  0xae   :  { %8536 = vmatpush3.bf16.msra.mxu0 %v10528_v5  ;;  %v9961_v61 = vld [vmem:[%s14242_s0 + $0x380] ss:$28 sps:$4 sm:$0xff]   ;;  %v9970_v5 = vld [vmem:[%s14242_s0 + $0x3b8] ss:$28 sps:$4 sm:$0xff]  }
  0xaf   :  { %8537 = vmatprep.subr.bf16.mxu0 %v10529_v6  ;;  %v9971_v6 = vld [vmem:[%s14242_s0 + $0x2b4] ss:$28 sps:$4 sm:$0xff]  }
  0xb2   :  { %8538 = vmatpush3.bf16.msra.mxu0 %v10530_v8 }
  0xb3   :  { %1535 = vmatmul.mubr.bf16.gmra.mrb[72].mxu0 %v9922_v2  ;;  %8539 = vmatprep.subr.bf16.mxu0 %v10531_v9  ;;  %v10555_v2 = vld [vmem:[%s14241_s1 + $0x100] sm:$0xff]  }
  0xb4   :  { %9583 = vmatmul.mubr.msk.bf16.vlgmr.msra.gmra.mrb[72].mxu1 %vm1115_vm0, %v9923_v3  ;;  %1542 = vmatprep.mubr.bf16.mxu0 %v9924_v4  ;;  %v9969_v3 = vld [vmem:[%s14242_s0 + $0x278] ss:$28 sps:$4 sm:$0xff]  }
  0xb5   :  { %8420 = vmatpush3.bf16.msra.mxu1 %v10532_v10  ;;  %9586 = vmatprep.mubr.msk.bf16.mxu1 %vm1115_vm0, %v9926_v7  ;;  %v10556_v7 = vld [vmem:[%s14241_s1 + $0x148] sm:$0xff]  }
  0xb6   :  { %8421 = vmatprep.subr.bf16.mxu1 %v10533_v13  ;;  %8540 = vmatpush3.bf16.msra.mxu0 %v10534_v15 }
  0xb7   :  { %8541 = vmatprep.subr.bf16.mxu0 %v10535_v16  ;;  %v9973_v16 = vld [vmem:[%s14242_s0 + $0x3f4] ss:$28 sps:$4 sm:$0xff]  }
  0xb9   :  { %8422 = vmatpush3.bf16.msra.mxu1 %v10536_v17  ;;  %v10557_v17 = vld [vmem:[%s14241_s1 + $0x108] sm:$0xff]  }
  0xba   :  { %8423 = vmatprep.subr.bf16.mxu1 %v10537_v20  ;;  %8542 = vmatpush3.bf16.msra.mxu0 %v10538_v21  ;;  %v10558_v21 = vld [vmem:[%s14241_s1 + $0x150] sm:$0xff]  }
  0xbb   :  { %1543 = vmatmul.mubr.bf16.gmra.mrb[76].mxu0 %v9927_v11  ;;  %8543 = vmatprep.subr.bf16.mxu0 %v10539_v1 }
  0xbc   :  { %9587 = vmatmul.mubr.msk.bf16.gmra.mrb[76].mxu1 %vm1115_vm0, %v9928_v12  ;;  %1550 = vmatprep.mubr.bf16.mxu0 %v9929_v14 }
  0xbd   :  { %9590 = vmatprep.mubr.msk.bf16.mxu1 %vm1115_vm0, %v9931_v18  ;;  %8424 = vmatpush3.bf16.msra.mxu1 %v10540_v23 }
  0xbe   :  { %8425 = vmatprep.subr.bf16.mxu1 %v10541_v26  ;;  %8544 = vmatpush3.bf16.msra.mxu0 %v10542_v27  ;;  %v9976_v27 = vld [vmem:[%s14242_s0 + $0x3f0] ss:$28 sps:$4 sm:$0xff]  }
  0xbf   :  { %8545 = vmatprep.subr.bf16.mxu0 %v10543_v28  ;;  %v9977_v28 = vld [vmem:[%s14242_s0 + $0x2ec] ss:$28 sps:$4 sm:$0xff]  }
  0xc1   :  { %8426 = vmatpush3.bf16.msra.mxu1 %v10544_v30 }
  0xc2   :  { %8427 = vmatprep.subr.bf16.mxu1 %v10545_v31  ;;  %8546 = vmatpush3.bf16.msra.mxu0 %v10546_v32 }
  0xc3   :  { %1551 = vmatmul.mubr.bf16.gmra.mrb[80].mxu0 %v9932_v22  ;;  %9614 = vmatprep.subr.bf16.mxu0 %v10967_v19  ;;  %v9939_v19 = vld [vmem:[%s14242_s0 + $0x164] ss:$28 sps:$4 sm:$0xff]  }
  0xc4   :  { %9591 = vmatmul.mubr.msk.bf16.gmra.mrb[80].mxu1 %vm1115_vm0, %v9933_v24  ;;  %1558 = vmatprep.mubr.bf16.mxu0 %v9934_v25  ;;  %v9975_v24 = vld [vmem:[%s14242_s0 + $0x2b0] ss:$28 sps:$4 sm:$0xff]  }
  0xc5   :  { %9594 = vmatprep.mubr.msk.bf16.mxu1 %vm1115_vm0, %v9936_v29  ;;  %8428 = vmatpush3.bf16.msra.mxu1 %v10547_v34  ;;  %v10559_v25 = vld [vmem:[%s14241_s1 + $0x110] sm:$0xff]   ;;  %v10560_v29 = vld [vmem:[%s14241_s1 + $0x158] sm:$0xff]  }
  0xc6   :  { %8429 = vmatprep.subr.bf16.mxu1 %v10548_v36 }
  0xc9   :  { %8430 = vmatpush3.bf16.msra.mxu1 %v10549_v38  ;;  %v10561_v38 = vld [vmem:[%s14241_s1 + $0x118] sm:$0xff]  }
  0xca   :  { %8431 = vmatprep.subr.bf16.mxu1 %v10550_v39 }
  0xcb   :  { %1559 = vmatmul.mubr.bf16.gmra.mrb[84].mxu0 %v9937_v33 }
  0xcc   :  { %9595 = vmatmul.mubr.msk.bf16.gmra.mrb[84].mxu1 %vm1115_vm0, %v9938_v35  ;;  %1566 = vmatprep.mubr.bf16.mxu0 %v9939_v19 }
  0xcd   :  { %9598 = vmatprep.mubr.msk.bf16.mxu1 %vm1115_vm0, %v9941_v37  ;;  %8432 = vmatpush3.bf16.msra.mxu1 %v10551_v41  ;;  %v9979_v37 = vld [vmem:[%s14242_s0 + $0x42c] ss:$28 sps:$4 sm:$0xff]   ;;  %v10562_v41 = vld [vmem:[%s14241_s1 + $0x160] sm:$0xff]  }
  0xce   :  { %8433 = vmatprep.subr.bf16.mxu1 %v10552_v44 }
  0xd1   :  { %8434 = vmatpush3.bf16.msra.mxu1 %v10553_v46  ;;  %v10563_v46 = vld [vmem:[%s14241_s1 + $0x120] sm:$0xff]  }
  0xd2   :  { %8643 = vmatprep.subr.bf16.mxu1 %v10554_v47 }
  0xd3   :  { %1567 = vmatmul.mubr.bf16.gmra.mrb[88].mxu0 %v9942_v40 }
  0xd4   :  { %9599 = vmatmul.mubr.msk.bf16.gmra.mrb[88].mxu1 %vm1115_vm0, %v9943_v42  ;;  %1574 = vmatprep.mubr.bf16.mxu0 %v9944_v43 }
  0xd5   :  { %9602 = vmatprep.mubr.msk.bf16.mxu1 %vm1115_vm0, %v9946_v45  ;;  %v9981_v45 = vld [vmem:[%s14242_s0 + $0x2e8] ss:$28 sps:$4 sm:$0xff]  }
  0xdb   :  { %1575 = vmatmul.mubr.bf16.gmra.mrb[92].mxu0 %v9947_v48  ;;  %v9982_v48 = vld [vmem:[%s14242_s0 + $0x428] ss:$28 sps:$4 sm:$0xff]  }
  0xdc   :  { %9603 = vmatmul.mubr.msk.bf16.gmra.mrb[92].mxu1 %vm1115_vm0, %v9948_v49  ;;  %1582 = vmatprep.mubr.bf16.mxu0 %v9949_v50  ;;  %v9987_v49 = vld [vmem:[%s14242_s0 + $0x38c] ss:$28 sps:$4 sm:$0xff]  }
  0xdd   :  { %9606 = vmatprep.mubr.msk.bf16.mxu1 %vm1115_vm0, %v9951_v51  ;;  %v10564_v50 = vld [vmem:[%s14241_s1 + $0x168] sm:$0xff]  }
  0xe3   :  { %1583 = vmatmul.mubr.bf16.gmra.mrb[96].mxu0 %v9952_v52 }
  0xe4   :  { %9607 = vmatmul.mubr.msk.bf16.gmra.mrb[96].mxu1 %vm1115_vm0, %v9953_v53  ;;  %1590 = vmatprep.mubr.bf16.mxu0 %v9954_v54 }
  0xe5   :  { %9610 = vmatprep.mubr.msk.bf16.mxu1 %vm1115_vm0, %v9956_v55 }
  0xeb   :  { %1591 = vmatmul.mubr.bf16.gmra.mrb[100].mxu0 %v9957_v56 }
  0xec   :  { %9611 = vmatmul.mubr.msk.bf16.gmra.mrb[100].mxu1 %vm1115_vm0, %v9958_v57  ;;  %1598 = vmatprep.mubr.bf16.mxu0 %v9959_v58 }
  0xed   :  { %2577 = vmatprep.mubr.bf16.mxu1 %v9963_v59  ;;  %v9983_v59 = vld [vmem:[%s14242_s0 + $0x464] ss:$28 sps:$4 sm:$0xff]  }
  0xf3   :  { %1599 = vmatmul.mubr.bf16.gmra.mrb[104].mxu0 %v9964_v60  ;;  %v10565_v60 = vld [vmem:[%s14241_s1 + $0x128] sm:$0xff]  }
  0xf4   :  { %2578 = vmatmul.mubr.bf16.vlgmr.msra.gmra.mrb[104].mxu1 %v9961_v61  ;;  %1606 = vmatprep.mubr.bf16.mxu0 %v9965_v63 }
  0xf5   :  { %8644 = vmatpush3.bf16.msra.mxu1 %v10555_v2  ;;  %2585 = vmatprep.mubr.bf16.mxu1 %v9967_v0  ;;  %v10566_v0 = vld [vmem:[%s14241_s1 + $0x170] sm:$0xff]  }
  0xf6   :  { %v8081_v4 = vpop.f32.mrb[0].mxu0  ;;  %8645 = vmatprep.subr.bf16.mxu1 %v10556_v7 }
  0xf7   :  { %v8193_v8 = vpop.f32.mrb[0].mxu1  ;;  %v8082_v9 = vpop.f32.mrb[1].mxu0 }
  0xf8   :  { %v8083_v10 = vadd.f32 %v8082_v9, %v8081_v4  ;;  %v8194_v11 = vpop.f32.mrb[1].mxu1  ;;  %v8084_v12 = vpop.f32.mrb[2].mxu0  ;;  %v9991_v9 = vld [vmem:[%s14242_s0 + $0x3c4] ss:$28 sps:$4 sm:$0xff]  }
  0xf9   :  { %v8195_v13 = vadd.f32 %v8194_v11, %v8193_v8  ;;  %v8196_v14 = vpop.f32.mrb[2].mxu1  ;;  %v8085_v15 = vpop.f32.mrb[3].mxu0  ;;  %8646 = vmatpush3.bf16.msra.mxu1 %v10557_v17  ;;  %v9988_v8 = vld [vmem:[%s14242_s0 + $0x460] ss:$28 sps:$4 sm:$0xff]  }
  0xfa   :  { %v8086_v18 = vadd.f32 %v8085_v15, %v8084_v12  ;;  %v8197_v20 = vpop.f32.mrb[3].mxu1  ;;  %8647 = vmatprep.subr.bf16.mxu1 %v10558_v21  ;;  %v10569_v21 = vld [vmem:[%s14241_s1 + $0x138] sm:$0xff]  }
  0xfb   :  { %v11342_v1 = vadd.f32 %v8195_v13, %v8083_v10  ;;  %v8198_v22 = vadd.f32 %v8197_v20, %v8196_v14  ;;  %1607 = vmatmul.mubr.bf16.gmra.mrb[108].mxu0 %v9969_v3  ;;  %v10568_v10 = vld [vmem:[%s14241_s1 + $0x178] sm:$0xff]  }
  0xfc   :  { %2586 = vmatmul.mubr.bf16.gmra.mrb[108].mxu1 %v9970_v5  ;;  %1614 = vmatprep.mubr.bf16.mxu0 %v9971_v6  ;;  %v9985_v5 = vld [vmem:[%s14242_s0 + $0x388] ss:$28 sps:$4 sm:$0xff]   ;;  %v10567_v6 = vld [vmem:[%s14241_s1 + $0x130] sm:$0xff]   ;;  %v9989_v20 = vld [vmem:[%s14242_s0 + $0x49c] ss:$28 sps:$4 sm:$0xff]  }
  0xfd   :  { %v11344_v23 = vadd.f32 %v8198_v22, %v8086_v18  ;;  %2593 = vmatprep.mubr.bf16.mxu1 %v9973_v16  ;;  %8648 = vmatpush3.bf16.msra.mxu1 %v10559_v25  ;;  %v10570_v25 = vld [vmem:[%s14241_s1 + $0xc0] sm:$0xff]  }
  0xfe   :  { %v8087_v26 = vpop.f32.mrb[4].mxu0  ;;  %8649 = vmatprep.subr.bf16.mxu1 %v10560_v29  ;;  %v9994_v29 = vld [vmem:[%s14242_s0 + $0x3c0] ss:$28 sps:$4 sm:$0xff]  }
  0xff   :  { %v8199_v30 = vpop.f32.mrb[4].mxu1  ;;  %v8088_v31 = vpop.f32.mrb[5].mxu0 }
 0x100   :  { %v8089_v32 = vadd.f32 %v8088_v31, %v8087_v26  ;;  %v8200_v33 = vpop.f32.mrb[5].mxu1  ;;  %v8090_v34 = vpop.f32.mrb[6].mxu0 }
 0x101   :  { %v8201_v35 = vadd.f32 %v8200_v33, %v8199_v30  ;;  %v8202_v19 = vpop.f32.mrb[6].mxu1  ;;  %v8091_v36 = vpop.f32.mrb[7].mxu0  ;;  %8650 = vmatpush3.bf16.msra.mxu1 %v10561_v38  ;;  %v11436_v30 = vld [vmem:[%s14241_s1 + $0x180] sm:$0xff]   ;;  %v9997_v33 = vld [vmem:[%s14242_s0 + $0x3fc] ss:$28 sps:$4 sm:$0xff]  }
 0x102   :  { %v8092_v39 = vadd.f32 %v8091_v36, %v8090_v34  ;;  %v8203_v40 = vpop.f32.mrb[7].mxu1  ;;  %8651 = vmatprep.subr.bf16.mxu1 %v10562_v41  ;;  %v10572_v34 = vld [vmem:[%s14241_s1 + $0x188] sm:$0xff]  }
 0x103   :  { %v11370_v42 = vadd.f32 %v8201_v35, %v8089_v32  ;;  %v8204_v43 = vadd.f32 %v8203_v40, %v8202_v19  ;;  %1615 = vmatmul.mubr.bf16.gmra.mrb[112].mxu0 %v9975_v24  ;;  %v9993_v32 = vld [vmem:[%s14242_s0 + $0x498] ss:$28 sps:$4 sm:$0xff]  }
 0x104   :  { %2594 = vmatmul.mubr.bf16.gmra.mrb[112].mxu1 %v9976_v27  ;;  %1622 = vmatprep.mubr.bf16.mxu0 %v9977_v28 }
 0x105   :  { %v11372_v44 = vadd.f32 %v8204_v43, %v8092_v39  ;;  %2601 = vmatprep.mubr.bf16.mxu1 %v9979_v37  ;;  %8652 = vmatpush3.bf16.msra.mxu1 %v10563_v46  ;;  %v9995_v43 = vld [vmem:[%s14242_s0 + $0x4d4] ss:$28 sps:$4 sm:$0xff]  }
 0x106   :  { %v8093_v47 = vpop.f32.mrb[8].mxu0  ;;  %8653 = vmatprep.subr.bf16.mxu1 %v10564_v50 }
 0x107   :  { %v8205_v51 = vpop.f32.mrb[8].mxu1  ;;  %v8094_v52 = vpop.f32.mrb[9].mxu0 }
 0x108   :  { %v8095_v53 = vadd.f32 %v8094_v52, %v8093_v47  ;;  %v8206_v54 = vpop.f32.mrb[9].mxu1  ;;  %v8096_v55 = vpop.f32.mrb[10].mxu0 }
 0x109   :  { %v8207_v56 = vadd.f32 %v8206_v54, %v8205_v51  ;;  %v8208_v57 = vpop.f32.mrb[10].mxu1  ;;  %v8097_v58 = vpop.f32.mrb[11].mxu0  ;;  %8654 = vmatpush3.bf16.msra.mxu1 %v10565_v60 }
 0x10a   :  { %v8098_v61 = vadd.f32 %v8097_v58, %v8096_v55  ;;  %v8209_v63 = vpop.f32.mrb[11].mxu1  ;;  %8655 = vmatprep.subr.bf16.mxu1 %v10566_v0 }
 0x10b   :  { %v11398_v2 = vadd.f32 %v8207_v56, %v8095_v53  ;;  %v8210_v3 = vadd.f32 %v8209_v63, %v8208_v57  ;;  %1623 = vmatmul.mubr.bf16.gmra.mrb[116].mxu0 %v9981_v45  ;;  %v10000_v53 = vld [vmem:[%s14242_s0 + $0x3f8] ss:$28 sps:$4 sm:$0xff]  }
 0x10c   :  { %2602 = vmatmul.mubr.bf16.gmra.mrb[116].mxu1 %v9982_v48  ;;  %2738 = vmatprep.mubr.bf16.mxu0 %v9987_v49  ;;  %v10003_v57 = vld [vmem:[%s14242_s0 + $0x434] ss:$28 sps:$4 sm:$0xff]  }
 0x10d   :  { %v11400_v4 = vadd.f32 %v8210_v3, %v8098_v61  ;;  %2609 = vmatprep.mubr.bf16.mxu1 %v9983_v59  ;;  %8656 = vmatpush3.bf16.msra.mxu1 %v10567_v6  ;;  %v10001_v61 = vld [vmem:[%s14242_s0 + $0x50c] ss:$28 sps:$4 sm:$0xff]  }
 0x10e   :  { %v8099_v7 = vpop.f32.mrb[12].mxu0  ;;  %8657 = vmatprep.subr.bf16.mxu1 %v10568_v10  ;;  %v10006_v10 = vld [vmem:[%s14242_s0 + $0x430] ss:$28 sps:$4 sm:$0xff]  }
 0x10f   :  { %v8211_v11 = vpop.f32.mrb[12].mxu1  ;;  %v8100_v12 = vpop.f32.mrb[13].mxu0 }
 0x110   :  { %v8101_v13 = vadd.f32 %v8100_v12, %v8099_v7  ;;  %v8212_v14 = vpop.f32.mrb[13].mxu1  ;;  %v8102_v15 = vpop.f32.mrb[14].mxu0 }
 0x111   :  { %v8213_v16 = vadd.f32 %v8212_v14, %v8211_v11  ;;  %v8214_v17 = vpop.f32.mrb[14].mxu1  ;;  %v8103_v18 = vpop.f32.mrb[15].mxu0  ;;  %8658 = vmatpush3.bf16.msra.mxu1 %v10569_v21  ;;  %v10005_v14 = vld [vmem:[%s14242_s0 + $0x508] ss:$28 sps:$4 sm:$0xff]  }
 0x112   :  { %v8104_v22 = vadd.f32 %v8103_v18, %v8102_v15  ;;  %v8215_v24 = vpop.f32.mrb[15].mxu1  ;;  %8885 = vmatprep.subr.bf16.mxu1 %v10570_v25  ;;  %v10009_v15 = vld [vmem:[%s14242_s0 + $0x46c] ss:$28 sps:$4 sm:$0xff]  }
 0x113   :  { %v11426_v26 = vadd.f32 %v8213_v16, %v8101_v13  ;;  %v8216_v27 = vadd.f32 %v8215_v24, %v8214_v17  ;;  %2739 = vmatmul.mubr.bf16.vlgmr.msra.gmra.mrb[120].mxu0 %v9985_v5 }
 0x114   :  { %2610 = vmatmul.mubr.bf16.gmra.mrb[120].mxu1 %v9988_v8  ;;  %2746 = vmatprep.mubr.bf16.mxu0 %v9991_v9 }
 0x115   :  { %v11428_v28 = vadd.f32 %v8216_v27, %v8104_v22  ;;  %2617 = vmatprep.mubr.bf16.mxu1 %v9989_v20  ;;  %9615 = vmatpush3.bf16.msra.mxu0 %v11436_v30  ;;  %v10007_v20 = vld [vmem:[%s14242_s0 + $0x544] ss:$28 sps:$4 sm:$0xff]  }
 0x116   :  { %v8105_v31 = vpop.f32.mrb[16].mxu0  ;;  %9616 = vmatprep.subr.bf16.mxu0 %v10572_v34 }
 0x117   :  { %v8217_v35 = vpop.f32.mrb[16].mxu1  ;;  %v8106_v19 = vpop.f32.mrb[17].mxu0 }
 0x118   :  { %v8107_v36 = vadd.f32 %v8106_v19, %v8105_v31  ;;  %v8218_v37 = vpop.f32.mrb[17].mxu1  ;;  %v8108_v38 = vpop.f32.mrb[18].mxu0 }
 0x119   :  { %v8219_v39 = vadd.f32 %v8218_v37, %v8217_v35  ;;  %v8220_v40 = vpop.f32.mrb[18].mxu1  ;;  %v8109_v41 = vpop.f32.mrb[19].mxu0  ;;  %9617 = vmatpush3.bf16.msra.mxu0 %v10572_v34  ;;  %v10015_v37 = vld [vmem:[%s14242_s0 + $0x4a4] ss:$28 sps:$4 sm:$0xff]  }
 0x11a   :  { %v8110_v45 = vadd.f32 %v8109_v41, %v8108_v38  ;;  %v8221_v46 = vpop.f32.mrb[19].mxu1  ;;  %8773 = vmatprep.subr.bf16.mxu0 %v11103_v62  ;;  %v9999_v62 = vld [vmem:[%s14242_s0 + $0x4d0] ss:$28 sps:$4 sm:$0xff]   ;;  %v10013_v41 = vld [vmem:[%s14242_s0 + $0x57c] ss:$28 sps:$4 sm:$0xff]  }
 0x11b   :  { %v11452_v47 = vadd.f32 %v8219_v39, %v8107_v36  ;;  %v8222_v48 = vadd.f32 %v8221_v46, %v8220_v40  ;;  %2747 = vmatmul.mubr.bf16.gmra.mrb[124].mxu0 %v9994_v29  ;;  %v10011_v36 = vld [vmem:[%s14242_s0 + $0x540] ss:$28 sps:$4 sm:$0xff]  }
 0x11c   :  { %2618 = vmatmul.mubr.bf16.gmra.mrb[124].mxu1 %v9993_v32  ;;  %2754 = vmatprep.mubr.bf16.mxu0 %v9997_v33  ;;  %v10012_v33 = vld [vmem:[%s14242_s0 + $0x468] ss:$28 sps:$4 sm:$0xff]  }
 0x11d   :  { %v11454_v49 = vadd.f32 %v8222_v48, %v8110_v45  ;;  %2625 = vmatprep.mubr.bf16.mxu1 %v9995_v43 }
 0x11e   :  { %v8111_v50 = vpop.f32.mrb[20].mxu0 }
 0x11f   :  { %v8223_v51 = vpop.f32.mrb[20].mxu1  ;;  %v8112_v52 = vpop.f32.mrb[21].mxu0 }
 0x120   :  { %v8113_v54 = vadd.f32 %v8112_v52, %v8111_v50  ;;  %v8224_v55 = vpop.f32.mrb[21].mxu1  ;;  %v8114_v56 = vpop.f32.mrb[22].mxu0 }
 0x121   :  { %v8225_v58 = vadd.f32 %v8224_v55, %v8223_v51  ;;  %v8226_v59 = vpop.f32.mrb[22].mxu1  ;;  %v8115_v60 = vpop.f32.mrb[23].mxu0 }
 0x122   :  { %v8116_v63 = vadd.f32 %v8115_v60, %v8114_v56  ;;  %v8227_v0 = vpop.f32.mrb[23].mxu1 }
 0x123   :  { %v11468_v3 = vadd.f32 %v8225_v58, %v8113_v54  ;;  %v8228_v5 = vadd.f32 %v8227_v0, %v8226_v59  ;;  %2755 = vmatmul.mubr.bf16.gmra.mrb[128].mxu0 %v10000_v53  ;;  %v10018_v54 = vld [vmem:[%s14242_s0 + $0x4a0] ss:$28 sps:$4 sm:$0xff]  }
 0x124   :  { %2626 = vmatmul.mubr.bf16.gmra.mrb[128].mxu1 %v9999_v62  ;;  %2762 = vmatprep.mubr.bf16.mxu0 %v10003_v57  ;;  %v10017_v57 = vld [vmem:[%s14242_s0 + $0x578] ss:$28 sps:$4 sm:$0xff]  }
 0x125   :  { %v11470_v6 = vadd.f32 %v8228_v5, %v8116_v63  ;;  %2633 = vmatprep.mubr.bf16.mxu1 %v10001_v61  ;;  %v10021_v58 = vld [vmem:[%s14242_s0 + $0x4dc] ss:$28 sps:$4 sm:$0xff]   ;;  %v10019_v63 = vld [vmem:[%s14242_s0 + $0x5b4] ss:$28 sps:$4 sm:$0xff]  }
 0x126   :  { %v8117_v7 = vpop.f32.mrb[24].mxu0 }
 0x127   :  { %v8229_v8 = vpop.f32.mrb[24].mxu1  ;;  %v8118_v9 = vpop.f32.mrb[25].mxu0 }
 0x128   :  { %v8119_v11 = vadd.f32 %v8118_v9, %v8117_v7  ;;  %v8230_v12 = vpop.f32.mrb[25].mxu1  ;;  %v8120_v13 = vpop.f32.mrb[26].mxu0 }
 0x129   :  { %v8231_v16 = vadd.f32 %v8230_v12, %v8229_v8  ;;  %v8232_v17 = vpop.f32.mrb[26].mxu1  ;;  %v8121_v18 = vpop.f32.mrb[27].mxu0 }
 0x12a   :  { %v8122_v21 = vadd.f32 %v8121_v18, %v8120_v13  ;;  %v8233_v22 = vpop.f32.mrb[27].mxu1  ;;  %v10024_v13 = vld [vmem:[%s14242_s0 + $0x4d8] ss:$28 sps:$4 sm:$0xff]  }
 0x12b   :  { %v11484_v24 = vadd.f32 %v8231_v16, %v8119_v11  ;;  %v8234_v25 = vadd.f32 %v8233_v22, %v8232_v17  ;;  %2763 = vmatmul.mubr.bf16.gmra.mrb[132].mxu0 %v10006_v10  ;;  %v10023_v17 = vld [vmem:[%s14242_s0 + $0x5b0] ss:$28 sps:$4 sm:$0xff]  }
 0x12c   :  { %2634 = vmatmul.mubr.bf16.gmra.mrb[132].mxu1 %v10005_v14  ;;  %2770 = vmatprep.mubr.bf16.mxu0 %v10009_v15  ;;  %v10027_v18 = vld [vmem:[%s14242_s0 + $0x514] ss:$28 sps:$4 sm:$0xff]  }
 0x12d   :  { %v11486_v27 = vadd.f32 %v8234_v25, %v8122_v21  ;;  %2641 = vmatprep.mubr.bf16.mxu1 %v10007_v20  ;;  %v10025_v25 = vld [vmem:[%s14242_s0 + $0x5ec] ss:$28 sps:$4 sm:$0xff]  }
 0x12e   :  { %v8123_v29 = vpop.f32.mrb[28].mxu0 }
 0x12f   :  { %v8235_v31 = vpop.f32.mrb[28].mxu1  ;;  %v8124_v32 = vpop.f32.mrb[29].mxu0 }
 0x130   :  { %v8125_v34 = vadd.f32 %v8124_v32, %v8123_v29  ;;  %v8236_v35 = vpop.f32.mrb[29].mxu1  ;;  %v8126_v19 = vpop.f32.mrb[30].mxu0 }
 0x131   :  { %v8237_v38 = vadd.f32 %v8236_v35, %v8235_v31  ;;  %v8238_v39 = vpop.f32.mrb[30].mxu1  ;;  %v8127_v40 = vpop.f32.mrb[31].mxu0 }
 0x132   :  { %v8128_v43 = vadd.f32 %v8127_v40, %v8126_v19  ;;  %v8239_v45 = vpop.f32.mrb[31].mxu1 }
 0x133   :  { %v11500_v46 = vadd.f32 %v8237_v38, %v8125_v34  ;;  %v8240_v48 = vadd.f32 %v8239_v45, %v8238_v39  ;;  %2771 = vmatmul.mubr.bf16.gmra.mrb[136].mxu0 %v10012_v33 }
 0x134   :  { %2642 = vmatmul.mubr.bf16.gmra.mrb[136].mxu1 %v10011_v36  ;;  %2778 = vmatprep.mubr.bf16.mxu0 %v10015_v37  ;;  %v10030_v37 = vld [vmem:[%s14242_s0 + $0x510] ss:$28 sps:$4 sm:$0xff]  }
 0x135   :  { %v11502_v50 = vadd.f32 %v8240_v48, %v8128_v43  ;;  %2649 = vmatprep.mubr.bf16.mxu1 %v10013_v41  ;;  %v10029_v41 = vld [vmem:[%s14242_s0 + $0x5e8] ss:$28 sps:$4 sm:$0xff]  }
 0x136   :  { %v8129_v51 = vpop.f32.mrb[32].mxu0  ;;  %v10033_v43 = vld [vmem:[%s14242_s0 + $0x54c] ss:$28 sps:$4 sm:$0xff]  }
 0x137   :  { %v8241_v52 = vpop.f32.mrb[32].mxu1  ;;  %v8130_v53 = vpop.f32.mrb[33].mxu0 }
 0x138   :  { %v8131_v55 = vadd.f32 %v8130_v53, %v8129_v51  ;;  %v8242_v56 = vpop.f32.mrb[33].mxu1  ;;  %v8132_v62 = vpop.f32.mrb[34].mxu0 }
 0x139   :  { %v8243_v59 = vadd.f32 %v8242_v56, %v8241_v52  ;;  %v8244_v60 = vpop.f32.mrb[34].mxu1  ;;  %v8133_v61 = vpop.f32.mrb[35].mxu0  ;;  %v10031_v52 = vld [vmem:[%s14242_s0 + $0x624] ss:$28 sps:$4 sm:$0xff]  }
 0x13a   :  { %v8134_v0 = vadd.f32 %v8133_v61, %v8132_v62  ;;  %v8245_v5 = vpop.f32.mrb[35].mxu1 }
 0x13b   :  { %v11516_v7 = vadd.f32 %v8243_v59, %v8131_v55  ;;  %v8246_v8 = vadd.f32 %v8245_v5, %v8244_v60  ;;  %2779 = vmatmul.mubr.bf16.gmra.mrb[140].mxu0 %v10018_v54  ;;  %v10036_v60 = vld [vmem:[%s14242_s0 + $0x548] ss:$28 sps:$4 sm:$0xff]   ;;  %v10035_v5 = vld [vmem:[%s14242_s0 + $0x620] ss:$28 sps:$4 sm:$0xff]  }
 0x13c   :  { %2650 = vmatmul.mubr.bf16.gmra.mrb[140].mxu1 %v10017_v57  ;;  %2786 = vmatprep.mubr.bf16.mxu0 %v10021_v58 }
 0x13d   :  { %v11518_v9 = vadd.f32 %v8246_v8, %v8134_v0  ;;  %2657 = vmatprep.mubr.bf16.mxu1 %v10019_v63  ;;  %v10039_v8 = vld [vmem:[%s14242_s0 + $0x584] ss:$28 sps:$4 sm:$0xff]  }
 0x13e   :  { %v8135_v10 = vpop.f32.mrb[36].mxu0 }
 0x13f   :  { %v8247_v11 = vpop.f32.mrb[36].mxu1  ;;  %v8136_v12 = vpop.f32.mrb[37].mxu0 }
 0x140   :  { %v8137_v14 = vadd.f32 %v8136_v12, %v8135_v10  ;;  %v8248_v15 = vpop.f32.mrb[37].mxu1  ;;  %v8138_v16 = vpop.f32.mrb[38].mxu0 }
 0x141   :  { %v8249_v20 = vadd.f32 %v8248_v15, %v8247_v11  ;;  %v8250_v21 = vpop.f32.mrb[38].mxu1  ;;  %v8139_v22 = vpop.f32.mrb[39].mxu0 }
 0x142   :  { %v8140_v29 = vadd.f32 %v8139_v22, %v8138_v16  ;;  %v8251_v31 = vpop.f32.mrb[39].mxu1 }
 0x143   :  { %v11532_v32 = vadd.f32 %v8249_v20, %v8137_v14  ;;  %v8252_v33 = vadd.f32 %v8251_v31, %v8250_v21  ;;  %2787 = vmatmul.mubr.bf16.gmra.mrb[144].mxu0 %v10024_v13  ;;  %v10037_v13 = vld [vmem:[%s14242_s0 + $0x65c] ss:$28 sps:$4 sm:$0xff]  }
 0x144   :  { %2658 = vmatmul.mubr.bf16.gmra.mrb[144].mxu1 %v10023_v17  ;;  %2794 = vmatprep.mubr.bf16.mxu0 %v10027_v18 }
 0x145   :  { %v11534_v34 = vadd.f32 %v8252_v33, %v8140_v29  ;;  %2665 = vmatprep.mubr.bf16.mxu1 %v10025_v25  ;;  %v10042_v25 = vld [vmem:[%s14242_s0 + $0x580] ss:$28 sps:$4 sm:$0xff]  }
 0x146   :  { %v8141_v35 = vpop.f32.mrb[40].mxu0 }
 0x147   :  { %v8253_v19 = vpop.f32.mrb[40].mxu1  ;;  %v8142_v36 = vpop.f32.mrb[41].mxu0 }
 0x148   :  { %v8143_v38 = vadd.f32 %v8142_v36, %v8141_v35  ;;  %v8254_v39 = vpop.f32.mrb[41].mxu1  ;;  %v8144_v40 = vpop.f32.mrb[42].mxu0  ;;  %v10041_v35 = vld [vmem:[%s14242_s0 + $0x658] ss:$28 sps:$4 sm:$0xff]  }
 0x149   :  { %v8255_v45 = vadd.f32 %v8254_v39, %v8253_v19  ;;  %v8256_v48 = vpop.f32.mrb[42].mxu1  ;;  %v8145_v51 = vpop.f32.mrb[43].mxu0  ;;  %v10045_v19 = vld [vmem:[%s14242_s0 + $0x5bc] ss:$28 sps:$4 sm:$0xff]   ;;  %v10043_v39 = vld [vmem:[%s14242_s0 + $0x694] ss:$28 sps:$4 sm:$0xff]  }
 0x14a   :  { %v8146_v53 = vadd.f32 %v8145_v51, %v8144_v40  ;;  %v8257_v54 = vpop.f32.mrb[43].mxu1 }
 0x14b   :  { %v11548_v55 = vadd.f32 %v8255_v45, %v8143_v38  ;;  %v8258_v56 = vadd.f32 %v8257_v54, %v8256_v48  ;;  %2795 = vmatmul.mubr.bf16.gmra.mrb[148].mxu0 %v10030_v37  ;;  %v10048_v54 = vld [vmem:[%s14242_s0 + $0x5b8] ss:$28 sps:$4 sm:$0xff]  }
 0x14c   :  { %2666 = vmatmul.mubr.bf16.gmra.mrb[148].mxu1 %v10029_v41  ;;  %2802 = vmatprep.mubr.bf16.mxu0 %v10033_v43 }
 0x14d   :  { %v11550_v62 = vadd.f32 %v8258_v56, %v8146_v53  ;;  %2673 = vmatprep.mubr.bf16.mxu1 %v10031_v52 }
 0x14e   :  { %v8147_v57 = vpop.f32.mrb[44].mxu0 }
 0x14f   :  { %v8259_v58 = vpop.f32.mrb[44].mxu1  ;;  %v8148_v59 = vpop.f32.mrb[45].mxu0 }
 0x150   :  { %v8149_v61 = vadd.f32 %v8148_v59, %v8147_v57  ;;  %v8260_v63 = vpop.f32.mrb[45].mxu1  ;;  %v8150_v0 = vpop.f32.mrb[46].mxu0  ;;  %v10047_v59 = vld [vmem:[%s14242_s0 + $0x690] ss:$28 sps:$4 sm:$0xff]  }
 0x151   :  { %v8261_v10 = vadd.f32 %v8260_v63, %v8259_v58  ;;  %v8262_v11 = vpop.f32.mrb[46].mxu1  ;;  %v8151_v12 = vpop.f32.mrb[47].mxu0 }
 0x152   :  { %v8152_v14 = vadd.f32 %v8151_v12, %v8150_v0  ;;  %v8263_v15 = vpop.f32.mrb[47].mxu1 }
 0x153   :  { %v11564_v16 = vadd.f32 %v8261_v10, %v8149_v61  ;;  %v8264_v17 = vadd.f32 %v8263_v15, %v8262_v11  ;;  %2803 = vmatmul.mubr.bf16.gmra.mrb[152].mxu0 %v10036_v60  ;;  %v10051_v60 = vld [vmem:[%s14242_s0 + $0x5f4] ss:$28 sps:$4 sm:$0xff]  }
 0x154   :  { %2674 = vmatmul.mubr.bf16.gmra.mrb[152].mxu1 %v10035_v5  ;;  %2810 = vmatprep.mubr.bf16.mxu0 %v10039_v8  ;;  %v10049_v5 = vld [vmem:[%s14242_s0 + $0x6cc] ss:$28 sps:$4 sm:$0xff]  }
 0x155   :  { %v11566_v18 = vadd.f32 %v8264_v17, %v8152_v14  ;;  %2681 = vmatprep.mubr.bf16.mxu1 %v10037_v13 }
 0x156   :  { %v8153_v20 = vpop.f32.mrb[48].mxu0 }
 0x157   :  { %v8265_v21 = vpop.f32.mrb[48].mxu1  ;;  %v8154_v22 = vpop.f32.mrb[49].mxu0 }
 0x158   :  { %v8155_v29 = vadd.f32 %v8154_v22, %v8153_v20  ;;  %v8266_v31 = vpop.f32.mrb[49].mxu1  ;;  %v8156_v33 = vpop.f32.mrb[50].mxu0  ;;  %v10054_v20 = vld [vmem:[%s14242_s0 + $0x5f0] ss:$28 sps:$4 sm:$0xff]  }
 0x159   :  { %v8267_v36 = vadd.f32 %v8266_v31, %v8265_v21  ;;  %v8268_v37 = vpop.f32.mrb[50].mxu1  ;;  %v8157_v38 = vpop.f32.mrb[51].mxu0  ;;  %v10055_v31 = vld [vmem:[%s14242_s0 + $0x62c] ss:$28 sps:$4 sm:$0xff]  }
 0x15a   :  { %v8158_v40 = vadd.f32 %v8157_v38, %v8156_v33  ;;  %v8269_v41 = vpop.f32.mrb[51].mxu1 }
 0x15b   :  { %v11580_v43 = vadd.f32 %v8267_v36, %v8155_v29  ;;  %v8270_v45 = vadd.f32 %v8269_v41, %v8268_v37  ;;  %2811 = vmatmul.mubr.bf16.gmra.mrb[156].mxu0 %v10042_v25  ;;  %v10053_v29 = vld [vmem:[%s14242_s0 + $0x6c8] ss:$28 sps:$4 sm:$0xff]   ;;  %v10059_v36 = vld [vmem:[%s14242_s0 + $0x394] ss:$28 sps:$4 sm:$0xff]  }
 0x15c   :  { %2682 = vmatmul.mubr.bf16.gmra.mrb[156].mxu1 %v10041_v35  ;;  %2818 = vmatprep.mubr.bf16.mxu0 %v10045_v19 }
 0x15d   :  { %v11582_v48 = vadd.f32 %v8270_v45, %v8158_v40  ;;  %2689 = vmatprep.mubr.bf16.mxu1 %v10043_v39 }
 0x15e   :  { %v8159_v51 = vpop.f32.mrb[52].mxu0 }
 0x15f   :  { %v8271_v52 = vpop.f32.mrb[52].mxu1  ;;  %v8160_v53 = vpop.f32.mrb[53].mxu0 }
 0x160   :  { %v8161_v56 = vadd.f32 %v8160_v53, %v8159_v51  ;;  %v8272_v57 = vpop.f32.mrb[53].mxu1  ;;  %v8162_v58 = vpop.f32.mrb[54].mxu0  ;;  %v10060_v53 = vld [vmem:[%s14242_s0 + $0x628] ss:$28 sps:$4 sm:$0xff]  }
 0x161   :  { %v8273_v61 = vadd.f32 %v8272_v57, %v8271_v52  ;;  %v8274_v63 = vpop.f32.mrb[54].mxu1  ;;  %v8163_v0 = vpop.f32.mrb[55].mxu0 }
 0x162   :  { %v8164_v8 = vadd.f32 %v8163_v0, %v8162_v58  ;;  %v8275_v10 = vpop.f32.mrb[55].mxu1  ;;  %v10057_v58 = vld [vmem:[%s14242_s0 + $0x390] ss:$28 sps:$4 sm:$0xff]  }
 0x163   :  { %v11596_v11 = vadd.f32 %v8273_v61, %v8161_v56  ;;  %v8276_v12 = vadd.f32 %v8275_v10, %v8274_v63  ;;  %2819 = vmatmul.mubr.bf16.gmra.mrb[160].mxu0 %v10048_v54  ;;  %v10063_v0 = vld [vmem:[%s14242_s0 + $0x3cc] ss:$28 sps:$4 sm:$0xff]  }
 0x164   :  { %2690 = vmatmul.mubr.bf16.gmra.mrb[160].mxu1 %v10047_v59  ;;  %2826 = vmatprep.mubr.bf16.mxu0 %v10051_v60  ;;  %v10061_v59 = vld [vmem:[%s14242_s0 + $0x664] ss:$28 sps:$4 sm:$0xff]  }
 0x165   :  { %v11598_v13 = vadd.f32 %v8276_v12, %v8164_v8  ;;  %2697 = vmatprep.mubr.bf16.mxu1 %v10049_v5 }
 0x166   :  { %v8165_v14 = vpop.f32.mrb[56].mxu0 }
 0x167   :  { %v8277_v15 = vpop.f32.mrb[56].mxu1  ;;  %v8166_v17 = vpop.f32.mrb[57].mxu0 }
 0x168   :  { %v8167_v21 = vadd.f32 %v8166_v17, %v8165_v14  ;;  %v8278_v22 = vpop.f32.mrb[57].mxu1  ;;  %v8168_v25 = vpop.f32.mrb[58].mxu0 }
 0x169   :  { %v8279_v33 = vadd.f32 %v8278_v22, %v8277_v15  ;;  %v8280_v35 = vpop.f32.mrb[58].mxu1  ;;  %v8169_v19 = vpop.f32.mrb[59].mxu0  ;;  %v10573_v15 = vld [vmem:[%s14241_s1 + $0x80] sm:$0xff]  }
 0x16a   :  { %v8170_v37 = vadd.f32 %v8169_v19, %v8168_v25  ;;  %v8281_v38 = vpop.f32.mrb[59].mxu1  ;;  %v10065_v25 = vld [vmem:[%s14242_s0 + $0x660] ss:$28 sps:$4 sm:$0xff]  }
 0x16b   :  { %v1472_v39 = vadd.f32 %v8279_v33, %v8167_v21  ;;  %v8282_v40 = vadd.f32 %v8281_v38, %v8280_v35  ;;  %2827 = vmatmul.mubr.bf16.gmra.mrb[164].mxu0 %v10054_v20  ;;  %v10574_v20 = vld [vmem:[%s14241_s1 + $0xc8] sm:$0xff]   ;;  %v10067_v19 = vld [vmem:[%s14242_s0 + $0x69c] ss:$28 sps:$4 sm:$0xff]  }
 0x16c   :  { %2698 = vmatmul.mubr.bf16.gmra.mrb[164].mxu1 %v10053_v29  ;;  %2834 = vmatprep.mubr.bf16.mxu0 %v10055_v31  ;;  %v10066_v35 = vld [vmem:[%s14242_s0 + $0x3c8] ss:$28 sps:$4 sm:$0xff]  }
 0x16d   :  { %v1475_v41 = vadd.f32 %v8282_v40, %v8170_v37  ;;  %2899 = vmatprep.mubr.bf16.mxu1 %v10059_v36  ;;  %v10069_v40 = vld [vmem:[%s14242_s0 + $0x404] ss:$28 sps:$4 sm:$0xff]  }
 0x16e   :  { %v8171_v45 = vpop.f32.mrb[60].mxu0 }
 0x16f   :  { %v8283_v51 = vpop.f32.mrb[60].mxu1  ;;  %v8172_v52 = vpop.f32.mrb[61].mxu0 }
 0x170   :  { %v8173_v54 = vadd.f32 %v8172_v52, %v8171_v45  ;;  %v8284_v56 = vpop.f32.mrb[61].mxu1  ;;  %v8174_v57 = vpop.f32.mrb[62].mxu0  ;;  %v10575_v45 = vld [vmem:[%s14241_s1 + $0x88] sm:$0xff]  }
 0x171   :  { %v8285_v60 = vadd.f32 %v8284_v56, %v8283_v51  ;;  %v8286_v61 = vpop.f32.mrb[62].mxu1  ;;  %v8175_v63 = vpop.f32.mrb[63].mxu0 }
 0x172   :  { %v8176_v5 = vadd.f32 %v8175_v63, %v8174_v57  ;;  %v8287_v8 = vpop.f32.mrb[63].mxu1 }
 0x173   :  { %v11624_v10 = vadd.f32 %v8285_v60, %v8173_v54  ;;  %v8288_v12 = vadd.f32 %v8287_v8, %v8286_v61  ;;  %2835 = vmatmul.mubr.bf16.gmra.mrb[168].mxu0 %v10060_v53  ;;  %v10576_v54 = vld [vmem:[%s14241_s1 + $0xd0] sm:$0xff]   ;;  %v10578_v61 = vld [vmem:[%s14241_s1 + $0xd8] sm:$0xff]  }
 0x174   :  { %2900 = vmatmul.mubr.bf16.vlgmr.msra.gmra.mrb[168].mxu1 %v10057_v58  ;;  %2842 = vmatprep.mubr.bf16.mxu0 %v10061_v59  ;;  %v10577_v59 = vld [vmem:[%s14241_s1 + $0x90] sm:$0xff]  }
 0x175   :  { %v11626_v14 = vadd.f32 %v8288_v12, %v8176_v5  ;;  %8886 = vmatpush3.bf16.msra.mxu1 %v10573_v15  ;;  %2907 = vmatprep.mubr.bf16.mxu1 %v10063_v0  ;;  %v10073_v12 = vld [vmem:[%s14242_s0 + $0x6d4] ss:$28 sps:$4 sm:$0xff]  }
 0x176   :  { %v8305_v17 = vpop.f32.mrb[64].mxu0  ;;  %8887 = vmatprep.subr.bf16.mxu1 %v10574_v20 }
 0x177   :  { %v8389_v21 = vpop.f32.mrb[64].mxu1  ;;  %v8306_v22 = vpop.f32.mrb[65].mxu0 }
 0x178   :  { %v8307_v29 = vadd.f32 %v8306_v22, %v8305_v17  ;;  %v8390_v31 = vpop.f32.mrb[65].mxu1  ;;  %v8308_v33 = vpop.f32.mrb[66].mxu0  ;;  %v10579_v22 = vld [vmem:[%s14241_s1 + $0x98] sm:$0xff]  }
 0x179   :  { %v8391_v36 = vadd.f32 %v8390_v31, %v8389_v21  ;;  %v8392_v37 = vpop.f32.mrb[66].mxu1  ;;  %v8309_v38 = vpop.f32.mrb[67].mxu0  ;;  %8888 = vmatpush3.bf16.msra.mxu1 %v10575_v45  ;;  %v10075_v21 = vld [vmem:[%s14242_s0 + $0x43c] ss:$28 sps:$4 sm:$0xff]  }
 0x17a   :  { %v8310_v51 = vadd.f32 %v8309_v38, %v8308_v33  ;;  %v8393_v52 = vpop.f32.mrb[67].mxu1  ;;  %v1521_v53 = vadd.f32 %v8307_v29, %v11342_v1  ;;  %8889 = vmatprep.subr.bf16.mxu1 %v10576_v54  ;;  %v10580_v33 = vld [vmem:[%s14241_s1 + $0xe0] sm:$0xff]  }
 0x17b   :  { %v8394_v56 = vadd.f32 %v8393_v52, %v8392_v37  ;;  %2843 = vmatmul.mubr.bf16.gmra.mrb[172].mxu0 %v10065_v25  ;;  %v11653_v57 = vadd.f32 %v8391_v36, %v1472_v39  ;;  %v10581_v37 = vld [vmem:[%s14241_s1 + $0xa0] sm:$0xff]  }
 0x17c   :  { %2908 = vmatmul.mubr.bf16.gmra.mrb[172].mxu1 %v10066_v35  ;;  %2850 = vmatprep.mubr.bf16.mxu0 %v10067_v19  ;;  %v1524_v58 = vadd.f32 %v8310_v51, %v11344_v23  ;;  %v10071_v23 = vld [vmem:[%s14242_s0 + $0x698] ss:$28 sps:$4 sm:$0xff]  }
 0x17d   :  { %2915 = vmatprep.mubr.bf16.mxu1 %v10069_v40  ;;  %8890 = vmatpush3.bf16.msra.mxu1 %v10577_v59  ;;  %v11659_v1 = vadd.f32 %v8394_v56, %v1475_v41  ;;  %v10072_v41 = vld [vmem:[%s14242_s0 + $0x400] ss:$28 sps:$4 sm:$0xff]   ;;  %v10582_v40 = vld [vmem:[%s14241_s1 + $0xe8] sm:$0xff]   ;;  %v10081_v59 = vld [vmem:[%s14242_s0 + $0x398] ss:$28 sps:$4 sm:$0xff]  }
 0x17e   :  { %v8311_v60 = vpop.f32.mrb[68].mxu0  ;;  %8891 = vmatprep.subr.bf16.mxu1 %v10578_v61 }
 0x17f   :  { %v8395_v39 = vpop.f32.mrb[68].mxu1  ;;  %v8312_v63 = vpop.f32.mrb[69].mxu0 }
 0x180   :  { %v8313_v0 = vadd.f32 %v8312_v63, %v8311_v60  ;;  %v8396_v5 = vpop.f32.mrb[69].mxu1  ;;  %v8314_v8 = vpop.f32.mrb[70].mxu0  ;;  %v10079_v63 = vld [vmem:[%s14242_s0 + $0x474] ss:$28 sps:$4 sm:$0xff]  }
 0x181   :  { %v8397_v15 = vadd.f32 %v8396_v5, %v8395_v39  ;;  %v8398_v17 = vpop.f32.mrb[70].mxu1  ;;  %v8315_v20 = vpop.f32.mrb[71].mxu0  ;;  %8892 = vmatpush3.bf16.msra.mxu1 %v10579_v22 }
 0x182   :  { %v8316_v25 = vadd.f32 %v8315_v20, %v8314_v8  ;;  %v8399_v29 = vpop.f32.mrb[71].mxu1  ;;  %v1529_v31 = vadd.f32 %v8313_v0, %v11370_v42  ;;  %8893 = vmatprep.subr.bf16.mxu1 %v10580_v33  ;;  %v10586_v20 = vld [vmem:[%s14241_s1 + $0xf8] sm:$0xff]   ;;  %v10086_v33 = vld [vmem:[%s14242_s0 + $0x408] ss:$28 sps:$4 sm:$0xff]  }
 0x183   :  { %v8400_v35 = vadd.f32 %v8399_v29, %v8398_v17  ;;  %2851 = vmatmul.mubr.bf16.gmra.mrb[176].mxu0 %v10071_v23  ;;  %v11684_v19 = vadd.f32 %v8397_v15, %v11624_v10  ;;  %v10583_v23 = vld [vmem:[%s14241_s1 + $0xa8] sm:$0xff]   ;;  %v10585_v17 = vld [vmem:[%s14241_s1 + $0xb0] sm:$0xff]  }
 0x184   :  { %2916 = vmatmul.mubr.bf16.gmra.mrb[176].mxu1 %v10072_v41  ;;  %v1532_v36 = vadd.f32 %v8316_v25, %v11372_v44  ;;  %2858 = vmatprep.mubr.bf16.mxu0 %v10073_v12  ;;  %v10077_v44 = vld [vmem:[%s14242_s0 + $0x6d0] ss:$28 sps:$4 sm:$0xff]  }
 0x185   :  { %2923 = vmatprep.mubr.bf16.mxu1 %v10075_v21  ;;  %8894 = vmatpush3.bf16.msra.mxu1 %v10581_v37  ;;  %v11691_v42 = vadd.f32 %v8400_v35, %v11626_v14  ;;  %v10078_v14 = vld [vmem:[%s14242_s0 + $0x438] ss:$28 sps:$4 sm:$0xff]  }
 0x186   :  { %v8317_v38 = vpop.f32.mrb[72].mxu0  ;;  %8895 = vmatprep.subr.bf16.mxu1 %v10582_v40  ;;  %v10587_v40 = vld [vmem:[%s14241_s1 + $0xb8] sm:$0xff]  }
 0x187   :  { %v9584_v10 = vpop.f32.mrb[72].mxu1  ;;  %v8318_v45 = vpop.f32.mrb[73].mxu0 }
 0x188   :  { %v11699_v51 = vadd.f32 %v9584_v10, %v1529_v31  ;;  %v8319_v52 = vadd.f32 %v8318_v45, %v8317_v38  ;;  %v1681_v54 = vpop.f32.mrb[73].mxu1  ;;  %v8320_v56 = vpop.f32.mrb[74].mxu0  ;;  %v10082_v31 = vld [vmem:[%s14242_s0 + $0x470] ss:$28 sps:$4 sm:$0xff]  }
 0x189   :  { %v11707_v60 = vadd.f32 %v1681_v54, %v1521_v53  ;;  %v9585_v61 = vpop.f32.mrb[74].mxu1  ;;  %v8321_v39 = vpop.f32.mrb[75].mxu0  ;;  %8896 = vmatpush3.bf16.msra.mxu1 %v10583_v23  ;;  %v10584_v53 = vld [vmem:[%s14241_s1 + $0xf0] sm:$0xff]   ;;  %v10084_v38 = vld [vmem:[%s14242_s0 + $0x4ac] ss:$28 sps:$4 sm:$0xff]  }
 0x18a   :  { %v11715_v0 = vadd.f32 %v9585_v61, %v1532_v36  ;;  %v8322_v5 = vadd.f32 %v8321_v39, %v8320_v56  ;;  %v1684_v8 = vpop.f32.mrb[75].mxu1  ;;  %v1537_v41 = vadd.f32 %v8319_v52, %v11398_v2  ;;  %8897 = vmatprep.subr.bf16.mxu1 %v10584_v53  ;;  %v10088_v39 = vld [vmem:[%s14242_s0 + $0x440] ss:$28 sps:$4 sm:$0xff]  }
 0x18b   :  { %v11721_v12 = vadd.f32 %v1684_v8, %v1524_v58  ;;  %2859 = vmatmul.mubr.bf16.gmra.mrb[180].mxu0 %v10077_v44  ;;  %v10087_v8 = vld [vmem:[%s14242_s0 + $0x4a8] ss:$28 sps:$4 sm:$0xff]  }
 0x18c   :  { %2924 = vmatmul.mubr.bf16.gmra.mrb[180].mxu1 %v10078_v14  ;;  %v1540_v15 = vadd.f32 %v8322_v5, %v11400_v4  ;;  %9618 = vmatprep.mubr.msk.bf16.mxu0 %vm1115_vm0, %v10081_v59  ;;  %v10083_v4 = vld [vmem:[%s14242_s0 + $0x3d0] ss:$28 sps:$4 sm:$0xff]  }
 0x18d   :  { %2931 = vmatprep.mubr.bf16.mxu1 %v10079_v63  ;;  %8898 = vmatpush3.bf16.msra.mxu1 %v10585_v17  ;;  %v10089_v17 = vld [vmem:[%s14242_s0 + $0x4e4] ss:$28 sps:$4 sm:$0xff]  }
 0x18e   :  { %v8323_v2 = vpop.f32.mrb[76].mxu0  ;;  %8899 = vmatprep.subr.bf16.mxu1 %v10586_v20 }
 0x18f   :  { %v9588_v58 = vpop.f32.mrb[76].mxu1  ;;  %v8324_v21 = vpop.f32.mrb[77].mxu0 }
 0x190   :  { %v8325_v22 = vadd.f32 %v8324_v21, %v8323_v2  ;;  %v1697_v25 = vpop.f32.mrb[77].mxu1  ;;  %v8326_v29 = vpop.f32.mrb[78].mxu0  ;;  %v10590_v2 = vld [vmem:[%s14241_s1 + $0x8] sm:$0xff]  }
 0x191   :  { %v11740_v35 = vadd.f32 %v1697_v25, %v1537_v41  ;;  %v9589_v36 = vpop.f32.mrb[78].mxu1  ;;  %v8327_v37 = vpop.f32.mrb[79].mxu0  ;;  %8900 = vmatpush3.bf16.msra.mxu1 %v10587_v40  ;;  %v10091_v41 = vld [vmem:[%s14242_s0 + $0x478] ss:$28 sps:$4 sm:$0xff]  }
 0x192   :  { %v1545_v10 = vadd.f32 %v8325_v22, %v11426_v26  ;;  %v8328_v45 = vadd.f32 %v8327_v37, %v8326_v29  ;;  %v1700_v44 = vpop.f32.mrb[79].mxu1  ;;  %9650 = vmatprep.subr.bf16.mxu1 %v11436_v30  ;;  %v10588_v26 = vld [vmem:[%s14241_s1] sm:$0xff]   ;;  %v10589_v30 = vld [vmem:[%s14241_s1 + $0x48] sm:$0xff]  }
 0x193   :  { %v11750_v52 = vadd.f32 %v1700_v44, %v1540_v15  ;;  %9619 = vmatmul.mubr.msk.bf16.vlgmr.msra.gmra.mrb[184].mxu0 %vm1115_vm0, %v10083_v4  ;;  %v10591_v4 = vld [vmem:[%s14241_s1 + $0x50] sm:$0xff]   ;;  %v10096_v44 = vld [vmem:[%s14242_s0 + $0x4e8] ss:$28 sps:$4 sm:$0xff]  }
 0x194   :  { %v1548_v54 = vadd.f32 %v8328_v45, %v11428_v28  ;;  %2932 = vmatmul.mubr.bf16.gmra.mrb[184].mxu1 %v10082_v31  ;;  %9622 = vmatprep.mubr.msk.bf16.mxu0 %vm1115_vm0, %v10086_v33  ;;  %v11755_v56 = vadd.f32 %v9588_v58, %v1545_v10  ;;  %v10593_v33 = vld [vmem:[%s14241_s1 + $0x58] sm:$0xff]   ;;  %v10093_v37 = vld [vmem:[%s14242_s0 + $0x4b0] ss:$28 sps:$4 sm:$0xff]  }
 0x195   :  { %2939 = vmatprep.mubr.bf16.mxu1 %v10084_v38  ;;  %8774 = vmatpush3.bf16.msra.mxu0 %v10588_v26  ;;  %v10092_v45 = vld [vmem:[%s14242_s0 + $0x4e0] ss:$28 sps:$4 sm:$0xff]  }
 0x196   :  { %v8329_v14 = vpop.f32.mrb[80].mxu0  ;;  %8775 = vmatprep.subr.bf16.mxu0 %v10589_v30  ;;  %v11763_v59 = vadd.f32 %v9589_v36, %v1548_v54  ;;  %v10594_v30 = vld [vmem:[%s14241_s1 + $0x18] sm:$0xff]  }
 0x197   :  { %v9592_v28 = vpop.f32.mrb[80].mxu1  ;;  %v8330_v61 = vpop.f32.mrb[81].mxu0 }
 0x198   :  { %v8331_v63 = vadd.f32 %v8330_v61, %v8329_v14  ;;  %v1713_v23 = vpop.f32.mrb[81].mxu1  ;;  %v8332_v5 = vpop.f32.mrb[82].mxu0  ;;  %v10094_v14 = vld [vmem:[%s14242_s0 + $0x51c] ss:$28 sps:$4 sm:$0xff]  }
 0x199   :  { %v9593_v53 = vpop.f32.mrb[82].mxu1  ;;  %v8333_v15 = vpop.f32.mrb[83].mxu0  ;;  %8776 = vmatpush3.bf16.msra.mxu0 %v10590_v2 }
 0x19a   :  { %v1553_v20 = vadd.f32 %v8331_v63, %v11452_v47  ;;  %v8334_v58 = vadd.f32 %v8333_v15, %v8332_v5  ;;  %v1716_v21 = vpop.f32.mrb[83].mxu1  ;;  %8777 = vmatprep.subr.bf16.mxu0 %v10591_v4  ;;  %v10592_v47 = vld [vmem:[%s14241_s1 + $0x10] sm:$0xff]   ;;  %v10597_v15 = vld [vmem:[%s14241_s1 + $0x68] sm:$0xff]  }
 0x19b   :  { %9623 = vmatmul.mubr.msk.bf16.gmra.mrb[188].mxu0 %vm1115_vm0, %v10088_v39  ;;  %v10097_v4 = vld [vmem:[%s14242_s0 + $0x518] ss:$28 sps:$4 sm:$0xff]  }
 0x19c   :  { %v11785_v22 = vadd.f32 %v1713_v23, %v1553_v20  ;;  %v1556_v25 = vadd.f32 %v8334_v58, %v11454_v49  ;;  %2940 = vmatmul.mubr.bf16.gmra.mrb[188].mxu1 %v10087_v8  ;;  %9626 = vmatprep.mubr.msk.bf16.mxu0 %vm1115_vm0, %v10091_v41  ;;  %v10595_v23 = vld [vmem:[%s14241_s1 + $0x60] sm:$0xff]  }
 0x19d   :  { %2947 = vmatprep.mubr.bf16.mxu1 %v10089_v17  ;;  %8778 = vmatpush3.bf16.msra.mxu0 %v10592_v47 }
 0x19e   :  { %v11792_v29 = vadd.f32 %v1716_v21, %v1556_v25  ;;  %v8335_v31 = vpop.f32.mrb[84].mxu0  ;;  %8779 = vmatprep.subr.bf16.mxu0 %v10593_v33  ;;  %v10598_v33 = vld [vmem:[%s14241_s1 + $0x28] sm:$0xff]  }
 0x19f   :  { %v11797_v36 = vpop.f32.mrb[84].mxu1  ;;  %v8336_v49 = vpop.f32.mrb[85].mxu0 }
 0x1a0   :  { %v8337_v38 = vadd.f32 %v8336_v49, %v8335_v31  ;;  %v1729_v40 = vpop.f32.mrb[85].mxu1  ;;  %v8338_v10 = vpop.f32.mrb[86].mxu0  ;;  %v10099_v31 = vld [vmem:[%s14242_s0 + $0x554] ss:$28 sps:$4 sm:$0xff]  }
 0x1a1   :  { %v11808_v54 = vpop.f32.mrb[86].mxu1  ;;  %v8339_v26 = vpop.f32.mrb[87].mxu0  ;;  %8780 = vmatpush3.bf16.msra.mxu0 %v10594_v30 }
 0x1a2   :  { %v1561_v61 = vadd.f32 %v8337_v38, %v11468_v3  ;;  %v8340_v39 = vadd.f32 %v8339_v26, %v8338_v10  ;;  %v1732_v63 = vpop.f32.mrb[87].mxu1  ;;  %8781 = vmatprep.subr.bf16.mxu0 %v10595_v23  ;;  %v10596_v3 = vld [vmem:[%s14241_s1 + $0x20] sm:$0xff]   ;;  %v10599_v10 = vld [vmem:[%s14241_s1 + $0x70] sm:$0xff]  }
 0x1a3   :  { %9627 = vmatmul.mubr.msk.bf16.gmra.mrb[192].mxu0 %vm1115_vm0, %v10093_v37 }
 0x1a4   :  { %v1564_v5 = vadd.f32 %v8340_v39, %v11470_v6  ;;  %2948 = vmatmul.mubr.bf16.gmra.mrb[192].mxu1 %v10092_v45  ;;  %9630 = vmatprep.mubr.msk.bf16.mxu0 %vm1115_vm0, %v10096_v44  ;;  %v11823_v8 = vadd.f32 %v9592_v28, %v1561_v61  ;;  %v10098_v28 = vld [vmem:[%s14242_s0 + $0x520] ss:$28 sps:$4 sm:$0xff]  }
 0x1a5   :  { %2955 = vmatprep.mubr.bf16.mxu1 %v10094_v14  ;;  %8782 = vmatpush3.bf16.msra.mxu0 %v10596_v3  ;;  %v10601_v14 = vld [vmem:[%s14241_s1 + $0x78] sm:$0xff]   ;;  %v10102_v3 = vld [vmem:[%s14242_s0 + $0x550] ss:$28 sps:$4 sm:$0xff]  }
 0x1a6   :  { %v8341_v41 = vpop.f32.mrb[88].mxu0  ;;  %8783 = vmatprep.subr.bf16.mxu0 %v10597_v15  ;;  %v11831_v17 = vadd.f32 %v9593_v53, %v1564_v5  ;;  %v10101_v53 = vld [vmem:[%s14242_s0 + $0x558] ss:$28 sps:$4 sm:$0xff]  }
 0x1a7   :  { %v11833_v6 = vpop.f32.mrb[88].mxu1  ;;  %v8342_v2 = vpop.f32.mrb[89].mxu0 }
 0x1a8   :  { %v8343_v20 = vadd.f32 %v8342_v2, %v8341_v41  ;;  %v11838_v58 = vpop.f32.mrb[89].mxu1  ;;  %v8344_v21 = vpop.f32.mrb[90].mxu0  ;;  %v10104_v2 = vld [vmem:[%s14242_s0 + $0x58c] ss:$28 sps:$4 sm:$0xff]  }
 0x1a9   :  { %v11846_v25 = vpop.f32.mrb[90].mxu1  ;;  %v8345_v47 = vpop.f32.mrb[91].mxu0  ;;  %8784 = vmatpush3.bf16.msra.mxu0 %v10598_v33 }
 0x1aa   :  { %v1569_v49 = vadd.f32 %v8343_v20, %v11484_v24  ;;  %v8346_v37 = vadd.f32 %v8345_v47, %v8344_v21  ;;  %v1748_v38 = vpop.f32.mrb[91].mxu1  ;;  %8785 = vmatprep.subr.bf16.mxu0 %v10599_v10  ;;  %v10600_v24 = vld [vmem:[%s14241_s1 + $0x30] sm:$0xff]   ;;  %v10108_v10 = vld [vmem:[%s14242_s0 + $0x600] ss:$28 sps:$4 sm:$0xff]  }
 0x1ab   :  { %9631 = vmatmul.mubr.msk.bf16.gmra.mrb[196].mxu0 %vm1115_vm0, %v10098_v28  ;;  %v10602_v28 = vld [vmem:[%s14241_s1 + $0x38] sm:$0xff]  }
 0x1ac   :  { %v1572_v45 = vadd.f32 %v8346_v37, %v11486_v27  ;;  %2956 = vmatmul.mubr.bf16.gmra.mrb[196].mxu1 %v10097_v4  ;;  %9634 = vmatprep.mubr.msk.bf16.mxu0 %vm1115_vm0, %v10101_v53  ;;  %v11861_v44 = vadd.f32 %v1729_v40, %v1569_v49  ;;  %v10103_v40 = vld [vmem:[%s14242_s0 + $0x590] ss:$28 sps:$4 sm:$0xff]   ;;  %v10603_v53 = vld [vmem:[%s14241_s1 + $0x140] sm:$0xff]  }
 0x1ad   :  { %2963 = vmatprep.mubr.bf16.mxu1 %v10099_v31  ;;  %8786 = vmatpush3.bf16.msra.mxu0 %v10600_v24 }
 0x1ae   :  { %14290 = vst [vmem:[#allocation3_spill] sm:$0xff] %v11861_v44  ;;  %v8347_v26 = vpop.f32.mrb[92].mxu0  ;;  %8787 = vmatprep.subr.bf16.mxu0 %v10601_v14  ;;  %v11869_v30 = vadd.f32 %v1732_v63, %v1572_v45  ;;  %v10106_v63 = vld [vmem:[%s14242_s0 + $0x5c8] ss:$28 sps:$4 sm:$0xff]  }
 0x1af   :  { %v11871_v27 = vpop.f32.mrb[92].mxu1  ;;  %v8348_v61 = vpop.f32.mrb[93].mxu0 }
 0x1b0   :  { %14291 = vst [vmem:[#allocation4_spill] sm:$0xff] %v11869_v30  ;;  %v8349_v39 = vadd.f32 %v8348_v61, %v8347_v26  ;;  %v11876_v23 = vpop.f32.mrb[93].mxu1  ;;  %v8350_v5 = vpop.f32.mrb[94].mxu0  ;;  %v10109_v61 = vld [vmem:[%s14242_s0 + $0x5c4] ss:$28 sps:$4 sm:$0xff]  }
 0x1b1   :  { %v11884_v41 = vpop.f32.mrb[94].mxu1  ;;  %v8351_v15 = vpop.f32.mrb[95].mxu0  ;;  %8788 = vmatpush3.bf16.msra.mxu0 %v10602_v28 }
 0x1b2   :  { %v1577_v20 = vadd.f32 %v8349_v39, %v11500_v46  ;;  %v8352_v21 = vadd.f32 %v8351_v15, %v8350_v5  ;;  %v11893_v4 = vpop.f32.mrb[95].mxu1  ;;  %8997 = vmatprep.subr.bf16.mxu0 %v10603_v53 }
 0x1b3   :  { %9635 = vmatmul.mubr.msk.bf16.gmra.mrb[200].mxu0 %vm1115_vm0, %v10103_v40 }
 0x1b4   :  { %v11900_v47 = vadd.f32 %v11797_v36, %v1577_v20  ;;  %v1580_v31 = vadd.f32 %v8352_v21, %v11502_v50  ;;  %2964 = vmatmul.mubr.bf16.gmra.mrb[200].mxu1 %v10102_v3  ;;  %9638 = vmatprep.mubr.msk.bf16.mxu0 %vm1115_vm0, %v10106_v63  ;;  %v10107_v50 = vld [vmem:[%s14242_s0 + $0x588] ss:$28 sps:$4 sm:$0xff]  }
 0x1b5   :  { %2971 = vmatprep.mubr.bf16.mxu1 %v10104_v2 }
 0x1b6   :  { %14292 = vst [vmem:[#allocation5_spill] sm:$0xff] %v11900_v47  ;;  %v11905_v46 = vadd.f32 %v11808_v54, %v1580_v31  ;;  %v8353_v33 = vpop.f32.mrb[96].mxu0  ;;  %v10111_v54 = vld [vmem:[%s14242_s0 + $0x638] ss:$28 sps:$4 sm:$0xff]  }
 0x1b7   :  { %v11907_v49 = vpop.f32.mrb[96].mxu1  ;;  %v8354_v37 = vpop.f32.mrb[97].mxu0 }
 0x1b8   :  { %14293 = vst [vmem:[#allocation6_spill] sm:$0xff] %v11905_v46  ;;  %v8355_v45 = vadd.f32 %v8354_v37, %v8353_v33  ;;  %v11912_v36 = vpop.f32.mrb[97].mxu1  ;;  %v8356_v24 = vpop.f32.mrb[98].mxu0 }
 0x1b9   :  { %v11920_v26 = vpop.f32.mrb[98].mxu1  ;;  %v8357_v14 = vpop.f32.mrb[99].mxu0 }
 0x1ba   :  { %v1585_v40 = vadd.f32 %v8355_v45, %v11516_v7  ;;  %v8358_v39 = vadd.f32 %v8357_v14, %v8356_v24  ;;  %v11926_v5 = vpop.f32.mrb[99].mxu1  ;;  %v10113_v7 = vld [vmem:[%s14242_s0 + $0x670] ss:$28 sps:$4 sm:$0xff]  }
 0x1bb   :  { %9639 = vmatmul.mubr.msk.bf16.gmra.mrb[204].mxu0 %vm1115_vm0, %v10108_v10 }
 0x1bc   :  { %v1588_v3 = vadd.f32 %v8358_v39, %v11518_v9  ;;  %2972 = vmatmul.mubr.bf16.gmra.mrb[204].mxu1 %v10107_v50  ;;  %9642 = vmatprep.mubr.msk.bf16.mxu0 %vm1115_vm0, %v10111_v54  ;;  %v11932_v63 = vadd.f32 %v11838_v58, %v1585_v40  ;;  %v10112_v58 = vld [vmem:[%s14242_s0 + $0x5c0] ss:$28 sps:$4 sm:$0xff]  }
 0x1bd   :  { %2979 = vmatprep.mubr.bf16.mxu1 %v10109_v61 }
 0x1be   :  { %14294 = vst [vmem:[#allocation7_spill] sm:$0xff] %v11932_v63  ;;  %v8359_v15 = vpop.f32.mrb[100].mxu0  ;;  %v11934_v2 = vadd.f32 %v1748_v38, %v1588_v3  ;;  %v10116_v38 = vld [vmem:[%s14242_s0 + $0x6a8] ss:$28 sps:$4 sm:$0xff]  }
 0x1bf   :  { %v9612_v28 = vpop.f32.mrb[100].mxu1  ;;  %v8360_v20 = vpop.f32.mrb[101].mxu0 }
 0x1c0   :  { %14295 = vst [vmem:[#allocation8_spill] sm:$0xff] %v11934_v2  ;;  %v11940_v21 = vadd.f32 %v9612_v28, %v11684_v19  ;;  %v8361_v9 = vadd.f32 %v8360_v20, %v8359_v15  ;;  %v1793_v53 = vpop.f32.mrb[101].mxu1  ;;  %v8362_v31 = vpop.f32.mrb[102].mxu0  ;;  %v10114_v19 = vld [vmem:[%s14242_s0 + $0x5fc] ss:$28 sps:$4 sm:$0xff]  }
 0x1c1   :  { %v11949_v33 = vadd.f32 %v1793_v53, %v11653_v57  ;;  %v9613_v37 = vpop.f32.mrb[102].mxu1  ;;  %v8363_v10 = vpop.f32.mrb[103].mxu0  ;;  %v10123_v28 = vld [vmem:[%s14242_s0 + $0x704] ss:$28 sps:$4 sm:$0xff]  }
 0x1c2   :  { %14296 = vst [vmem:[#allocation9_spill] sm:$0xff] %v11940_v21  ;;  %v1593_v45 = vadd.f32 %v8361_v9, %v11532_v32  ;;  %v11956_v24 = vadd.f32 %v9613_v37, %v11691_v42  ;;  %v8364_v50 = vadd.f32 %v8363_v10, %v8362_v31  ;;  %v1796_v54 = vpop.f32.mrb[103].mxu1  ;;  %v10119_v9 = vld [vmem:[%s14242_s0 + $0x634] ss:$28 sps:$4 sm:$0xff]  }
 0x1c3   :  { %14297 = vst [vmem:[#allocation10_spill] sm:$0xff] %v11949_v33  ;;  %v11959_v14 = vadd.f32 %v1796_v54, %v11659_v1  ;;  %9643 = vmatmul.mubr.msk.bf16.gmra.mrb[208].mxu0 %vm1115_vm0, %v10113_v7  ;;  %v10118_v1 = vld [vmem:[%s14242_s0 + $0x6e0] ss:$28 sps:$4 sm:$0xff]  }
 0x1c4   :  { %14298 = vst [vmem:[#allocation11_spill] sm:$0xff] %v11956_v24  ;;  %v11963_v57 = vadd.f32 %v11833_v6, %v1593_v45  ;;  %v1596_v61 = vadd.f32 %v8364_v50, %v11534_v34  ;;  %2980 = vmatmul.mubr.bf16.gmra.mrb[208].mxu1 %v10112_v58  ;;  %9646 = vmatprep.mubr.msk.bf16.mxu0 %vm1115_vm0, %v10116_v38  ;;  %v10117_v34 = vld [vmem:[%s14242_s0 + $0x5f8] ss:$28 sps:$4 sm:$0xff]   ;;  %v10121_v54 = vld [vmem:[%s14242_s0 + $0x700] ss:$28 sps:$4 sm:$0xff]  }
 0x1c5   :  { %14299 = vst [vmem:[#allocation12_spill] sm:$0xff] %v11959_v14  ;;  %2987 = vmatprep.mubr.bf16.mxu1 %v10114_v19  ;;  %v10165_v24 = vld [vmem:[%s14242_s0 + $0x888] ss:$28 sps:$4 sm:$0xff]   ;;  %v10171_v14 = vld [vmem:[%s14242_s0 + $0x8c0] ss:$28 sps:$4 sm:$0xff]  }
 0x1c6   :  { %14300 = vst [vmem:[#allocation13_spill] sm:$0xff] %v11963_v57  ;;  %v11968_v32 = vadd.f32 %v11846_v25, %v1596_v61  ;;  %v8365_v42 = vpop.f32.mrb[104].mxu0 }
 0x1c7   :  { %v8435_v40 = vpop.f32.mrb[104].mxu1  ;;  %v8366_v39 = vpop.f32.mrb[105].mxu0 }
 0x1c8   :  { %14301 = vst [vmem:[#allocation14_spill] sm:$0xff] %v11968_v32  ;;  %v8367_v3 = vadd.f32 %v8366_v39, %v8365_v42  ;;  %v8436_v15 = vpop.f32.mrb[105].mxu1  ;;  %v8368_v6 = vpop.f32.mrb[106].mxu0  ;;  %v10197_v32 = vld [vmem:[%s14242_s0 + $0x9d8] ss:$28 sps:$4 sm:$0xff]  }
 0x1c9   :  { %v11979_v25 = vadd.f32 %v8436_v15, %v8435_v40  ;;  %v8438_v20 = vpop.f32.mrb[106].mxu1  ;;  %v8369_v7 = vpop.f32.mrb[107].mxu0 }
 0x1ca   :  { %v1601_v53 = vadd.f32 %v8367_v3, %v11548_v55  ;;  %v8370_v31 = vadd.f32 %v8369_v7, %v8368_v6  ;;  %v8439_v58 = vpop.f32.mrb[107].mxu1  ;;  %v10125_v3 = vld [vmem:[%s14242_s0 + $0x66c] ss:$28 sps:$4 sm:$0xff]  }
 0x1cb   :  { %v11985_v38 = vadd.f32 %v8439_v58, %v8438_v20  ;;  %9647 = vmatmul.mubr.msk.bf16.gmra.mrb[212].mxu0 %vm1115_vm0, %v10118_v1 }
 0x1cc   :  { %v1604_v37 = vadd.f32 %v8370_v31, %v11550_v62  ;;  %2988 = vmatmul.mubr.bf16.gmra.mrb[212].mxu1 %v10117_v34  ;;  %3990 = vmatprep.mubr.bf16.mxu0 %v10123_v28  ;;  %v11990_v10 = vadd.f32 %v11876_v23, %v1601_v53  ;;  %v10124_v62 = vld [vmem:[%s14242_s0 + $0x630] ss:$28 sps:$4 sm:$0xff]   ;;  %v10127_v23 = vld [vmem:[%s14242_s0 + $0x73c] ss:$28 sps:$4 sm:$0xff]  }
 0x1cd   :  { %2995 = vmatprep.mubr.bf16.mxu1 %v10119_v9  ;;  %v10604_v9 = vld [vmem:[%s14241_s1 + $0x100] sm:$0xff]   ;;  %v10605_v31 = vld [vmem:[%s14241_s1 + $0x148] sm:$0xff]  }
 0x1ce   :  { %14302 = vst [vmem:[#allocation15_spill] sm:$0xff] %v11990_v10  ;;  %v8371_v19 = vpop.f32.mrb[108].mxu0  ;;  %v11993_v45 = vadd.f32 %v11893_v4, %v1604_v37 }
 0x1cf   :  { %v8441_v50 = vpop.f32.mrb[108].mxu1  ;;  %v8372_v55 = vpop.f32.mrb[109].mxu0 }
 0x1d0   :  { %14303 = vst [vmem:[#allocation16_spill] sm:$0xff] %v11993_v45  ;;  %v8373_v61 = vadd.f32 %v8372_v55, %v8371_v19  ;;  %v8442_v42 = vpop.f32.mrb[109].mxu1  ;;  %v8374_v40 = vpop.f32.mrb[110].mxu0  ;;  %v10133_v55 = vld [vmem:[%s14242_s0 + $0x774] ss:$28 sps:$4 sm:$0xff]  }
 0x1d1   :  { %v12004_v39 = vadd.f32 %v8442_v42, %v8441_v50  ;;  %v8444_v4 = vpop.f32.mrb[110].mxu1  ;;  %v8375_v1 = vpop.f32.mrb[111].mxu0  ;;  %v10191_v45 = vld [vmem:[%s14242_s0 + $0x9a0] ss:$28 sps:$4 sm:$0xff]  }
 0x1d2   :  { %v1609_v15 = vadd.f32 %v8373_v61, %v11564_v16  ;;  %v8376_v6 = vadd.f32 %v8375_v1, %v8374_v40  ;;  %v8445_v34 = vpop.f32.mrb[111].mxu1  ;;  %v10131_v40 = vld [vmem:[%s14242_s0 + $0x6a4] ss:$28 sps:$4 sm:$0xff]  }
 0x1d3   :  { %v12010_v28 = vadd.f32 %v8445_v34, %v8444_v4  ;;  %3991 = vmatmul.mubr.bf16.vlgmr.msra.gmra.mrb[216].mxu0 %v10121_v54 }
 0x1d4   :  { %v12013_v20 = vadd.f32 %v11871_v27, %v1609_v15  ;;  %v1612_v7 = vadd.f32 %v8376_v6, %v11566_v18  ;;  %2996 = vmatmul.mubr.bf16.gmra.mrb[216].mxu1 %v10124_v62  ;;  %3998 = vmatprep.mubr.bf16.mxu0 %v10127_v23  ;;  %v10130_v18 = vld [vmem:[%s14242_s0 + $0x738] ss:$28 sps:$4 sm:$0xff]   ;;  %v10606_v62 = vld [vmem:[%s14241_s1 + $0x108] sm:$0xff]  }
 0x1d5   :  { %3003 = vmatprep.mubr.bf16.mxu1 %v10125_v3  ;;  %8998 = vmatpush3.bf16.msra.mxu0 %v10604_v9  ;;  %v10607_v3 = vld [vmem:[%s14241_s1 + $0x150] sm:$0xff]   ;;  %v10609_v9 = vld [vmem:[%s14241_s1 + $0x158] sm:$0xff]  }
 0x1d6   :  { %14304 = vst [vmem:[#allocation17_spill] sm:$0xff] %v12013_v20  ;;  %v12020_v16 = vadd.f32 %v11884_v41, %v1612_v7  ;;  %v8377_v53 = vpop.f32.mrb[112].mxu0  ;;  %8999 = vmatprep.subr.bf16.mxu0 %v10605_v31  ;;  %v10129_v41 = vld [vmem:[%s14242_s0 + $0x668] ss:$28 sps:$4 sm:$0xff]  }
 0x1d7   :  { %v8447_v27 = vpop.f32.mrb[112].mxu1  ;;  %v8378_v58 = vpop.f32.mrb[113].mxu0 }
 0x1d8   :  { %14305 = vst [vmem:[#allocation18_spill] sm:$0xff] %v12020_v16  ;;  %v8379_v37 = vadd.f32 %v8378_v58, %v8377_v53  ;;  %v8448_v19 = vpop.f32.mrb[113].mxu1  ;;  %v8380_v50 = vpop.f32.mrb[114].mxu0  ;;  %v10185_v16 = vld [vmem:[%s14242_s0 + $0x968] ss:$28 sps:$4 sm:$0xff]  }
 0x1d9   :  { %v12034_v54 = vadd.f32 %v8448_v19, %v8447_v27  ;;  %v8450_v61 = vpop.f32.mrb[114].mxu1  ;;  %v8381_v42 = vpop.f32.mrb[115].mxu0  ;;  %9000 = vmatpush3.bf16.msra.mxu0 %v10606_v62  ;;  %v10139_v19 = vld [vmem:[%s14242_s0 + $0x7ac] ss:$28 sps:$4 sm:$0xff]  }
 0x1da   :  { %v1617_v23 = vadd.f32 %v8379_v37, %v11580_v43  ;;  %v8382_v4 = vadd.f32 %v8381_v42, %v8380_v50  ;;  %v8451_v1 = vpop.f32.mrb[115].mxu1  ;;  %9001 = vmatprep.subr.bf16.mxu0 %v10607_v3  ;;  %v10608_v43 = vld [vmem:[%s14241_s1 + $0x110] sm:$0xff]   ;;  %v10135_v37 = vld [vmem:[%s14242_s0 + $0x6a0] ss:$28 sps:$4 sm:$0xff]  }
 0x1db   :  { %v12046_v15 = vadd.f32 %v8451_v1, %v8450_v61  ;;  %3999 = vmatmul.mubr.bf16.gmra.mrb[220].mxu0 %v10130_v18  ;;  %v10610_v61 = vld [vmem:[%s14241_s1 + $0x118] sm:$0xff]  }
 0x1dc   :  { %v1620_v6 = vadd.f32 %v8382_v4, %v11582_v48  ;;  %3004 = vmatmul.mubr.bf16.gmra.mrb[220].mxu1 %v10129_v41  ;;  %4006 = vmatprep.mubr.bf16.mxu0 %v10133_v55  ;;  %v12050_v34 = vadd.f32 %v11912_v36, %v1617_v23  ;;  %v10136_v36 = vld [vmem:[%s14242_s0 + $0x770] ss:$28 sps:$4 sm:$0xff]   ;;  %v10137_v55 = vld [vmem:[%s14242_s0 + $0x6dc] ss:$28 sps:$4 sm:$0xff]   ;;  %v10611_v23 = vld [vmem:[%s14241_s1 + $0x160] sm:$0xff]  }
 0x1dd   :  { %3011 = vmatprep.mubr.bf16.mxu1 %v10131_v40  ;;  %9002 = vmatpush3.bf16.msra.mxu0 %v10608_v43 }
 0x1de   :  { %14306 = vst [vmem:[#allocation19_spill] sm:$0xff] %v12050_v34  ;;  %v8383_v7 = vpop.f32.mrb[116].mxu0  ;;  %9003 = vmatprep.subr.bf16.mxu0 %v10609_v9  ;;  %v12059_v53 = vadd.f32 %v11926_v5, %v1620_v6 }
 0x1df   :  { %v8453_v48 = vpop.f32.mrb[116].mxu1  ;;  %v8384_v31 = vpop.f32.mrb[117].mxu0 }
 0x1e0   :  { %14307 = vst [vmem:[#allocation20_spill] sm:$0xff] %v12059_v53  ;;  %v8385_v27 = vadd.f32 %v8384_v31, %v8383_v7  ;;  %v8454_v58 = vpop.f32.mrb[117].mxu1  ;;  %v8386_v18 = vpop.f32.mrb[118].mxu0  ;;  %v10613_v7 = vld [vmem:[%s14241_s1 + $0x168] sm:$0xff]  }
 0x1e1   :  { %v12070_v50 = vadd.f32 %v8454_v58, %v8453_v48  ;;  %v8456_v5 = vpop.f32.mrb[118].mxu1  ;;  %v8387_v41 = vpop.f32.mrb[119].mxu0  ;;  %9004 = vmatpush3.bf16.msra.mxu0 %v10610_v61  ;;  %v10179_v53 = vld [vmem:[%s14242_s0 + $0x930] ss:$28 sps:$4 sm:$0xff]  }
 0x1e2   :  { %v1625_v42 = vadd.f32 %v8385_v27, %v11596_v11  ;;  %v8388_v40 = vadd.f32 %v8387_v41, %v8386_v18  ;;  %v8457_v62 = vpop.f32.mrb[119].mxu1  ;;  %9005 = vmatprep.subr.bf16.mxu0 %v10611_v23  ;;  %v10612_v11 = vld [vmem:[%s14241_s1 + $0x120] sm:$0xff]  }
 0x1e3   :  { %v12082_v4 = vadd.f32 %v8457_v62, %v8456_v5  ;;  %4007 = vmatmul.mubr.bf16.gmra.mrb[224].mxu0 %v10136_v36  ;;  %v10143_v27 = vld [vmem:[%s14242_s0 + $0x7e4] ss:$28 sps:$4 sm:$0xff]   ;;  %v10614_v5 = vld [vmem:[%s14241_s1 + $0x128] sm:$0xff]  }
 0x1e4   :  { %v12085_v1 = vadd.f32 %v11907_v49, %v1625_v42  ;;  %v1628_v3 = vadd.f32 %v8388_v40, %v11598_v13  ;;  %3012 = vmatmul.mubr.bf16.gmra.mrb[224].mxu1 %v10135_v37  ;;  %4014 = vmatprep.mubr.bf16.mxu0 %v10139_v19  ;;  %v10142_v13 = vld [vmem:[%s14242_s0 + $0x7a8] ss:$28 sps:$4 sm:$0xff]   ;;  %v10615_v42 = vld [vmem:[%s14241_s1 + $0x170] sm:$0xff]  }
 0x1e5   :  { %3019 = vmatprep.mubr.bf16.mxu1 %v10137_v55  ;;  %9006 = vmatpush3.bf16.msra.mxu0 %v10612_v11  ;;  %v10147_v19 = vld [vmem:[%s14242_s0 + $0x70c] ss:$28 sps:$4 sm:$0xff]  }
 0x1e6   :  { %14308 = vst [vmem:[#allocation21_spill] sm:$0xff] %v12085_v1  ;;  %v12092_v6 = vadd.f32 %v11920_v26, %v1628_v3  ;;  %v8547_v43 = vpop.f32.mrb[120].mxu0  ;;  %9007 = vmatprep.subr.bf16.mxu0 %v10613_v7  ;;  %v10141_v26 = vld [vmem:[%s14242_s0 + $0x6d8] ss:$28 sps:$4 sm:$0xff]  }
 0x1e7   :  { %v8459_v49 = vpop.f32.mrb[120].mxu1  ;;  %v8548_v9 = vpop.f32.mrb[121].mxu0  ;;  %v10617_v3 = vld [vmem:[%s14241_s1 + $0x178] sm:$0xff]  }
 0x1e8   :  { %14309 = vst [vmem:[#allocation22_spill] sm:$0xff] %v12092_v6  ;;  %v8460_v48 = vpop.f32.mrb[121].mxu1  ;;  %v8549_v31 = vadd.f32 %v8548_v9, %v8547_v43  ;;  %v8550_v36 = vpop.f32.mrb[122].mxu0  ;;  %v10177_v6 = vld [vmem:[%s14242_s0 + $0x8f8] ss:$28 sps:$4 sm:$0xff]  }
 0x1e9   :  { %v12106_v58 = vadd.f32 %v8460_v48, %v8459_v49  ;;  %v8462_v18 = vpop.f32.mrb[122].mxu1  ;;  %v8551_v37 = vpop.f32.mrb[123].mxu0  ;;  %9008 = vmatpush3.bf16.msra.mxu0 %v10614_v5  ;;  %v10149_v48 = vld [vmem:[%s14242_s0 + $0x81c] ss:$28 sps:$4 sm:$0xff]  }
 0x1ea   :  { %v12115_v41 = vadd.f32 %v8549_v31, %v11979_v25  ;;  %v8463_v55 = vpop.f32.mrb[123].mxu1  ;;  %v8552_v61 = vadd.f32 %v8551_v37, %v8550_v36  ;;  %9009 = vmatprep.subr.bf16.mxu0 %v10615_v42  ;;  %v10616_v25 = vld [vmem:[%s14241_s1 + $0x130] sm:$0xff]  }
 0x1eb   :  { %v12120_v40 = vadd.f32 %v8463_v55, %v8462_v18  ;;  %4015 = vmatmul.mubr.bf16.gmra.mrb[228].mxu0 %v10142_v13  ;;  %v10145_v13 = vld [vmem:[%s14242_s0 + $0x708] ss:$28 sps:$4 sm:$0xff]   ;;  %v10618_v18 = vld [vmem:[%s14241_s1 + $0x138] sm:$0xff]  }
 0x1ec   :  { %v12123_v62 = vadd.f32 %v8552_v61, %v11985_v38  ;;  %3020 = vmatmul.mubr.bf16.gmra.mrb[228].mxu1 %v10141_v26  ;;  %4022 = vmatprep.mubr.bf16.mxu0 %v10143_v27  ;;  %v10148_v38 = vld [vmem:[%s14242_s0 + $0x7e0] ss:$28 sps:$4 sm:$0xff]  }
 0x1ed   :  { %4151 = vmatprep.mubr.bf16.mxu1 %v10147_v19  ;;  %9010 = vmatpush3.bf16.msra.mxu0 %v10616_v25  ;;  %v10151_v27 = vld [vmem:[%s14242_s0 + $0x744] ss:$28 sps:$4 sm:$0xff]  }
 0x1ee   :  { %v8553_v23 = vpop.f32.mrb[124].mxu0  ;;  %9011 = vmatprep.subr.bf16.mxu0 %v10617_v3  ;;  %v10619_v55 = vld [vmem:[%s14241_s1 + $0xc0] sm:$0xff]  }
 0x1ef   :  { %v8465_v11 = vpop.f32.mrb[124].mxu1  ;;  %v8554_v43 = vpop.f32.mrb[125].mxu0 }
 0x1f0   :  { %v8466_v7 = vpop.f32.mrb[125].mxu1  ;;  %v8555_v49 = vadd.f32 %v8554_v43, %v8553_v23  ;;  %v8556_v9 = vpop.f32.mrb[126].mxu0  ;;  %v10621_v23 = vld [vmem:[%s14241_s1 + $0x188] sm:$0xff]  }
 0x1f1   :  { %v12140_v31 = vadd.f32 %v8466_v7, %v8465_v11  ;;  %v8468_v36 = vpop.f32.mrb[126].mxu1  ;;  %v8557_v26 = vpop.f32.mrb[127].mxu0  ;;  %9012 = vmatpush3.bf16.msra.mxu0 %v10618_v18 }
 0x1f2   :  { %v12149_v37 = vadd.f32 %v8555_v49, %v12004_v39  ;;  %v8469_v19 = vpop.f32.mrb[127].mxu1  ;;  %v8558_v5 = vadd.f32 %v8557_v26, %v8556_v9  ;;  %9239 = vmatprep.subr.bf16.mxu0 %v10619_v55  ;;  %v12162_v39 = vld [vmem:[%s14241_s1 + $0x180] sm:$0xff]   ;;  %v10155_v9 = vld [vmem:[%s14242_s0 + $0x854] ss:$28 sps:$4 sm:$0xff]   ;;  %v10157_v26 = vld [vmem:[%s14242_s0 + $0x77c] ss:$28 sps:$4 sm:$0xff]  }
 0x1f3   :  { %v12154_v61 = vadd.f32 %v8469_v19, %v8468_v36  ;;  %4023 = vmatmul.mubr.bf16.gmra.mrb[232].mxu0 %v10148_v38  ;;  %v10154_v49 = vld [vmem:[%s14242_s0 + $0x740] ss:$28 sps:$4 sm:$0xff]  }
 0x1f4   :  { %v12157_v42 = vadd.f32 %v8558_v5, %v12010_v28  ;;  %4152 = vmatmul.mubr.bf16.vlgmr.msra.gmra.mrb[232].mxu1 %v10145_v13  ;;  %4030 = vmatprep.mubr.bf16.mxu0 %v10149_v48  ;;  %v10153_v28 = vld [vmem:[%s14242_s0 + $0x818] ss:$28 sps:$4 sm:$0xff]   ;;  %v10622_v5 = vld [vmem:[%s14241_s1 + $0x40] sm:$0xff]  }
 0x1f5   :  { %9651 = vmatpush3.bf16.msra.mxu1 %v12162_v39  ;;  %4159 = vmatprep.mubr.bf16.mxu1 %v10151_v27 }
 0x1f6   :  { %v8559_v25 = vpop.f32.mrb[128].mxu0  ;;  %9652 = vmatprep.subr.bf16.mxu1 %v10621_v23 }
 0x1f7   :  { %v8471_v3 = vpop.f32.mrb[128].mxu1  ;;  %v8560_v11 = vpop.f32.mrb[129].mxu0 }
 0x1f8   :  { %v8472_v43 = vpop.f32.mrb[129].mxu1  ;;  %v8561_v38 = vadd.f32 %v8560_v11, %v8559_v25  ;;  %v8562_v7 = vpop.f32.mrb[130].mxu0  ;;  %v10159_v11 = vld [vmem:[%s14242_s0 + $0x850] ss:$28 sps:$4 sm:$0xff]  }
 0x1f9   :  { %v12177_v13 = vadd.f32 %v8472_v43, %v8471_v3  ;;  %v8474_v48 = vpop.f32.mrb[130].mxu1  ;;  %v8563_v36 = vpop.f32.mrb[131].mxu0  ;;  %9653 = vmatpush3.bf16.msra.mxu1 %v10621_v23 }
 0x1fa   :  { %v12183_v27 = vadd.f32 %v8561_v38, %v12034_v54  ;;  %v8475_v18 = vpop.f32.mrb[131].mxu1  ;;  %v8564_v19 = vadd.f32 %v8563_v36, %v8562_v7  ;;  %9127 = vmatprep.subr.bf16.mxu1 %v10622_v5  ;;  %v10163_v36 = vld [vmem:[%s14242_s0 + $0x7b4] ss:$28 sps:$4 sm:$0xff]  }
 0x1fb   :  { %v12188_v55 = vadd.f32 %v8475_v18, %v8474_v48  ;;  %4031 = vmatmul.mubr.bf16.gmra.mrb[236].mxu0 %v10153_v28  ;;  %v10160_v28 = vld [vmem:[%s14242_s0 + $0x778] ss:$28 sps:$4 sm:$0xff]  }
 0x1fc   :  { %v12191_v25 = vadd.f32 %v8564_v19, %v12046_v15  ;;  %4160 = vmatmul.mubr.bf16.gmra.mrb[236].mxu1 %v10154_v49  ;;  %4038 = vmatprep.mubr.bf16.mxu0 %v10155_v9  ;;  %v10161_v15 = vld [vmem:[%s14242_s0 + $0x88c] ss:$28 sps:$4 sm:$0xff]  }
 0x1fd   :  { %4167 = vmatprep.mubr.bf16.mxu1 %v10157_v26 }
 0x1fe   :  { %v8565_v23 = vpop.f32.mrb[132].mxu0 }
 0x1ff   :  { %v8477_v3 = vpop.f32.mrb[132].mxu1  ;;  %v8566_v54 = vpop.f32.mrb[133].mxu0 }
 0x200   :  { %v8478_v43 = vpop.f32.mrb[133].mxu1  ;;  %v8567_v38 = vadd.f32 %v8566_v54, %v8565_v23  ;;  %v8568_v7 = vpop.f32.mrb[134].mxu0 }
 0x201   :  { %v12202_v49 = vadd.f32 %v8478_v43, %v8477_v3  ;;  %v8480_v9 = vpop.f32.mrb[134].mxu1  ;;  %v8569_v48 = vpop.f32.mrb[135].mxu0 }
 0x202   :  { %v12208_v26 = vadd.f32 %v8567_v38, %v12070_v50  ;;  %v8481_v18 = vpop.f32.mrb[135].mxu1  ;;  %v8570_v19 = vadd.f32 %v8569_v48, %v8568_v7 }
 0x203   :  { %v12210_v5 = vadd.f32 %v8481_v18, %v8480_v9  ;;  %4039 = vmatmul.mubr.bf16.gmra.mrb[240].mxu0 %v10159_v11  ;;  %v10166_v11 = vld [vmem:[%s14242_s0 + $0x7b0] ss:$28 sps:$4 sm:$0xff]  }
 0x204   :  { %v12213_v23 = vadd.f32 %v8570_v19, %v12082_v4  ;;  %4168 = vmatmul.mubr.bf16.gmra.mrb[240].mxu1 %v10160_v28  ;;  %4046 = vmatprep.mubr.bf16.mxu0 %v10161_v15  ;;  %v10167_v4 = vld [vmem:[%s14242_s0 + $0x8c4] ss:$28 sps:$4 sm:$0xff]   ;;  %v10169_v9 = vld [vmem:[%s14242_s0 + $0x7ec] ss:$28 sps:$4 sm:$0xff]  }
 0x205   :  { %4175 = vmatprep.mubr.bf16.mxu1 %v10163_v36 }
 0x206   :  { %v8571_v3 = vpop.f32.mrb[136].mxu0 }
 0x207   :  { %v8483_v54 = vpop.f32.mrb[136].mxu1  ;;  %v8572_v43 = vpop.f32.mrb[137].mxu0 }
 0x208   :  { %v8484_v50 = vpop.f32.mrb[137].mxu1  ;;  %v8573_v38 = vadd.f32 %v8572_v43, %v8571_v3  ;;  %v8574_v21 = vpop.f32.mrb[138].mxu0 }
 0x209   :  { %v12224_v7 = vadd.f32 %v8484_v50, %v8483_v54  ;;  %v8486_v28 = vpop.f32.mrb[138].mxu1  ;;  %v8575_v15 = vpop.f32.mrb[139].mxu0 }
 0x20a   :  { %v12230_v48 = vadd.f32 %v8573_v38, %v12106_v58  ;;  %v8487_v36 = vpop.f32.mrb[139].mxu1  ;;  %v8576_v18 = vadd.f32 %v8575_v15, %v8574_v21  ;;  %v10172_v21 = vld [vmem:[%s14242_s0 + $0x7e8] ss:$28 sps:$4 sm:$0xff]  }
 0x20b   :  { %v12232_v19 = vadd.f32 %v8487_v36, %v8486_v28  ;;  %4047 = vmatmul.mubr.bf16.gmra.mrb[244].mxu0 %v10165_v24  ;;  %v10173_v24 = vld [vmem:[%s14242_s0 + $0x8fc] ss:$28 sps:$4 sm:$0xff]   ;;  %v10175_v28 = vld [vmem:[%s14242_s0 + $0x824] ss:$28 sps:$4 sm:$0xff]  }
 0x20c   :  { %v12235_v3 = vadd.f32 %v8576_v18, %v12120_v40  ;;  %4176 = vmatmul.mubr.bf16.gmra.mrb[244].mxu1 %v10166_v11  ;;  %4054 = vmatprep.mubr.bf16.mxu0 %v10167_v4 }
 0x20d   :  { %4183 = vmatprep.mubr.bf16.mxu1 %v10169_v9 }
 0x20e   :  { %v8577_v54 = vpop.f32.mrb[140].mxu0 }
 0x20f   :  { %v8489_v43 = vpop.f32.mrb[140].mxu1  ;;  %v8578_v50 = vpop.f32.mrb[141].mxu0 }
 0x210   :  { %v8490_v58 = vpop.f32.mrb[141].mxu1  ;;  %v8579_v38 = vadd.f32 %v8578_v50, %v8577_v54  ;;  %v8580_v33 = vpop.f32.mrb[142].mxu0 }
 0x211   :  { %v12246_v40 = vadd.f32 %v8490_v58, %v8489_v43  ;;  %v8492_v11 = vpop.f32.mrb[142].mxu1  ;;  %v8581_v4 = vpop.f32.mrb[143].mxu0 }
 0x212   :  { %v12252_v15 = vadd.f32 %v8579_v38, %v12140_v31  ;;  %v8493_v9 = vpop.f32.mrb[143].mxu1  ;;  %v8582_v36 = vadd.f32 %v8581_v4, %v8580_v33  ;;  %v10178_v33 = vld [vmem:[%s14242_s0 + $0x820] ss:$28 sps:$4 sm:$0xff]  }
 0x213   :  { %v12254_v18 = vadd.f32 %v8493_v9, %v8492_v11  ;;  %4055 = vmatmul.mubr.bf16.gmra.mrb[248].mxu0 %v10171_v14  ;;  %v10181_v14 = vld [vmem:[%s14242_s0 + $0x934] ss:$28 sps:$4 sm:$0xff]   ;;  %v10184_v11 = vld [vmem:[%s14242_s0 + $0x85c] ss:$28 sps:$4 sm:$0xff]  }
 0x214   :  { %v12257_v54 = vadd.f32 %v8582_v36, %v12154_v61  ;;  %4184 = vmatmul.mubr.bf16.gmra.mrb[248].mxu1 %v10172_v21  ;;  %4062 = vmatprep.mubr.bf16.mxu0 %v10173_v24 }
 0x215   :  { %4191 = vmatprep.mubr.bf16.mxu1 %v10175_v28 }
 0x216   :  { %v8583_v43 = vpop.f32.mrb[144].mxu0 }
 0x217   :  { %v8495_v50 = vpop.f32.mrb[144].mxu1  ;;  %v8584_v58 = vpop.f32.mrb[145].mxu0 }
 0x218   :  { %v8496_v31 = vpop.f32.mrb[145].mxu1  ;;  %v8585_v38 = vadd.f32 %v8584_v58, %v8583_v43  ;;  %v8586_v1 = vpop.f32.mrb[146].mxu0 }
 0x219   :  { %v12268_v61 = vadd.f32 %v8496_v31, %v8495_v50  ;;  %v8498_v21 = vpop.f32.mrb[146].mxu1  ;;  %v8587_v24 = vpop.f32.mrb[147].mxu0 }
 0x21a   :  { %v8499_v4 = vpop.f32.mrb[147].mxu1  ;;  %v8588_v28 = vadd.f32 %v8587_v24, %v8586_v1  ;;  %v12274_v9 = vadd.f32 %v8585_v38, %v12177_v13 }
 0x21b   :  { %v12276_v36 = vadd.f32 %v8499_v4, %v8498_v21  ;;  %4063 = vmatmul.mubr.bf16.gmra.mrb[252].mxu0 %v10177_v6  ;;  %v10182_v6 = vld [vmem:[%s14242_s0 + $0x858] ss:$28 sps:$4 sm:$0xff]  }
 0x21c   :  { %4192 = vmatmul.mubr.bf16.gmra.mrb[252].mxu1 %v10178_v33  ;;  %4070 = vmatprep.mubr.bf16.mxu0 %v10181_v14  ;;  %v12279_v43 = vadd.f32 %v8588_v28, %v12188_v55  ;;  %v10187_v55 = vld [vmem:[%s14242_s0 + $0x96c] ss:$28 sps:$4 sm:$0xff]   ;;  %v10190_v21 = vld [vmem:[%s14242_s0 + $0x894] ss:$28 sps:$4 sm:$0xff]  }
 0x21d   :  { %4199 = vmatprep.mubr.bf16.mxu1 %v10184_v11 }
 0x21e   :  { %v8589_v50 = vpop.f32.mrb[148].mxu0 }
 0x21f   :  { %v8501_v58 = vpop.f32.mrb[148].mxu1  ;;  %v8590_v31 = vpop.f32.mrb[149].mxu0 }
 0x220   :  { %v8502_v1 = vpop.f32.mrb[149].mxu1  ;;  %v8591_v24 = vadd.f32 %v8590_v31, %v8589_v50  ;;  %v8592_v13 = vpop.f32.mrb[150].mxu0 }
 0x221   :  { %v12290_v38 = vadd.f32 %v8502_v1, %v8501_v58  ;;  %v8504_v33 = vpop.f32.mrb[150].mxu1  ;;  %v8593_v14 = vpop.f32.mrb[151].mxu0 }
 0x222   :  { %v12296_v11 = vadd.f32 %v8591_v24, %v12202_v49  ;;  %v8505_v4 = vpop.f32.mrb[151].mxu1  ;;  %v8594_v28 = vadd.f32 %v8593_v14, %v8592_v13 }
 0x223   :  { %v12298_v50 = vadd.f32 %v8505_v4, %v8504_v33  ;;  %4071 = vmatmul.mubr.bf16.gmra.mrb[0].mxu0 %v10179_v53  ;;  %v10188_v53 = vld [vmem:[%s14242_s0 + $0x890] ss:$28 sps:$4 sm:$0xff]  }
 0x224   :  { %v12301_v31 = vadd.f32 %v8594_v28, %v12210_v5  ;;  %4200 = vmatmul.mubr.bf16.gmra.mrb[0].mxu1 %v10182_v6  ;;  %4078 = vmatprep.mubr.bf16.mxu0 %v10187_v55  ;;  %v10193_v5 = vld [vmem:[%s14242_s0 + $0x9a4] ss:$28 sps:$4 sm:$0xff]   ;;  %v10196_v33 = vld [vmem:[%s14242_s0 + $0x8cc] ss:$28 sps:$4 sm:$0xff]  }
 0x225   :  { %4207 = vmatprep.mubr.bf16.mxu1 %v10190_v21 }
 0x226   :  { %v8595_v58 = vpop.f32.mrb[152].mxu0 }
 0x227   :  { %v8507_v1 = vpop.f32.mrb[152].mxu1  ;;  %v8596_v34 = vpop.f32.mrb[153].mxu0 }
 0x228   :  { %v8508_v49 = vpop.f32.mrb[153].mxu1  ;;  %v8597_v24 = vadd.f32 %v8596_v34, %v8595_v58  ;;  %v8598_v20 = vpop.f32.mrb[154].mxu0 }
 0x229   :  { %v12312_v13 = vadd.f32 %v8508_v49, %v8507_v1  ;;  %v8510_v6 = vpop.f32.mrb[154].mxu1  ;;  %v8599_v55 = vpop.f32.mrb[155].mxu0 }
 0x22a   :  { %v8511_v14 = vpop.f32.mrb[155].mxu1  ;;  %v8600_v21 = vadd.f32 %v8599_v55, %v8598_v20  ;;  %v12318_v34 = vadd.f32 %v8597_v24, %v12224_v7 }
 0x22b   :  { %v12320_v4 = vadd.f32 %v8511_v14, %v8510_v6  ;;  %4079 = vmatmul.mubr.bf16.gmra.mrb[4].mxu0 %v10185_v16  ;;  %v10194_v16 = vld [vmem:[%s14242_s0 + $0x8c8] ss:$28 sps:$4 sm:$0xff]  }
 0x22c   :  { %4208 = vmatmul.mubr.bf16.gmra.mrb[4].mxu1 %v10188_v53  ;;  %4086 = vmatprep.mubr.bf16.mxu0 %v10193_v5  ;;  %v12323_v28 = vadd.f32 %v8600_v21, %v12232_v19  ;;  %v10199_v19 = vld [vmem:[%s14242_s0 + $0x9dc] ss:$28 sps:$4 sm:$0xff]   ;;  %v10202_v6 = vld [vmem:[%s14242_s0 + $0x904] ss:$28 sps:$4 sm:$0xff]  }
 0x22d   :  { %4215 = vmatprep.mubr.bf16.mxu1 %v10196_v33 }
 0x22e   :  { %v8601_v58 = vpop.f32.mrb[156].mxu0 }
 0x22f   :  { %v8513_v1 = vpop.f32.mrb[156].mxu1  ;;  %v8602_v49 = vpop.f32.mrb[157].mxu0 }
 0x230   :  { %v8514_v20 = vpop.f32.mrb[157].mxu1  ;;  %v8603_v55 = vadd.f32 %v8602_v49, %v8601_v58  ;;  %v8604_v7 = vpop.f32.mrb[158].mxu0 }
 0x231   :  { %v12334_v24 = vadd.f32 %v8514_v20, %v8513_v1  ;;  %v8516_v53 = vpop.f32.mrb[158].mxu1  ;;  %v8605_v5 = vpop.f32.mrb[159].mxu0 }
 0x232   :  { %v12340_v33 = vadd.f32 %v8603_v55, %v12246_v40  ;;  %v8517_v14 = vpop.f32.mrb[159].mxu1  ;;  %v8606_v21 = vadd.f32 %v8605_v5, %v8604_v7 }
 0x233   :  { %v12342_v58 = vadd.f32 %v8517_v14, %v8516_v53  ;;  %4087 = vmatmul.mubr.bf16.gmra.mrb[8].mxu0 %v10191_v45  ;;  %v10200_v45 = vld [vmem:[%s14242_s0 + $0x900] ss:$28 sps:$4 sm:$0xff]  }
 0x234   :  { %v12345_v49 = vadd.f32 %v8606_v21, %v12254_v18  ;;  %4216 = vmatmul.mubr.bf16.gmra.mrb[8].mxu1 %v10194_v16  ;;  %4094 = vmatprep.mubr.bf16.mxu0 %v10199_v19  ;;  %v10205_v18 = vld [vmem:[%s14242_s0 + $0xa14] ss:$28 sps:$4 sm:$0xff]   ;;  %v10208_v53 = vld [vmem:[%s14242_s0 + $0x93c] ss:$28 sps:$4 sm:$0xff]  }
 0x235   :  { %4223 = vmatprep.mubr.bf16.mxu1 %v10202_v6 }
 0x236   :  { %14310 = vst [vmem:[#allocation23_spill] sm:$0xff] %v12345_v49  ;;  %v8607_v1 = vpop.f32.mrb[160].mxu0  ;;  %v10203_v49 = vld [vmem:[%s14242_s0 + $0xa10] ss:$28 sps:$4 sm:$0xff]  }
 0x237   :  { %v8519_v20 = vpop.f32.mrb[160].mxu1  ;;  %v8608_v10 = vpop.f32.mrb[161].mxu0 }
 0x238   :  { %v8520_v40 = vpop.f32.mrb[161].mxu1  ;;  %v8609_v55 = vadd.f32 %v8608_v10, %v8607_v1  ;;  %v8610_v57 = vpop.f32.mrb[162].mxu0 }
 0x239   :  { %v12356_v7 = vadd.f32 %v8520_v40, %v8519_v20  ;;  %v8522_v16 = vpop.f32.mrb[162].mxu1  ;;  %v8611_v19 = vpop.f32.mrb[163].mxu0 }
 0x23a   :  { %v8523_v5 = vpop.f32.mrb[163].mxu1  ;;  %v8612_v6 = vadd.f32 %v8611_v19, %v8610_v57  ;;  %v12362_v10 = vadd.f32 %v8609_v55, %v12268_v61 }
 0x23b   :  { %v12364_v14 = vadd.f32 %v8523_v5, %v8522_v16  ;;  %4095 = vmatmul.mubr.bf16.gmra.mrb[12].mxu0 %v10197_v32  ;;  %v10206_v32 = vld [vmem:[%s14242_s0 + $0x938] ss:$28 sps:$4 sm:$0xff]  }
 0x23c   :  { %14311 = vst [vmem:[#allocation24_spill] sm:$0xff] %v12362_v10  ;;  %4224 = vmatmul.mubr.bf16.gmra.mrb[12].mxu1 %v10200_v45  ;;  %4102 = vmatprep.mubr.bf16.mxu0 %v10205_v18  ;;  %v12367_v21 = vadd.f32 %v8612_v6, %v12276_v36  ;;  %v10211_v36 = vld [vmem:[%s14242_s0 + $0xa4c] ss:$28 sps:$4 sm:$0xff]   ;;  %v10214_v16 = vld [vmem:[%s14242_s0 + $0x974] ss:$28 sps:$4 sm:$0xff]  }
 0x23d   :  { %4231 = vmatprep.mubr.bf16.mxu1 %v10208_v53  ;;  %v10209_v10 = vld [vmem:[%s14242_s0 + $0xa48] ss:$28 sps:$4 sm:$0xff]  }
 0x23e   :  { %14312 = vst [vmem:[#allocation25_spill] sm:$0xff] %v12367_v21  ;;  %v8613_v1 = vpop.f32.mrb[164].mxu0 }
 0x23f   :  { %v8525_v20 = vpop.f32.mrb[164].mxu1  ;;  %v8614_v40 = vpop.f32.mrb[165].mxu0 }
 0x240   :  { %v8526_v57 = vpop.f32.mrb[165].mxu1  ;;  %v8615_v19 = vadd.f32 %v8614_v40, %v8613_v1  ;;  %v8616_v61 = vpop.f32.mrb[166].mxu0 }
 0x241   :  { %v12378_v55 = vadd.f32 %v8526_v57, %v8525_v20  ;;  %v8528_v45 = vpop.f32.mrb[166].mxu1  ;;  %v8617_v18 = vpop.f32.mrb[167].mxu0 }
 0x242   :  { %v8529_v53 = vpop.f32.mrb[167].mxu1  ;;  %v8618_v5 = vadd.f32 %v8617_v18, %v8616_v61  ;;  %v12384_v6 = vadd.f32 %v8615_v19, %v12290_v38 }
 0x243   :  { %v12386_v1 = vadd.f32 %v8529_v53, %v8528_v45  ;;  %4103 = vmatmul.mubr.bf16.gmra.mrb[16].mxu0 %v10203_v49  ;;  %v10212_v49 = vld [vmem:[%s14242_s0 + $0x970] ss:$28 sps:$4 sm:$0xff]  }
 0x244   :  { %4232 = vmatmul.mubr.bf16.gmra.mrb[16].mxu1 %v10206_v32  ;;  %4110 = vmatprep.mubr.bf16.mxu0 %v10211_v36  ;;  %v12389_v40 = vadd.f32 %v8618_v5, %v12298_v50  ;;  %v10220_v50 = vld [vmem:[%s14242_s0 + $0x714] ss:$28 sps:$4 sm:$0xff]   ;;  %v10217_v45 = vld [vmem:[%s14242_s0 + $0x9ac] ss:$28 sps:$4 sm:$0xff]  }
 0x245   :  { %4239 = vmatprep.mubr.bf16.mxu1 %v10214_v16 }
 0x246   :  { %14313 = vst [vmem:[#allocation26_spill] sm:$0xff] %v12389_v40  ;;  %v8619_v20 = vpop.f32.mrb[168].mxu0 }
 0x247   :  { %v8659_v57 = vpop.f32.mrb[168].mxu1  ;;  %v8620_v21 = vpop.f32.mrb[169].mxu0 }
 0x248   :  { %v8621_v61 = vadd.f32 %v8620_v21, %v8619_v20  ;;  %v8660_v18 = vpop.f32.mrb[169].mxu1  ;;  %v8622_v38 = vpop.f32.mrb[170].mxu0 }
 0x249   :  { %v8661_v19 = vadd.f32 %v8660_v18, %v8659_v57  ;;  %v8662_v32 = vpop.f32.mrb[170].mxu1  ;;  %v8623_v36 = vpop.f32.mrb[171].mxu0 }
 0x24a   :  { %v8624_v16 = vadd.f32 %v8623_v36, %v8622_v38  ;;  %v8663_v53 = vpop.f32.mrb[171].mxu1  ;;  %v12404_v21 = vadd.f32 %v8621_v61, %v12312_v13  ;;  %v10218_v13 = vld [vmem:[%s14242_s0 + $0x710] ss:$28 sps:$4 sm:$0xff]  }
 0x24b   :  { %v8664_v5 = vadd.f32 %v8663_v53, %v8662_v32  ;;  %4111 = vmatmul.mubr.bf16.gmra.mrb[20].mxu0 %v10209_v10  ;;  %v12407_v20 = vadd.f32 %v8661_v19, %v12115_v41  ;;  %v10223_v32 = vld [vmem:[%s14242_s0 + $0x9e4] ss:$28 sps:$4 sm:$0xff]  }
 0x24c   :  { %4240 = vmatmul.mubr.bf16.gmra.mrb[20].mxu1 %v10212_v49  ;;  %4312 = vmatprep.mubr.bf16.mxu0 %v10220_v50  ;;  %v12410_v57 = vadd.f32 %v8624_v16, %v12320_v4  ;;  %v10215_v49 = vld [vmem:[%s14242_s0 + $0x9a8] ss:$28 sps:$4 sm:$0xff]  }
 0x24d   :  { %4247 = vmatprep.mubr.bf16.mxu1 %v10217_v45  ;;  %v12413_v18 = vadd.f32 %v8664_v5, %v12123_v62  ;;  %v10226_v4 = vld [vmem:[%s14242_s0 + $0x74c] ss:$28 sps:$4 sm:$0xff]  }
 0x24e   :  { %v8625_v40 = vpop.f32.mrb[172].mxu0 }
 0x24f   :  { %v8665_v38 = vpop.f32.mrb[172].mxu1  ;;  %v8626_v36 = vpop.f32.mrb[173].mxu0 }
 0x250   :  { %v8627_v10 = vadd.f32 %v8626_v36, %v8625_v40  ;;  %v8666_v61 = vpop.f32.mrb[173].mxu1  ;;  %v8628_v41 = vpop.f32.mrb[174].mxu0 }
 0x251   :  { %v8667_v62 = vadd.f32 %v8666_v61, %v8665_v38  ;;  %v8668_v50 = vpop.f32.mrb[174].mxu1  ;;  %v8629_v19 = vpop.f32.mrb[175].mxu0  ;;  %v10623_v61 = vld [vmem:[%s14241_s1 + $0x80] sm:$0xff]  }
 0x252   :  { %v8630_v45 = vadd.f32 %v8629_v19, %v8628_v41  ;;  %v8669_v16 = vpop.f32.mrb[175].mxu1  ;;  %v12428_v40 = vadd.f32 %v8627_v10, %v12334_v24 }
 0x253   :  { %v8670_v53 = vadd.f32 %v8669_v16, %v8668_v50  ;;  %4313 = vmatmul.mubr.bf16.vlgmr.msra.gmra.mrb[24].mxu0 %v10218_v13  ;;  %v12431_v5 = vadd.f32 %v8667_v62, %v12149_v37  ;;  %v10624_v37 = vld [vmem:[%s14241_s1 + $0xc8] sm:$0xff]   ;;  %v10232_v62 = vld [vmem:[%s14242_s0 + $0x784] ss:$28 sps:$4 sm:$0xff]  }
 0x254   :  { %4248 = vmatmul.mubr.bf16.gmra.mrb[24].mxu1 %v10215_v49  ;;  %4320 = vmatprep.mubr.bf16.mxu0 %v10226_v4  ;;  %v12434_v38 = vadd.f32 %v8630_v45, %v12342_v58  ;;  %v10224_v58 = vld [vmem:[%s14242_s0 + $0x748] ss:$28 sps:$4 sm:$0xff]   ;;  %v10221_v4 = vld [vmem:[%s14242_s0 + $0x9e0] ss:$28 sps:$4 sm:$0xff]  }
 0x255   :  { %4255 = vmatprep.mubr.bf16.mxu1 %v10223_v32  ;;  %v12437_v36 = vadd.f32 %v8670_v53, %v12157_v42  ;;  %9240 = vmatpush3.bf16.msra.mxu0 %v10623_v61  ;;  %v10229_v45 = vld [vmem:[%s14242_s0 + $0xa1c] ss:$28 sps:$4 sm:$0xff]   ;;  %v10625_v16 = vld [vmem:[%s14241_s1 + $0x88] sm:$0xff]  }
 0x256   :  { %v8631_v24 = vpop.f32.mrb[176].mxu0  ;;  %9241 = vmatprep.subr.bf16.mxu0 %v10624_v37 }
 0x257   :  { %v8671_v13 = vpop.f32.mrb[176].mxu1  ;;  %v8632_v10 = vpop.f32.mrb[177].mxu0 }
 0x258   :  { %v8633_v41 = vadd.f32 %v8632_v10, %v8631_v24  ;;  %v8672_v42 = vpop.f32.mrb[177].mxu1  ;;  %v8634_v49 = vpop.f32.mrb[178].mxu0  ;;  %v10626_v24 = vld [vmem:[%s14241_s1 + $0xd0] sm:$0xff]  }
 0x259   :  { %v8673_v50 = vadd.f32 %v8672_v42, %v8671_v13  ;;  %v8674_v19 = vpop.f32.mrb[178].mxu1  ;;  %v8635_v32 = vpop.f32.mrb[179].mxu0  ;;  %9242 = vmatpush3.bf16.msra.mxu0 %v10625_v16 }
 0x25a   :  { %v8636_v53 = vadd.f32 %v8635_v32, %v8634_v49  ;;  %v8675_v61 = vpop.f32.mrb[179].mxu1  ;;  %9243 = vmatprep.subr.bf16.mxu0 %v10626_v24  ;;  %v12464_v37 = vadd.f32 %v8633_v41, %v12356_v7  ;;  %v10627_v32 = vld [vmem:[%s14241_s1 + $0x90] sm:$0xff]   ;;  %v10629_v24 = vld [vmem:[%s14241_s1 + $0x98] sm:$0xff]  }
 0x25b   :  { %v8676_v13 = vadd.f32 %v8675_v61, %v8674_v19  ;;  %4321 = vmatmul.mubr.bf16.gmra.mrb[28].mxu0 %v10224_v58  ;;  %v12467_v10 = vadd.f32 %v8673_v50, %v12183_v27  ;;  %v10628_v27 = vld [vmem:[%s14241_s1 + $0xd8] sm:$0xff]   ;;  %v10235_v61 = vld [vmem:[%s14242_s0 + $0xa54] ss:$28 sps:$4 sm:$0xff]  }
 0x25c   :  { %4256 = vmatmul.mubr.bf16.gmra.mrb[28].mxu1 %v10221_v4  ;;  %4328 = vmatprep.mubr.bf16.mxu0 %v10232_v62  ;;  %v12470_v42 = vadd.f32 %v8636_v53, %v12364_v14  ;;  %v10230_v14 = vld [vmem:[%s14242_s0 + $0x780] ss:$28 sps:$4 sm:$0xff]   ;;  %v10227_v50 = vld [vmem:[%s14242_s0 + $0xa18] ss:$28 sps:$4 sm:$0xff]  }
 0x25d   :  { %4263 = vmatprep.mubr.bf16.mxu1 %v10229_v45  ;;  %v12473_v49 = vadd.f32 %v8676_v13, %v12191_v25  ;;  %9244 = vmatpush3.bf16.msra.mxu0 %v10627_v32  ;;  %v10238_v19 = vld [vmem:[%s14242_s0 + $0x7bc] ss:$28 sps:$4 sm:$0xff]  }
 0x25e   :  { %v8637_v7 = vpop.f32.mrb[180].mxu0  ;;  %9245 = vmatprep.subr.bf16.mxu0 %v10628_v27 }
 0x25f   :  { %v8677_v58 = vpop.f32.mrb[180].mxu1  ;;  %v8638_v41 = vpop.f32.mrb[181].mxu0 }
 0x260   :  { %v8639_v4 = vadd.f32 %v8638_v41, %v8637_v7  ;;  %v8678_v25 = vpop.f32.mrb[181].mxu1  ;;  %v8640_v62 = vpop.f32.mrb[182].mxu0  ;;  %v10630_v7 = vld [vmem:[%s14241_s1 + $0xe0] sm:$0xff]  }
 0x261   :  { %v8679_v45 = vadd.f32 %v8678_v25, %v8677_v58  ;;  %v8680_v16 = vpop.f32.mrb[182].mxu1  ;;  %v8641_v53 = vpop.f32.mrb[183].mxu0  ;;  %9246 = vmatpush3.bf16.msra.mxu0 %v10629_v24 }
 0x262   :  { %v8642_v13 = vadd.f32 %v8641_v53, %v8640_v62  ;;  %v8681_v32 = vpop.f32.mrb[183].mxu1  ;;  %9247 = vmatprep.subr.bf16.mxu0 %v10630_v7  ;;  %v12500_v27 = vadd.f32 %v8639_v4, %v12378_v55  ;;  %v10631_v53 = vld [vmem:[%s14241_s1 + $0xa0] sm:$0xff]   ;;  %v10632_v55 = vld [vmem:[%s14241_s1 + $0xe8] sm:$0xff]  }
 0x263   :  { %v8682_v58 = vadd.f32 %v8681_v32, %v8680_v16  ;;  %4329 = vmatmul.mubr.bf16.gmra.mrb[32].mxu0 %v10230_v14  ;;  %v2926_v41 = vadd.f32 %v8679_v45, %v12208_v26  ;;  %v10233_v45 = vld [vmem:[%s14242_s0 + $0xa50] ss:$28 sps:$4 sm:$0xff]  }
 0x264   :  { %4264 = vmatmul.mubr.bf16.gmra.mrb[32].mxu1 %v10227_v50  ;;  %4336 = vmatprep.mubr.bf16.mxu0 %v10238_v19  ;;  %v12504_v25 = vadd.f32 %v8642_v13, %v12386_v1  ;;  %v10241_v16 = vld [vmem:[%s14242_s0 + $0x7f4] ss:$28 sps:$4 sm:$0xff]   ;;  %v10633_v7 = vld [vmem:[%s14241_s1 + $0xa8] sm:$0xff]  }
 0x265   :  { %4271 = vmatprep.mubr.bf16.mxu1 %v10235_v61  ;;  %v2929_v62 = vadd.f32 %v8682_v58, %v12213_v23  ;;  %9248 = vmatpush3.bf16.msra.mxu0 %v10631_v53  ;;  %v10236_v23 = vld [vmem:[%s14242_s0 + $0x7b8] ss:$28 sps:$4 sm:$0xff]  }
 0x266   :  { %v9620_v24 = vpop.f32.mrb[184].mxu0  ;;  %9249 = vmatprep.subr.bf16.mxu0 %v10632_v55  ;;  %v10649_v55 = vld [vmem:[%s14241_s1 + $0x70] sm:$0xff]  }
 0x267   :  { %v8683_v26 = vpop.f32.mrb[184].mxu1  ;;  %v12514_v14 = vadd.f32 %v9620_v24, %v12431_v5  ;;  %v3062_v1 = vpop.f32.mrb[185].mxu0 }
 0x268   :  { %v8684_v4 = vpop.f32.mrb[185].mxu1  ;;  %v12520_v50 = vadd.f32 %v3062_v1, %v12407_v20  ;;  %v9621_v19 = vpop.f32.mrb[186].mxu0  ;;  %v10242_v20 = vld [vmem:[%s14242_s0 + $0x718] ss:$28 sps:$4 sm:$0xff]  }
 0x269   :  { %v8685_v5 = vadd.f32 %v8684_v4, %v8683_v26  ;;  %v8686_v61 = vpop.f32.mrb[186].mxu1  ;;  %v12529_v13 = vadd.f32 %v9621_v19, %v12437_v36  ;;  %v3065_v32 = vpop.f32.mrb[187].mxu0  ;;  %9250 = vmatpush3.bf16.msra.mxu0 %v10633_v7  ;;  %v10634_v36 = vld [vmem:[%s14241_s1 + $0xf0] sm:$0xff]  }
 0x26a   :  { %v8687_v53 = vpop.f32.mrb[187].mxu1  ;;  %v12540_v24 = vadd.f32 %v3065_v32, %v12413_v18  ;;  %9251 = vmatprep.subr.bf16.mxu0 %v10634_v36  ;;  %v10635_v32 = vld [vmem:[%s14241_s1 + $0xb0] sm:$0xff]   ;;  %v10246_v36 = vld [vmem:[%s14242_s0 + $0x82c] ss:$28 sps:$4 sm:$0xff]  }
 0x26b   :  { %v8688_v26 = vadd.f32 %v8687_v53, %v8686_v61  ;;  %4337 = vmatmul.mubr.bf16.gmra.mrb[36].mxu0 %v10236_v23  ;;  %v2934_v1 = vadd.f32 %v8685_v5, %v12230_v48  ;;  %v10636_v48 = vld [vmem:[%s14241_s1 + $0xf8] sm:$0xff]   ;;  %v10239_v61 = vld [vmem:[%s14242_s0 + $0x7f0] ss:$28 sps:$4 sm:$0xff]  }
 0x26c   :  { %4272 = vmatmul.mubr.bf16.gmra.mrb[36].mxu1 %v10233_v45  ;;  %4344 = vmatprep.mubr.bf16.mxu0 %v10241_v16  ;;  %v10243_v53 = vld [vmem:[%s14242_s0 + $0x750] ss:$28 sps:$4 sm:$0xff]  }
 0x26d   :  { %9654 = vmatprep.mubr.msk.bf16.mxu1 %vm1115_vm0, %v10242_v20  ;;  %v2937_v19 = vadd.f32 %v8688_v26, %v12235_v3  ;;  %9252 = vmatpush3.bf16.msra.mxu0 %v10635_v32 }
 0x26e   :  { %v9624_v23 = vpop.f32.mrb[188].mxu0  ;;  %9253 = vmatprep.subr.bf16.mxu0 %v10636_v48  ;;  %v10247_v48 = vld [vmem:[%s14242_s0 + $0x788] ss:$28 sps:$4 sm:$0xff]  }
 0x26f   :  { %v8689_v45 = vpop.f32.mrb[188].mxu1  ;;  %v12560_v16 = vadd.f32 %v9624_v23, %v2926_v41  ;;  %v3078_v5 = vpop.f32.mrb[189].mxu0 }
 0x270   :  { %v8690_v3 = vpop.f32.mrb[189].mxu1  ;;  %v12566_v20 = vadd.f32 %v3078_v5, %v12467_v10  ;;  %v9625_v7 = vpop.f32.mrb[190].mxu0  ;;  %v10637_v10 = vld [vmem:[%s14241_s1 + $0xb8] sm:$0xff]  }
 0x271   :  { %v8691_v41 = vadd.f32 %v8690_v3, %v8689_v45  ;;  %v8692_v26 = vpop.f32.mrb[190].mxu1  ;;  %v12574_v32 = vadd.f32 %v9625_v7, %v2929_v62  ;;  %v3081_v23 = vpop.f32.mrb[191].mxu0  ;;  %9254 = vmatpush3.bf16.msra.mxu0 %v10637_v10  ;;  %v10640_v10 = vld [vmem:[%s14241_s1 + $0x8] sm:$0xff]  }
 0x272   :  { %v8693_v18 = vpop.f32.mrb[191].mxu1  ;;  %v12585_v4 = vadd.f32 %v3081_v23, %v12473_v49  ;;  %9686 = vmatprep.subr.bf16.mxu0 %v12162_v39  ;;  %v10638_v39 = vld [vmem:[%s14241_s1] sm:$0xff]  }
 0x273   :  { %v8694_v45 = vadd.f32 %v8693_v18, %v8692_v26  ;;  %4345 = vmatmul.mubr.bf16.gmra.mrb[40].mxu0 %v10239_v61  ;;  %v2942_v3 = vadd.f32 %v8691_v41, %v12252_v15  ;;  %v10639_v15 = vld [vmem:[%s14241_s1 + $0x48] sm:$0xff]  }
 0x274   :  { %9655 = vmatmul.mubr.msk.bf16.vlgmr.msra.gmra.mrb[40].mxu1 %vm1115_vm0, %v10243_v53  ;;  %4352 = vmatprep.mubr.bf16.mxu0 %v10246_v36  ;;  %v10244_v41 = vld [vmem:[%s14242_s0 + $0x828] ss:$28 sps:$4 sm:$0xff]  }
 0x275   :  { %9128 = vmatpush3.bf16.msra.mxu1 %v10638_v39  ;;  %v2945_v49 = vadd.f32 %v8694_v45, %v12257_v54  ;;  %9658 = vmatprep.mubr.msk.bf16.mxu1 %vm1115_vm0, %v10247_v48  ;;  %v10248_v48 = vld [vmem:[%s14242_s0 + $0x7c0] ss:$28 sps:$4 sm:$0xff]  }
 0x276   :  { %v9628_v18 = vpop.f32.mrb[192].mxu0  ;;  %9129 = vmatprep.subr.bf16.mxu1 %v10639_v15  ;;  %v10251_v45 = vld [vmem:[%s14242_s0 + $0x864] ss:$28 sps:$4 sm:$0xff]  }
 0x277   :  { %v8695_v61 = vpop.f32.mrb[192].mxu1  ;;  %v12604_v53 = vadd.f32 %v9628_v18, %v2942_v3  ;;  %v3094_v36 = vpop.f32.mrb[193].mxu0 }
 0x278   :  { %v8696_v26 = vpop.f32.mrb[193].mxu1  ;;  %v12609_v23 = vadd.f32 %v3094_v36, %v2934_v1  ;;  %v9629_v54 = vpop.f32.mrb[194].mxu0  ;;  %v10252_v1 = vld [vmem:[%s14242_s0 + $0x7f8] ss:$28 sps:$4 sm:$0xff]  }
 0x279   :  { %v8697_v39 = vadd.f32 %v8696_v26, %v8695_v61  ;;  %v8698_v3 = vpop.f32.mrb[194].mxu1  ;;  %v12617_v18 = vadd.f32 %v9629_v54, %v2945_v49  ;;  %v3097_v15 = vpop.f32.mrb[195].mxu0  ;;  %9130 = vmatpush3.bf16.msra.mxu1 %v10640_v10  ;;  %v10641_v49 = vld [vmem:[%s14241_s1 + $0x50] sm:$0xff]   ;;  %v10257_v54 = vld [vmem:[%s14242_s0 + $0x868] ss:$28 sps:$4 sm:$0xff]  }
 0x27a   :  { %v8699_v7 = vpop.f32.mrb[195].mxu1  ;;  %v12627_v62 = vadd.f32 %v3097_v15, %v2937_v19  ;;  %9131 = vmatprep.subr.bf16.mxu1 %v10641_v49  ;;  %v10253_v49 = vld [vmem:[%s14242_s0 + $0x830] ss:$28 sps:$4 sm:$0xff]  }
 0x27b   :  { %v8700_v26 = vadd.f32 %v8699_v7, %v8698_v3  ;;  %4353 = vmatmul.mubr.bf16.gmra.mrb[44].mxu0 %v10244_v41  ;;  %v2950_v10 = vadd.f32 %v8697_v39, %v12274_v9  ;;  %v10642_v7 = vld [vmem:[%s14241_s1 + $0x10] sm:$0xff]   ;;  %v10643_v9 = vld [vmem:[%s14241_s1 + $0x58] sm:$0xff]  }
 0x27c   :  { %14314 = vst [vmem:[#allocation27_spill] sm:$0xff] %v12627_v62  ;;  %9659 = vmatmul.mubr.msk.bf16.gmra.mrb[44].mxu1 %vm1115_vm0, %v10248_v48  ;;  %4360 = vmatprep.mubr.bf16.mxu0 %v10251_v45  ;;  %v10249_v39 = vld [vmem:[%s14242_s0 + $0x860] ss:$28 sps:$4 sm:$0xff]  }
 0x27d   :  { %v2953_v15 = vadd.f32 %v8700_v26, %v12279_v43  ;;  %9662 = vmatprep.mubr.msk.bf16.mxu1 %vm1115_vm0, %v10252_v1  ;;  %9132 = vmatpush3.bf16.msra.mxu1 %v10642_v7  ;;  %v10256_v26 = vld [vmem:[%s14242_s0 + $0x89c] ss:$28 sps:$4 sm:$0xff]  }
 0x27e   :  { %v9632_v41 = vpop.f32.mrb[196].mxu0  ;;  %9133 = vmatprep.subr.bf16.mxu1 %v10643_v9 }
 0x27f   :  { %v8701_v48 = vpop.f32.mrb[196].mxu1  ;;  %v3110_v45 = vpop.f32.mrb[197].mxu0 }
 0x280   :  { %v8702_v43 = vpop.f32.mrb[197].mxu1  ;;  %v12651_v3 = vadd.f32 %v3110_v45, %v2950_v10  ;;  %v9633_v1 = vpop.f32.mrb[198].mxu0  ;;  %v10644_v10 = vld [vmem:[%s14241_s1 + $0x18] sm:$0xff]  }
 0x281   :  { %v8703_v7 = vadd.f32 %v8702_v43, %v8701_v48  ;;  %v8704_v9 = vpop.f32.mrb[198].mxu1  ;;  %v3113_v19 = vpop.f32.mrb[199].mxu0  ;;  %9134 = vmatpush3.bf16.msra.mxu1 %v10644_v10  ;;  %v10645_v48 = vld [vmem:[%s14241_s1 + $0x60] sm:$0xff]  }
 0x282   :  { %14315 = vst [vmem:[#allocation28_spill] sm:$0xff] %v12651_v3  ;;  %v8705_v61 = vpop.f32.mrb[199].mxu1  ;;  %v12667_v36 = vadd.f32 %v3113_v19, %v2953_v15  ;;  %9135 = vmatprep.subr.bf16.mxu1 %v10645_v48  ;;  %v10646_v15 = vld [vmem:[%s14241_s1 + $0x20] sm:$0xff]  }
 0x283   :  { %v2958_v43 = vadd.f32 %v8703_v7, %v12296_v11  ;;  %v8706_v5 = vadd.f32 %v8705_v61, %v8704_v9  ;;  %4361 = vmatmul.mubr.bf16.gmra.mrb[48].mxu0 %v10249_v39  ;;  %v10647_v61 = vld [vmem:[%s14241_s1 + $0x68] sm:$0xff]  }
 0x284   :  { %14316 = vst [vmem:[#allocation29_spill] sm:$0xff] %v12667_v36  ;;  %9663 = vmatmul.mubr.msk.bf16.gmra.mrb[48].mxu1 %vm1115_vm0, %v10253_v49  ;;  %4368 = vmatprep.mubr.bf16.mxu0 %v10256_v26  ;;  %v10258_v26 = vld [vmem:[%s14242_s0 + $0x8a0] ss:$28 sps:$4 sm:$0xff]  }
 0x285   :  { %v12676_v10 = vadd.f32 %v9632_v41, %v2958_v43  ;;  %v2961_v19 = vadd.f32 %v8706_v5, %v12301_v31  ;;  %9666 = vmatprep.mubr.msk.bf16.mxu1 %vm1115_vm0, %v10257_v54  ;;  %9136 = vmatpush3.bf16.msra.mxu1 %v10646_v15  ;;  %v10254_v31 = vld [vmem:[%s14242_s0 + $0x898] ss:$28 sps:$4 sm:$0xff]   ;;  %v10648_v15 = vld [vmem:[%s14241_s1 + $0x28] sm:$0xff]  }
 0x286   :  { %v9636_v11 = vpop.f32.mrb[200].mxu0  ;;  %9137 = vmatprep.subr.bf16.mxu1 %v10647_v61  ;;  %v10650_v61 = vld [vmem:[%s14241_s1 + $0x30] sm:$0xff]  }
 0x287   :  { %14317 = vst [vmem:[#allocation30_spill] sm:$0xff] %v12676_v10  ;;  %v12686_v39 = vadd.f32 %v9633_v1, %v2961_v19  ;;  %v8707_v49 = vpop.f32.mrb[200].mxu1  ;;  %v3126_v5 = vpop.f32.mrb[201].mxu0  ;;  %v10261_v1 = vld [vmem:[%s14242_s0 + $0x8d4] ss:$28 sps:$4 sm:$0xff]  }
 0x288   :  { %v8708_v41 = vpop.f32.mrb[201].mxu1  ;;  %v9637_v7 = vpop.f32.mrb[202].mxu0  ;;  %v10262_v19 = vld [vmem:[%s14242_s0 + $0x8d8] ss:$28 sps:$4 sm:$0xff]  }
 0x289   :  { %14318 = vst [vmem:[#allocation31_spill] sm:$0xff] %v12686_v39  ;;  %v8709_v9 = vadd.f32 %v8708_v41, %v8707_v49  ;;  %v8710_v48 = vpop.f32.mrb[202].mxu1  ;;  %v3129_v43 = vpop.f32.mrb[203].mxu0  ;;  %9138 = vmatpush3.bf16.msra.mxu1 %v10648_v15 }
 0x28a   :  { %v8711_v54 = vpop.f32.mrb[203].mxu1  ;;  %9139 = vmatprep.subr.bf16.mxu1 %v10649_v55  ;;  %v10653_v55 = vld [vmem:[%s14241_s1 + $0x140] sm:$0xff]  }
 0x28b   :  { %v8712_v49 = vadd.f32 %v8711_v54, %v8710_v48  ;;  %v2966_v41 = vadd.f32 %v8709_v9, %v12318_v34  ;;  %4369 = vmatmul.mubr.bf16.gmra.mrb[52].mxu0 %v10254_v31  ;;  %v10651_v34 = vld [vmem:[%s14241_s1 + $0x78] sm:$0xff]   ;;  %v10266_v9 = vld [vmem:[%s14242_s0 + $0x90c] ss:$28 sps:$4 sm:$0xff]  }
 0x28c   :  { %9667 = vmatmul.mubr.msk.bf16.gmra.mrb[52].mxu1 %vm1115_vm0, %v10258_v26  ;;  %4376 = vmatprep.mubr.bf16.mxu0 %v10261_v1  ;;  %v10263_v1 = vld [vmem:[%s14242_s0 + $0x910] ss:$28 sps:$4 sm:$0xff]  }
 0x28d   :  { %v12712_v45 = vadd.f32 %v3126_v5, %v2966_v41  ;;  %v2969_v15 = vadd.f32 %v8712_v49, %v12323_v28  ;;  %9670 = vmatprep.mubr.msk.bf16.mxu1 %vm1115_vm0, %v10262_v19  ;;  %9140 = vmatpush3.bf16.msra.mxu1 %v10650_v61  ;;  %v10259_v5 = vld [vmem:[%s14242_s0 + $0x8d0] ss:$28 sps:$4 sm:$0xff]   ;;  %v10267_v49 = vld [vmem:[%s14242_s0 + $0x948] ss:$28 sps:$4 sm:$0xff]  }
 0x28e   :  { %v12719_v58 = vpop.f32.mrb[204].mxu0  ;;  %9141 = vmatprep.subr.bf16.mxu1 %v10651_v34 }
 0x28f   :  { %14319 = vst [vmem:[#allocation32_spill] sm:$0xff] %v12712_v45  ;;  %v12726_v31 = vadd.f32 %v3129_v43, %v2969_v15  ;;  %v8713_v28 = vpop.f32.mrb[204].mxu1  ;;  %v3142_v54 = vpop.f32.mrb[205].mxu0  ;;  %v10652_v15 = vld [vmem:[%s14241_s1 + $0x38] sm:$0xff]  }
 0x290   :  { %v8714_v26 = vpop.f32.mrb[205].mxu1  ;;  %v12737_v48 = vpop.f32.mrb[206].mxu0 }
 0x291   :  { %14320 = vst [vmem:[#allocation33_spill] sm:$0xff] %v12726_v31  ;;  %v8715_v19 = vadd.f32 %v8714_v26, %v8713_v28  ;;  %v8716_v61 = vpop.f32.mrb[206].mxu1  ;;  %v3145_v41 = vpop.f32.mrb[207].mxu0  ;;  %9142 = vmatpush3.bf16.msra.mxu1 %v10652_v15  ;;  %v14322_v31 = vld [vmem:[#allocation23_spill] sm:$0xff] }
 0x292   :  { %v8717_v34 = vpop.f32.mrb[207].mxu1  ;;  %9351 = vmatprep.subr.bf16.mxu1 %v10653_v55 }
 0x293   :  { %v2974_v43 = vadd.f32 %v8715_v19, %v12340_v33  ;;  %v8718_v28 = vadd.f32 %v8717_v34, %v8716_v61  ;;  %4377 = vmatmul.mubr.bf16.gmra.mrb[56].mxu0 %v10259_v5  ;;  %v10264_v33 = vld [vmem:[%s14242_s0 + $0x908] ss:$28 sps:$4 sm:$0xff]   ;;  %v10272_v19 = vld [vmem:[%s14242_s0 + $0x9b8] ss:$28 sps:$4 sm:$0xff]  }
 0x294   :  { %9671 = vmatmul.mubr.msk.bf16.gmra.mrb[56].mxu1 %vm1115_vm0, %v10263_v1  ;;  %4384 = vmatprep.mubr.bf16.mxu0 %v10266_v9 }
 0x295   :  { %v12752_v26 = vadd.f32 %v9636_v11, %v2974_v43  ;;  %v2977_v2 = vadd.f32 %v8718_v28, %v14322_v31  ;;  %9674 = vmatprep.mubr.msk.bf16.mxu1 %vm1115_vm0, %v10267_v49  ;;  %v10268_v31 = vld [vmem:[%s14242_s0 + $0x980] ss:$28 sps:$4 sm:$0xff]  }
 0x296   :  { %v12756_v15 = vpop.f32.mrb[208].mxu0 }
 0x297   :  { %14321 = vst [vmem:[#allocation34_spill] sm:$0xff] %v12752_v26  ;;  %v12758_v45 = vadd.f32 %v9637_v7, %v2977_v2  ;;  %v8719_v63 = vpop.f32.mrb[208].mxu1  ;;  %v12763_v55 = vpop.f32.mrb[209].mxu0  ;;  %v10271_v2 = vld [vmem:[%s14242_s0 + $0x944] ss:$28 sps:$4 sm:$0xff]   ;;  %v14326_v26 = vld [vmem:[#allocation24_spill] sm:$0xff] }
 0x298   :  { %v8720_v11 = vpop.f32.mrb[209].mxu1  ;;  %v12773_v7 = vpop.f32.mrb[210].mxu0 }
 0x299   :  { %14323 = vst [vmem:[#allocation23_spill] sm:$0xff] %v12758_v45  ;;  %v8721_v9 = vadd.f32 %v8720_v11, %v8719_v63  ;;  %v8722_v43 = vpop.f32.mrb[210].mxu1  ;;  %v12778_v61 = vpop.f32.mrb[211].mxu0  ;;  %v14328_v63 = vld [vmem:[#allocation25_spill] sm:$0xff] }
 0x29a   :  { %v8723_v28 = vpop.f32.mrb[211].mxu1 }
 0x29b   :  { %v8724_v1 = vadd.f32 %v8723_v28, %v8722_v43  ;;  %v2982_v5 = vadd.f32 %v8721_v9, %v14326_v26  ;;  %4385 = vmatmul.mubr.bf16.gmra.mrb[60].mxu0 %v10264_v33  ;;  %v10269_v26 = vld [vmem:[%s14242_s0 + $0x940] ss:$28 sps:$4 sm:$0xff]   ;;  %v10277_v28 = vld [vmem:[%s14242_s0 + $0xa28] ss:$28 sps:$4 sm:$0xff]  }
 0x29c   :  { %9675 = vmatmul.mubr.msk.bf16.gmra.mrb[60].mxu1 %vm1115_vm0, %v10268_v31  ;;  %4392 = vmatprep.mubr.bf16.mxu0 %v10271_v2  ;;  %v14333_v2 = vld [vmem:[#allocation26_spill] sm:$0xff] }
 0x29d   :  { %v12784_v39 = vadd.f32 %v3142_v54, %v2982_v5  ;;  %v2985_v11 = vadd.f32 %v8724_v1, %v14328_v63  ;;  %9678 = vmatprep.mubr.msk.bf16.mxu1 %vm1115_vm0, %v10272_v19  ;;  %v10273_v5 = vld [vmem:[%s14242_s0 + $0x9f0] ss:$28 sps:$4 sm:$0xff]   ;;  %v10276_v1 = vld [vmem:[%s14242_s0 + $0x97c] ss:$28 sps:$4 sm:$0xff]  }
 0x29e   :  { %v12788_v46 = vpop.f32.mrb[212].mxu0 }
 0x29f   :  { %14327 = vst [vmem:[#allocation24_spill] sm:$0xff] %v12784_v39  ;;  %v12792_v34 = vadd.f32 %v3145_v41, %v2985_v11  ;;  %v8725_v43 = vpop.f32.mrb[212].mxu1  ;;  %v12797_v33 = vpop.f32.mrb[213].mxu0 }
 0x2a0   :  { %v8726_v54 = vpop.f32.mrb[213].mxu1  ;;  %v12805_v31 = vpop.f32.mrb[214].mxu0 }
 0x2a1   :  { %14330 = vst [vmem:[#allocation25_spill] sm:$0xff] %v12792_v34  ;;  %v8727_v9 = vadd.f32 %v8726_v54, %v8725_v43  ;;  %v8728_v19 = vpop.f32.mrb[214].mxu1  ;;  %v12812_v63 = vpop.f32.mrb[215].mxu0 }
 0x2a2   :  { %v8729_v11 = vpop.f32.mrb[215].mxu1 }
 0x2a3   :  { %v2990_v47 = vadd.f32 %v8727_v9, %v12384_v6  ;;  %v8730_v39 = vadd.f32 %v8729_v11, %v8728_v19  ;;  %4393 = vmatmul.mubr.bf16.gmra.mrb[64].mxu0 %v10269_v26  ;;  %v10274_v26 = vld [vmem:[%s14242_s0 + $0x978] ss:$28 sps:$4 sm:$0xff]   ;;  %v10284_v11 = vld [vmem:[%s14242_s0 + $0xa84] ss:$28 sps:$4 sm:$0xff]  }
 0x2a4   :  { %9679 = vmatmul.mubr.msk.bf16.gmra.mrb[64].mxu1 %vm1115_vm0, %v10273_v5  ;;  %4400 = vmatprep.mubr.bf16.mxu0 %v10276_v1 }
 0x2a5   :  { %v12817_v10 = vadd.f32 %v12719_v58, %v2990_v47  ;;  %v2993_v43 = vadd.f32 %v8730_v39, %v14333_v2  ;;  %9682 = vmatprep.mubr.msk.bf16.mxu1 %vm1115_vm0, %v10277_v28  ;;  %v10278_v47 = vld [vmem:[%s14242_s0 + $0xa60] ss:$28 sps:$4 sm:$0xff]   ;;  %v10281_v58 = vld [vmem:[%s14242_s0 + $0x9b4] ss:$28 sps:$4 sm:$0xff]  }
 0x2a6   :  { %v8789_v54 = vpop.f32.mrb[216].mxu0 }
 0x2a7   :  { %14332 = vst [vmem:[#allocation35_spill] sm:$0xff] %v12817_v10  ;;  %v12824_v45 = vadd.f32 %v12737_v48, %v2993_v43  ;;  %v8731_v6 = vpop.f32.mrb[216].mxu1  ;;  %v8790_v5 = vpop.f32.mrb[217].mxu0 }
 0x2a8   :  { %v8732_v1 = vpop.f32.mrb[217].mxu1  ;;  %v12835_v39 = vadd.f32 %v8790_v5, %v8789_v54  ;;  %v8792_v2 = vpop.f32.mrb[218].mxu0 }
 0x2a9   :  { %14335 = vst [vmem:[#allocation26_spill] sm:$0xff] %v12824_v45  ;;  %v8733_v19 = vadd.f32 %v8732_v1, %v8731_v6  ;;  %v8734_v28 = vpop.f32.mrb[218].mxu1  ;;  %v8793_v43 = vpop.f32.mrb[219].mxu0 }
 0x2aa   :  { %v8735_v41 = vpop.f32.mrb[219].mxu1  ;;  %v12842_v10 = vadd.f32 %v8793_v43, %v8792_v2 }
 0x2ab   :  { %v8736_v34 = vadd.f32 %v8735_v41, %v8734_v28  ;;  %v2998_v49 = vadd.f32 %v8733_v19, %v12404_v21  ;;  %4401 = vmatmul.mubr.bf16.gmra.mrb[68].mxu0 %v10274_v26  ;;  %v10279_v21 = vld [vmem:[%s14242_s0 + $0x9b0] ss:$28 sps:$4 sm:$0xff]  }
 0x2ac   :  { %9683 = vmatmul.mubr.msk.bf16.gmra.mrb[68].mxu1 %vm1115_vm0, %v10278_v47  ;;  %4408 = vmatprep.mubr.bf16.mxu0 %v10281_v58 }
 0x2ad   :  { %v12847_v54 = vadd.f32 %v12763_v55, %v2998_v49  ;;  %v3001_v6 = vadd.f32 %v8736_v34, %v12410_v57  ;;  %5403 = vmatprep.mubr.bf16.mxu1 %v10284_v11  ;;  %v10282_v55 = vld [vmem:[%s14242_s0 + $0xa80] ss:$28 sps:$4 sm:$0xff]   ;;  %v10287_v57 = vld [vmem:[%s14242_s0 + $0x9ec] ss:$28 sps:$4 sm:$0xff]  }
 0x2ae   :  { %v8795_v5 = vpop.f32.mrb[220].mxu0  ;;  %v10290_v11 = vld [vmem:[%s14242_s0 + $0xabc] ss:$28 sps:$4 sm:$0xff]  }
 0x2af   :  { %14337 = vst [vmem:[#allocation36_spill] sm:$0xff] %v12847_v54  ;;  %v12853_v2 = vadd.f32 %v12778_v61, %v3001_v6  ;;  %v8737_v41 = vpop.f32.mrb[220].mxu1  ;;  %v8796_v26 = vpop.f32.mrb[221].mxu0 }
 0x2b0   :  { %v8738_v47 = vpop.f32.mrb[221].mxu1  ;;  %v12864_v49 = vadd.f32 %v8796_v26, %v8795_v5  ;;  %v8798_v34 = vpop.f32.mrb[222].mxu0  ;;  %v10654_v26 = vld [vmem:[%s14241_s1 + $0x100] sm:$0xff]  }
 0x2b1   :  { %14339 = vst [vmem:[#allocation37_spill] sm:$0xff] %v12853_v2  ;;  %v8739_v19 = vadd.f32 %v8738_v47, %v8737_v41  ;;  %v8740_v28 = vpop.f32.mrb[222].mxu1  ;;  %v8799_v43 = vpop.f32.mrb[223].mxu0  ;;  %v10655_v47 = vld [vmem:[%s14241_s1 + $0x148] sm:$0xff]  }
 0x2b2   :  { %v8741_v6 = vpop.f32.mrb[223].mxu1  ;;  %v12871_v9 = vadd.f32 %v8799_v43, %v8798_v34  ;;  %v10288_v34 = vld [vmem:[%s14242_s0 + $0xab8] ss:$28 sps:$4 sm:$0xff]  }
 0x2b3   :  { %v3006_v54 = vadd.f32 %v8739_v19, %v12428_v40  ;;  %v8742_v1 = vadd.f32 %v8741_v6, %v8740_v28  ;;  %4409 = vmatmul.mubr.bf16.gmra.mrb[72].mxu0 %v10279_v21  ;;  %v10293_v19 = vld [vmem:[%s14242_s0 + $0xa24] ss:$28 sps:$4 sm:$0xff]  }
 0x2b4   :  { %5404 = vmatmul.mubr.bf16.vlgmr.msra.gmra.mrb[72].mxu1 %v10282_v55  ;;  %4416 = vmatprep.mubr.bf16.mxu0 %v10287_v57 }
 0x2b5   :  { %v12875_v5 = vadd.f32 %v12756_v15, %v3006_v54  ;;  %v3009_v41 = vadd.f32 %v8742_v1, %v12434_v38  ;;  %9352 = vmatpush3.bf16.msra.mxu1 %v10654_v26  ;;  %5411 = vmatprep.mubr.bf16.mxu1 %v10290_v11  ;;  %v10285_v38 = vld [vmem:[%s14242_s0 + $0x9e8] ss:$28 sps:$4 sm:$0xff]   ;;  %v10296_v26 = vld [vmem:[%s14242_s0 + $0xaf4] ss:$28 sps:$4 sm:$0xff]  }
 0x2b6   :  { %9353 = vmatprep.subr.bf16.mxu1 %v10655_v47  ;;  %v8801_v40 = vpop.f32.mrb[224].mxu0  ;;  %v10656_v47 = vld [vmem:[%s14241_s1 + $0x108] sm:$0xff]  }
 0x2b7   :  { %14341 = vst [vmem:[#allocation38_spill] sm:$0xff] %v12875_v5  ;;  %v12887_v15 = vadd.f32 %v12773_v7, %v3009_v41  ;;  %v8743_v54 = vpop.f32.mrb[224].mxu1  ;;  %v8802_v1 = vpop.f32.mrb[225].mxu0 }
 0x2b8   :  { %v8744_v57 = vpop.f32.mrb[225].mxu1  ;;  %v12898_v28 = vadd.f32 %v8802_v1, %v8801_v40  ;;  %v8804_v11 = vpop.f32.mrb[226].mxu0  ;;  %v10657_v40 = vld [vmem:[%s14241_s1 + $0x150] sm:$0xff]  }
 0x2b9   :  { %14343 = vst [vmem:[#allocation39_spill] sm:$0xff] %v12887_v15  ;;  %v8745_v6 = vadd.f32 %v8744_v57, %v8743_v54  ;;  %v8746_v41 = vpop.f32.mrb[226].mxu1  ;;  %9354 = vmatpush3.bf16.msra.mxu1 %v10656_v47  ;;  %v8805_v55 = vpop.f32.mrb[227].mxu0  ;;  %v10658_v15 = vld [vmem:[%s14241_s1 + $0x110] sm:$0xff]  }
 0x2ba   :  { %v8747_v58 = vpop.f32.mrb[227].mxu1  ;;  %9355 = vmatprep.subr.bf16.mxu1 %v10657_v40  ;;  %v12911_v1 = vadd.f32 %v8805_v55, %v8804_v11  ;;  %v10299_v11 = vld [vmem:[%s14242_s0 + $0xa5c] ss:$28 sps:$4 sm:$0xff]  }
 0x2bb   :  { %v8748_v54 = vadd.f32 %v8747_v58, %v8746_v41  ;;  %v3014_v57 = vadd.f32 %v8745_v6, %v12464_v37  ;;  %4417 = vmatmul.mubr.bf16.gmra.mrb[76].mxu0 %v10285_v38  ;;  %v10659_v58 = vld [vmem:[%s14241_s1 + $0x158] sm:$0xff]  }
 0x2bc   :  { %5412 = vmatmul.mubr.bf16.gmra.mrb[76].mxu1 %v10288_v34  ;;  %4424 = vmatprep.mubr.bf16.mxu0 %v10293_v19  ;;  %v10660_v55 = vld [vmem:[%s14241_s1 + $0x118] sm:$0xff]  }
 0x2bd   :  { %v12915_v43 = vadd.f32 %v12797_v33, %v3014_v57  ;;  %v3017_v47 = vadd.f32 %v8748_v54, %v12470_v42  ;;  %5419 = vmatprep.mubr.bf16.mxu1 %v10296_v26  ;;  %9356 = vmatpush3.bf16.msra.mxu1 %v10658_v15  ;;  %v10291_v42 = vld [vmem:[%s14242_s0 + $0xa20] ss:$28 sps:$4 sm:$0xff]   ;;  %v10294_v15 = vld [vmem:[%s14242_s0 + $0xaf0] ss:$28 sps:$4 sm:$0xff]  }
 0x2be   :  { %v8807_v40 = vpop.f32.mrb[228].mxu0  ;;  %9357 = vmatprep.subr.bf16.mxu1 %v10659_v58 }
 0x2bf   :  { %14345 = vst [vmem:[#allocation40_spill] sm:$0xff] %v12915_v43  ;;  %v12927_v33 = vadd.f32 %v12812_v63, %v3017_v47  ;;  %v8749_v38 = vpop.f32.mrb[228].mxu1  ;;  %v8808_v34 = vpop.f32.mrb[229].mxu0  ;;  %v10302_v47 = vld [vmem:[%s14242_s0 + $0xb2c] ss:$28 sps:$4 sm:$0xff]  }
 0x2c0   :  { %v8750_v19 = vpop.f32.mrb[229].mxu1  ;;  %v12938_v6 = vadd.f32 %v8808_v34, %v8807_v40  ;;  %v8810_v41 = vpop.f32.mrb[230].mxu0  ;;  %v10661_v40 = vld [vmem:[%s14241_s1 + $0x160] sm:$0xff]  }
 0x2c1   :  { %14347 = vst [vmem:[#allocation41_spill] sm:$0xff] %v12927_v33  ;;  %v8751_v54 = vadd.f32 %v8750_v19, %v8749_v38  ;;  %v8752_v57 = vpop.f32.mrb[230].mxu1  ;;  %v8811_v58 = vpop.f32.mrb[231].mxu0  ;;  %9358 = vmatpush3.bf16.msra.mxu1 %v10660_v55  ;;  %v10662_v55 = vld [vmem:[%s14241_s1 + $0x120] sm:$0xff]  }
 0x2c2   :  { %v8753_v43 = vpop.f32.mrb[231].mxu1  ;;  %v12948_v37 = vadd.f32 %v8811_v58, %v8810_v41  ;;  %9359 = vmatprep.subr.bf16.mxu1 %v10661_v40 }
 0x2c3   :  { %v3022_v38 = vadd.f32 %v8751_v54, %v12500_v27  ;;  %v8754_v34 = vadd.f32 %v8753_v43, %v8752_v57  ;;  %4425 = vmatmul.mubr.bf16.gmra.mrb[80].mxu0 %v10291_v42  ;;  %v10663_v27 = vld [vmem:[%s14241_s1 + $0x168] sm:$0xff]  }
 0x2c4   :  { %5420 = vmatmul.mubr.bf16.gmra.mrb[80].mxu1 %v10294_v15  ;;  %4432 = vmatprep.mubr.bf16.mxu0 %v10299_v11  ;;  %v10300_v57 = vld [vmem:[%s14242_s0 + $0xb28] ss:$28 sps:$4 sm:$0xff]  }
 0x2c5   :  { %v12955_v19 = vadd.f32 %v12788_v46, %v3022_v38  ;;  %v3025_v26 = vadd.f32 %v8754_v34, %v12504_v25  ;;  %5427 = vmatprep.mubr.bf16.mxu1 %v10302_v47  ;;  %9360 = vmatpush3.bf16.msra.mxu1 %v10662_v55  ;;  %v10297_v25 = vld [vmem:[%s14242_s0 + $0xa58] ss:$28 sps:$4 sm:$0xff]   ;;  %v10308_v47 = vld [vmem:[%s14242_s0 + $0xa8c] ss:$28 sps:$4 sm:$0xff]   ;;  %v10305_v55 = vld [vmem:[%s14242_s0 + $0xb64] ss:$28 sps:$4 sm:$0xff]  }
 0x2c6   :  { %v8813_v41 = vpop.f32.mrb[232].mxu0  ;;  %9361 = vmatprep.subr.bf16.mxu1 %v10663_v27  ;;  %v10664_v42 = vld [vmem:[%s14241_s1 + $0x128] sm:$0xff]  }
 0x2c7   :  { %14349 = vst [vmem:[#allocation42_spill] sm:$0xff] %v12955_v19  ;;  %v12967_v46 = vadd.f32 %v12805_v31, %v3025_v26  ;;  %v8901_v15 = vpop.f32.mrb[232].mxu1  ;;  %v8814_v11 = vpop.f32.mrb[233].mxu0 }
 0x2c8   :  { %v8902_v54 = vpop.f32.mrb[233].mxu1  ;;  %v12978_v58 = vadd.f32 %v8814_v11, %v8813_v41  ;;  %v8816_v40 = vpop.f32.mrb[234].mxu0  ;;  %v10665_v41 = vld [vmem:[%s14241_s1 + $0x170] sm:$0xff]  }
 0x2c9   :  { %14351 = vst [vmem:[#allocation43_spill] sm:$0xff] %v12967_v46  ;;  %v8903_v38 = vadd.f32 %v8902_v54, %v8901_v15  ;;  %v8904_v34 = vpop.f32.mrb[234].mxu1  ;;  %v8817_v27 = vpop.f32.mrb[235].mxu0  ;;  %9362 = vmatpush3.bf16.msra.mxu1 %v10664_v42  ;;  %v10666_v42 = vld [vmem:[%s14241_s1 + $0x130] sm:$0xff]  }
 0x2ca   :  { %v8905_v19 = vpop.f32.mrb[235].mxu1  ;;  %v12988_v43 = vadd.f32 %v8817_v27, %v8816_v40  ;;  %9363 = vmatprep.subr.bf16.mxu1 %v10665_v41  ;;  %v10667_v27 = vld [vmem:[%s14241_s1 + $0x178] sm:$0xff]  }
 0x2cb   :  { %v12994_v15 = vadd.f32 %v8903_v38, %v12835_v39  ;;  %v8906_v11 = vadd.f32 %v8905_v19, %v8904_v34  ;;  %4433 = vmatmul.mubr.bf16.gmra.mrb[84].mxu0 %v10297_v25  ;;  %v10306_v19 = vld [vmem:[%s14242_s0 + $0xa88] ss:$28 sps:$4 sm:$0xff]  }
 0x2cc   :  { %5428 = vmatmul.mubr.bf16.gmra.mrb[84].mxu1 %v10300_v57  ;;  %5564 = vmatprep.mubr.bf16.mxu0 %v10308_v47  ;;  %v10303_v57 = vld [vmem:[%s14242_s0 + $0xb60] ss:$28 sps:$4 sm:$0xff]  }
 0x2cd   :  { %v12997_v54 = vadd.f32 %v8906_v11, %v12842_v10  ;;  %5435 = vmatprep.mubr.bf16.mxu1 %v10305_v55  ;;  %9364 = vmatpush3.bf16.msra.mxu1 %v10666_v42  ;;  %v10314_v47 = vld [vmem:[%s14242_s0 + $0xac4] ss:$28 sps:$4 sm:$0xff]   ;;  %v10311_v11 = vld [vmem:[%s14242_s0 + $0xb9c] ss:$28 sps:$4 sm:$0xff]  }
 0x2ce   :  { %v8819_v40 = vpop.f32.mrb[236].mxu0  ;;  %9365 = vmatprep.subr.bf16.mxu1 %v10667_v27  ;;  %v10668_v27 = vld [vmem:[%s14241_s1 + $0x138] sm:$0xff]  }
 0x2cf   :  { %v8907_v39 = vpop.f32.mrb[236].mxu1  ;;  %v8820_v25 = vpop.f32.mrb[237].mxu0 }
 0x2d0   :  { %v8908_v10 = vpop.f32.mrb[237].mxu1  ;;  %v13014_v38 = vadd.f32 %v8820_v25, %v8819_v40  ;;  %v8822_v34 = vpop.f32.mrb[238].mxu0  ;;  %v10669_v25 = vld [vmem:[%s14241_s1 + $0x180] sm:$0xff]  }
 0x2d1   :  { %v8909_v55 = vadd.f32 %v8908_v10, %v8907_v39  ;;  %v8910_v41 = vpop.f32.mrb[238].mxu1  ;;  %v8823_v42 = vpop.f32.mrb[239].mxu0  ;;  %9366 = vmatpush3.bf16.msra.mxu1 %v10668_v27  ;;  %v10317_v27 = vld [vmem:[%s14242_s0 + $0xbd4] ss:$28 sps:$4 sm:$0xff]  }
 0x2d2   :  { %v8911_v26 = vpop.f32.mrb[239].mxu1  ;;  %v13022_v46 = vadd.f32 %v8823_v42, %v8822_v34  ;;  %v10670_v34 = vld [vmem:[%s14241_s1 + $0x188] sm:$0xff]  }
 0x2d3   :  { %v13025_v31 = vadd.f32 %v8909_v55, %v12864_v49  ;;  %v8912_v40 = vadd.f32 %v8911_v26, %v8910_v41  ;;  %5565 = vmatmul.mubr.bf16.vlgmr.msra.gmra.mrb[88].mxu0 %v10306_v19  ;;  %v10312_v26 = vld [vmem:[%s14242_s0 + $0xac0] ss:$28 sps:$4 sm:$0xff]  }
 0x2d4   :  { %5436 = vmatmul.mubr.bf16.gmra.mrb[88].mxu1 %v10303_v57  ;;  %5572 = vmatprep.mubr.bf16.mxu0 %v10314_v47  ;;  %v10309_v57 = vld [vmem:[%s14242_s0 + $0xb98] ss:$28 sps:$4 sm:$0xff]  }
 0x2d5   :  { %v13028_v39 = vadd.f32 %v8912_v40, %v12871_v9  ;;  %5443 = vmatprep.mubr.bf16.mxu1 %v10311_v11  ;;  %9687 = vmatpush3.bf16.msra.mxu0 %v10669_v25  ;;  %v10320_v47 = vld [vmem:[%s14242_s0 + $0xafc] ss:$28 sps:$4 sm:$0xff]  }
 0x2d6   :  { %v8825_v10 = vpop.f32.mrb[240].mxu0  ;;  %9688 = vmatprep.subr.bf16.mxu0 %v10670_v34 }
 0x2d7   :  { %v8913_v49 = vpop.f32.mrb[240].mxu1  ;;  %v8826_v19 = vpop.f32.mrb[241].mxu0 }
 0x2d8   :  { %v8914_v9 = vpop.f32.mrb[241].mxu1  ;;  %v13045_v55 = vadd.f32 %v8826_v19, %v8825_v10  ;;  %v8828_v41 = vpop.f32.mrb[242].mxu0 }
 0x2d9   :  { %v8915_v11 = vadd.f32 %v8914_v9, %v8913_v49  ;;  %v8916_v42 = vpop.f32.mrb[242].mxu1  ;;  %v8829_v40 = vpop.f32.mrb[243].mxu0  ;;  %9689 = vmatpush3.bf16.msra.mxu0 %v10670_v34  ;;  %v10318_v34 = vld [vmem:[%s14242_s0 + $0xaf8] ss:$28 sps:$4 sm:$0xff]  }
 0x2da   :  { %v8917_v25 = vpop.f32.mrb[243].mxu1  ;;  %v13050_v33 = vadd.f32 %v8829_v40, %v8828_v41 }
 0x2db   :  { %v13053_v63 = vadd.f32 %v8915_v11, %v12898_v28  ;;  %v8918_v7 = vadd.f32 %v8917_v25, %v8916_v42  ;;  %5573 = vmatmul.mubr.bf16.gmra.mrb[92].mxu0 %v10312_v26  ;;  %v10315_v28 = vld [vmem:[%s14242_s0 + $0xbd0] ss:$28 sps:$4 sm:$0xff]  }
 0x2dc   :  { %5444 = vmatmul.mubr.bf16.gmra.mrb[92].mxu1 %v10309_v57  ;;  %5580 = vmatprep.mubr.bf16.mxu0 %v10320_v47  ;;  %v10326_v26 = vld [vmem:[%s14242_s0 + $0xb34] ss:$28 sps:$4 sm:$0xff]   ;;  %v10323_v11 = vld [vmem:[%s14242_s0 + $0xc0c] ss:$28 sps:$4 sm:$0xff]  }
 0x2dd   :  { %v13056_v10 = vadd.f32 %v8918_v7, %v12911_v1  ;;  %5451 = vmatprep.mubr.bf16.mxu1 %v10317_v27 }
 0x2de   :  { %v8831_v49 = vpop.f32.mrb[244].mxu0 }
 0x2df   :  { %v8919_v19 = vpop.f32.mrb[244].mxu1  ;;  %v8832_v9 = vpop.f32.mrb[245].mxu0 }
 0x2e0   :  { %v8920_v41 = vpop.f32.mrb[245].mxu1  ;;  %v13067_v57 = vadd.f32 %v8832_v9, %v8831_v49  ;;  %v8834_v7 = vpop.f32.mrb[246].mxu0 }
 0x2e1   :  { %v8921_v1 = vadd.f32 %v8920_v41, %v8919_v19  ;;  %v8922_v47 = vpop.f32.mrb[246].mxu1  ;;  %v8835_v42 = vpop.f32.mrb[247].mxu0  ;;  %v10324_v41 = vld [vmem:[%s14242_s0 + $0xb30] ss:$28 sps:$4 sm:$0xff]  }
 0x2e2   :  { %v8923_v27 = vpop.f32.mrb[247].mxu1  ;;  %v13072_v40 = vadd.f32 %v8835_v42, %v8834_v7 }
 0x2e3   :  { %v13075_v25 = vadd.f32 %v8921_v1, %v12938_v6  ;;  %v8924_v5 = vadd.f32 %v8923_v27, %v8922_v47  ;;  %5581 = vmatmul.mubr.bf16.gmra.mrb[96].mxu0 %v10318_v34  ;;  %v10321_v6 = vld [vmem:[%s14242_s0 + $0xc08] ss:$28 sps:$4 sm:$0xff]  }
 0x2e4   :  { %5452 = vmatmul.mubr.bf16.gmra.mrb[96].mxu1 %v10315_v28  ;;  %5588 = vmatprep.mubr.bf16.mxu0 %v10326_v26  ;;  %v10332_v34 = vld [vmem:[%s14242_s0 + $0xb6c] ss:$28 sps:$4 sm:$0xff]   ;;  %v10329_v1 = vld [vmem:[%s14242_s0 + $0xc44] ss:$28 sps:$4 sm:$0xff]  }
 0x2e5   :  { %v13078_v49 = vadd.f32 %v8924_v5, %v12948_v37  ;;  %5459 = vmatprep.mubr.bf16.mxu1 %v10323_v11 }
 0x2e6   :  { %v8837_v19 = vpop.f32.mrb[248].mxu0 }
 0x2e7   :  { %v8925_v9 = vpop.f32.mrb[248].mxu1  ;;  %v8838_v21 = vpop.f32.mrb[249].mxu0 }
 0x2e8   :  { %v8926_v7 = vpop.f32.mrb[249].mxu1  ;;  %v13089_v28 = vadd.f32 %v8838_v21, %v8837_v19  ;;  %v8840_v5 = vpop.f32.mrb[250].mxu0 }
 0x2e9   :  { %v8927_v37 = vadd.f32 %v8926_v7, %v8925_v9  ;;  %v8928_v26 = vpop.f32.mrb[250].mxu1  ;;  %v8841_v47 = vpop.f32.mrb[251].mxu0  ;;  %v10330_v7 = vld [vmem:[%s14242_s0 + $0xb68] ss:$28 sps:$4 sm:$0xff]  }
 0x2ea   :  { %v8929_v11 = vpop.f32.mrb[251].mxu1  ;;  %v13094_v42 = vadd.f32 %v8841_v47, %v8840_v5 }
 0x2eb   :  { %v13097_v27 = vadd.f32 %v8927_v37, %v12978_v58  ;;  %v8930_v2 = vadd.f32 %v8929_v11, %v8928_v26  ;;  %5589 = vmatmul.mubr.bf16.gmra.mrb[100].mxu0 %v10324_v41  ;;  %v10327_v58 = vld [vmem:[%s14242_s0 + $0xc40] ss:$28 sps:$4 sm:$0xff]  }
 0x2ec   :  { %5460 = vmatmul.mubr.bf16.gmra.mrb[100].mxu1 %v10321_v6  ;;  %5596 = vmatprep.mubr.bf16.mxu0 %v10332_v34  ;;  %v10338_v41 = vld [vmem:[%s14242_s0 + $0xba4] ss:$28 sps:$4 sm:$0xff]   ;;  %v10335_v37 = vld [vmem:[%s14242_s0 + $0xc7c] ss:$28 sps:$4 sm:$0xff]  }
 0x2ed   :  { %v13100_v21 = vadd.f32 %v8930_v2, %v12988_v43  ;;  %5467 = vmatprep.mubr.bf16.mxu1 %v10329_v1 }
 0x2ee   :  { %v8843_v19 = vpop.f32.mrb[252].mxu0 }
 0x2ef   :  { %v8931_v9 = vpop.f32.mrb[252].mxu1  ;;  %v8844_v61 = vpop.f32.mrb[253].mxu0 }
 0x2f0   :  { %v8932_v5 = vpop.f32.mrb[253].mxu1  ;;  %v13111_v6 = vadd.f32 %v8844_v61, %v8843_v19  ;;  %v8846_v2 = vpop.f32.mrb[254].mxu0 }
 0x2f1   :  { %v8933_v43 = vadd.f32 %v8932_v5, %v8931_v9  ;;  %v8934_v34 = vpop.f32.mrb[254].mxu1  ;;  %v8847_v26 = vpop.f32.mrb[255].mxu0  ;;  %v10336_v5 = vld [vmem:[%s14242_s0 + $0xba0] ss:$28 sps:$4 sm:$0xff]  }
 0x2f2   :  { %v8935_v1 = vpop.f32.mrb[255].mxu1  ;;  %v13116_v47 = vadd.f32 %v8847_v26, %v8846_v2 }
 0x2f3   :  { %v13119_v11 = vadd.f32 %v8933_v43, %v13014_v38  ;;  %v8936_v45 = vadd.f32 %v8935_v1, %v8934_v34  ;;  %5597 = vmatmul.mubr.bf16.gmra.mrb[104].mxu0 %v10330_v7  ;;  %v10333_v38 = vld [vmem:[%s14242_s0 + $0xc78] ss:$28 sps:$4 sm:$0xff]  }
 0x2f4   :  { %5468 = vmatmul.mubr.bf16.gmra.mrb[104].mxu1 %v10327_v58  ;;  %5604 = vmatprep.mubr.bf16.mxu0 %v10338_v41  ;;  %v10344_v7 = vld [vmem:[%s14242_s0 + $0xbdc] ss:$28 sps:$4 sm:$0xff]   ;;  %v10341_v43 = vld [vmem:[%s14242_s0 + $0xcb4] ss:$28 sps:$4 sm:$0xff]  }
 0x2f5   :  { %v13122_v61 = vadd.f32 %v8936_v45, %v13022_v46  ;;  %5475 = vmatprep.mubr.bf16.mxu1 %v10335_v37 }
 0x2f6   :  { %v8849_v19 = vpop.f32.mrb[0].mxu0 }
 0x2f7   :  { %v8937_v9 = vpop.f32.mrb[0].mxu1  ;;  %v8850_v48 = vpop.f32.mrb[1].mxu0 }
 0x2f8   :  { %v8938_v2 = vpop.f32.mrb[1].mxu1  ;;  %v13133_v58 = vadd.f32 %v8850_v48, %v8849_v19  ;;  %v8852_v45 = vpop.f32.mrb[2].mxu0 }
 0x2f9   :  { %v8939_v46 = vadd.f32 %v8938_v2, %v8937_v9  ;;  %v8940_v41 = vpop.f32.mrb[2].mxu1  ;;  %v8853_v34 = vpop.f32.mrb[3].mxu0  ;;  %v10342_v2 = vld [vmem:[%s14242_s0 + $0xbd8] ss:$28 sps:$4 sm:$0xff]  }
 0x2fa   :  { %v8941_v37 = vpop.f32.mrb[3].mxu1  ;;  %v13138_v26 = vadd.f32 %v8853_v34, %v8852_v45 }
 0x2fb   :  { %v13141_v1 = vadd.f32 %v8939_v46, %v13045_v55  ;;  %v8942_v36 = vadd.f32 %v8941_v37, %v8940_v41  ;;  %5605 = vmatmul.mubr.bf16.gmra.mrb[108].mxu0 %v10336_v5  ;;  %v10339_v55 = vld [vmem:[%s14242_s0 + $0xcb0] ss:$28 sps:$4 sm:$0xff]  }
 0x2fc   :  { %5476 = vmatmul.mubr.bf16.gmra.mrb[108].mxu1 %v10333_v38  ;;  %5612 = vmatprep.mubr.bf16.mxu0 %v10344_v7  ;;  %v10350_v5 = vld [vmem:[%s14242_s0 + $0xc14] ss:$28 sps:$4 sm:$0xff]   ;;  %v10347_v46 = vld [vmem:[%s14242_s0 + $0xcec] ss:$28 sps:$4 sm:$0xff]  }
 0x2fd   :  { %v13144_v48 = vadd.f32 %v8942_v36, %v13050_v33  ;;  %5483 = vmatprep.mubr.bf16.mxu1 %v10341_v43 }
 0x2fe   :  { %v8855_v19 = vpop.f32.mrb[4].mxu0 }
 0x2ff   :  { %v8943_v9 = vpop.f32.mrb[4].mxu1  ;;  %v8856_v30 = vpop.f32.mrb[5].mxu0 }
 0x300   :  { %v8944_v45 = vpop.f32.mrb[5].mxu1  ;;  %v13155_v38 = vadd.f32 %v8856_v30, %v8855_v19  ;;  %v8858_v36 = vpop.f32.mrb[6].mxu0 }
 0x301   :  { %v8945_v33 = vadd.f32 %v8944_v45, %v8943_v9  ;;  %v8946_v7 = vpop.f32.mrb[6].mxu1  ;;  %v8859_v41 = vpop.f32.mrb[7].mxu0  ;;  %v10348_v45 = vld [vmem:[%s14242_s0 + $0xc10] ss:$28 sps:$4 sm:$0xff]  }
 0x302   :  { %v8947_v43 = vpop.f32.mrb[7].mxu1  ;;  %v13160_v34 = vadd.f32 %v8859_v41, %v8858_v36 }
 0x303   :  { %v13163_v37 = vadd.f32 %v8945_v33, %v13067_v57  ;;  %v8948_v3 = vadd.f32 %v8947_v43, %v8946_v7  ;;  %5613 = vmatmul.mubr.bf16.gmra.mrb[112].mxu0 %v10342_v2  ;;  %v10345_v57 = vld [vmem:[%s14242_s0 + $0xce8] ss:$28 sps:$4 sm:$0xff]  }
 0x304   :  { %5484 = vmatmul.mubr.bf16.gmra.mrb[112].mxu1 %v10339_v55  ;;  %5620 = vmatprep.mubr.bf16.mxu0 %v10350_v5  ;;  %v10356_v2 = vld [vmem:[%s14242_s0 + $0xc4c] ss:$28 sps:$4 sm:$0xff]   ;;  %v10353_v33 = vld [vmem:[%s14242_s0 + $0xd24] ss:$28 sps:$4 sm:$0xff]  }
 0x305   :  { %14353 = vst [vmem:[#allocation44_spill] sm:$0xff] %v13163_v37  ;;  %v13166_v30 = vadd.f32 %v8948_v3, %v13072_v40  ;;  %5491 = vmatprep.mubr.bf16.mxu1 %v10347_v46 }
 0x306   :  { %v8861_v19 = vpop.f32.mrb[8].mxu0 }
 0x307   :  { %14354 = vst [vmem:[#allocation45_spill] sm:$0xff] %v13166_v30  ;;  %v8949_v9 = vpop.f32.mrb[8].mxu1  ;;  %v8862_v44 = vpop.f32.mrb[9].mxu0 }
 0x308   :  { %v8950_v36 = vpop.f32.mrb[9].mxu1  ;;  %v13177_v55 = vadd.f32 %v8862_v44, %v8861_v19  ;;  %v8864_v3 = vpop.f32.mrb[10].mxu0 }
 0x309   :  { %v8951_v40 = vadd.f32 %v8950_v36, %v8949_v9  ;;  %v8952_v5 = vpop.f32.mrb[10].mxu1  ;;  %v8865_v7 = vpop.f32.mrb[11].mxu0  ;;  %v10354_v36 = vld [vmem:[%s14242_s0 + $0xc48] ss:$28 sps:$4 sm:$0xff]  }
 0x30a   :  { %v8953_v46 = vpop.f32.mrb[11].mxu1  ;;  %v13182_v41 = vadd.f32 %v8865_v7, %v8864_v3 }
 0x30b   :  { %v13185_v43 = vadd.f32 %v8951_v40, %v13089_v28  ;;  %v8954_v30 = vadd.f32 %v8953_v46, %v8952_v5  ;;  %5621 = vmatmul.mubr.bf16.gmra.mrb[116].mxu0 %v10348_v45  ;;  %v10351_v28 = vld [vmem:[%s14242_s0 + $0xd20] ss:$28 sps:$4 sm:$0xff]  }
 0x30c   :  { %5492 = vmatmul.mubr.bf16.gmra.mrb[116].mxu1 %v10345_v57  ;;  %5628 = vmatprep.mubr.bf16.mxu0 %v10356_v2  ;;  %v10362_v45 = vld [vmem:[%s14242_s0 + $0xc84] ss:$28 sps:$4 sm:$0xff]   ;;  %v10359_v40 = vld [vmem:[%s14242_s0 + $0xd5c] ss:$28 sps:$4 sm:$0xff]  }
 0x30d   :  { %14355 = vst [vmem:[#allocation46_spill] sm:$0xff] %v13185_v43  ;;  %v13188_v44 = vadd.f32 %v8954_v30, %v13094_v42  ;;  %5499 = vmatprep.mubr.bf16.mxu1 %v10353_v33 }
 0x30e   :  { %v8867_v19 = vpop.f32.mrb[12].mxu0 }
 0x30f   :  { %14356 = vst [vmem:[#allocation47_spill] sm:$0xff] %v13188_v44  ;;  %v8955_v9 = vpop.f32.mrb[12].mxu1  ;;  %v8868_v37 = vpop.f32.mrb[13].mxu0 }
 0x310   :  { %v8956_v3 = vpop.f32.mrb[13].mxu1  ;;  %v13199_v57 = vadd.f32 %v8868_v37, %v8867_v19  ;;  %v8870_v42 = vpop.f32.mrb[14].mxu0 }
 0x311   :  { %v8957_v30 = vadd.f32 %v8956_v3, %v8955_v9  ;;  %v8958_v2 = vpop.f32.mrb[14].mxu1  ;;  %v8871_v5 = vpop.f32.mrb[15].mxu0  ;;  %v10360_v3 = vld [vmem:[%s14242_s0 + $0xc80] ss:$28 sps:$4 sm:$0xff]  }
 0x312   :  { %v8959_v33 = vpop.f32.mrb[15].mxu1  ;;  %v13204_v7 = vadd.f32 %v8871_v5, %v8870_v42 }
 0x313   :  { %v13207_v46 = vadd.f32 %v8957_v30, %v13111_v6  ;;  %v8960_v44 = vadd.f32 %v8959_v33, %v8958_v2  ;;  %5629 = vmatmul.mubr.bf16.gmra.mrb[120].mxu0 %v10354_v36  ;;  %v10357_v6 = vld [vmem:[%s14242_s0 + $0xd58] ss:$28 sps:$4 sm:$0xff]  }
 0x314   :  { %5500 = vmatmul.mubr.bf16.gmra.mrb[120].mxu1 %v10351_v28  ;;  %5636 = vmatprep.mubr.bf16.mxu0 %v10362_v45  ;;  %v10365_v2 = vld [vmem:[%s14242_s0 + $0xd94] ss:$28 sps:$4 sm:$0xff]  }
 0x315   :  { %14357 = vst [vmem:[#allocation48_spill] sm:$0xff] %v13207_v46  ;;  %v13210_v37 = vadd.f32 %v8960_v44, %v13116_v47  ;;  %5507 = vmatprep.mubr.bf16.mxu1 %v10359_v40  ;;  %v10368_v47 = vld [vmem:[%s14242_s0 + $0xcbc] ss:$28 sps:$4 sm:$0xff]  }
 0x316   :  { %v8873_v19 = vpop.f32.mrb[16].mxu0 }
 0x317   :  { %14358 = vst [vmem:[#allocation49_spill] sm:$0xff] %v13210_v37  ;;  %v8961_v9 = vpop.f32.mrb[16].mxu1  ;;  %v8874_v43 = vpop.f32.mrb[17].mxu0  ;;  %v10366_v37 = vld [vmem:[%s14242_s0 + $0xcb8] ss:$28 sps:$4 sm:$0xff]  }
 0x318   :  { %v8962_v42 = vpop.f32.mrb[17].mxu1  ;;  %v13218_v30 = vadd.f32 %v8874_v43, %v8873_v19  ;;  %v8876_v36 = vpop.f32.mrb[18].mxu0 }
 0x319   :  { %v8963_v44 = vadd.f32 %v8962_v42, %v8961_v9  ;;  %v8964_v28 = vpop.f32.mrb[18].mxu1  ;;  %v8877_v45 = vpop.f32.mrb[19].mxu0 }
 0x31a   :  { %v8965_v40 = vpop.f32.mrb[19].mxu1  ;;  %v13226_v5 = vadd.f32 %v8877_v45, %v8876_v36  ;;  %v10371_v45 = vld [vmem:[%s14242_s0 + $0xdcc] ss:$28 sps:$4 sm:$0xff]  }
 0x31b   :  { %v13229_v33 = vadd.f32 %v8963_v44, %v13133_v58  ;;  %v8966_v43 = vadd.f32 %v8965_v40, %v8964_v28  ;;  %5637 = vmatmul.mubr.bf16.gmra.mrb[124].mxu0 %v10360_v3  ;;  %v10363_v58 = vld [vmem:[%s14242_s0 + $0xd90] ss:$28 sps:$4 sm:$0xff]  }
 0x31c   :  { %5508 = vmatmul.mubr.bf16.gmra.mrb[124].mxu1 %v10357_v6  ;;  %5644 = vmatprep.mubr.bf16.mxu0 %v10368_v47 }
 0x31d   :  { %14359 = vst [vmem:[#allocation50_spill] sm:$0xff] %v13229_v33  ;;  %v13232_v19 = vadd.f32 %v8966_v43, %v13138_v26  ;;  %5515 = vmatprep.mubr.bf16.mxu1 %v10365_v2  ;;  %v10374_v26 = vld [vmem:[%s14242_s0 + $0xcf4] ss:$28 sps:$4 sm:$0xff]  }
 0x31e   :  { %v8879_v9 = vpop.f32.mrb[20].mxu0  ;;  %v10372_v33 = vld [vmem:[%s14242_s0 + $0xcf0] ss:$28 sps:$4 sm:$0xff]  }
 0x31f   :  { %14360 = vst [vmem:[#allocation51_spill] sm:$0xff] %v13232_v19  ;;  %v8967_v42 = vpop.f32.mrb[20].mxu1  ;;  %v8880_v46 = vpop.f32.mrb[21].mxu0 }
 0x320   :  { %v8968_v36 = vpop.f32.mrb[21].mxu1  ;;  %v13240_v44 = vadd.f32 %v8880_v46, %v8879_v9  ;;  %v8882_v3 = vpop.f32.mrb[22].mxu0 }
 0x321   :  { %v8969_v6 = vadd.f32 %v8968_v36, %v8967_v42  ;;  %v8970_v47 = vpop.f32.mrb[22].mxu1  ;;  %v8883_v28 = vpop.f32.mrb[23].mxu0 }
 0x322   :  { %v8971_v2 = vpop.f32.mrb[23].mxu1  ;;  %v13248_v40 = vadd.f32 %v8883_v28, %v8882_v3 }
 0x323   :  { %v13251_v43 = vadd.f32 %v8969_v6, %v13155_v38  ;;  %v8972_v46 = vadd.f32 %v8971_v2, %v8970_v47  ;;  %5645 = vmatmul.mubr.bf16.gmra.mrb[128].mxu0 %v10366_v37  ;;  %v10369_v38 = vld [vmem:[%s14242_s0 + $0xdc8] ss:$28 sps:$4 sm:$0xff]   ;;  %v10380_v6 = vld [vmem:[%s14242_s0 + $0xa94] ss:$28 sps:$4 sm:$0xff]  }
 0x324   :  { %5516 = vmatmul.mubr.bf16.gmra.mrb[128].mxu1 %v10363_v58  ;;  %5652 = vmatprep.mubr.bf16.mxu0 %v10374_v26 }
 0x325   :  { %v13254_v9 = vadd.f32 %v8972_v46, %v13160_v34  ;;  %5523 = vmatprep.mubr.bf16.mxu1 %v10371_v45  ;;  %v10377_v34 = vld [vmem:[%s14242_s0 + $0xd2c] ss:$28 sps:$4 sm:$0xff]  }
 0x326   :  { %v9013_v42 = vpop.f32.mrb[24].mxu0 }
 0x327   :  { %14361 = vst [vmem:[#allocation52_spill] sm:$0xff] %v13254_v9  ;;  %v8973_v36 = vpop.f32.mrb[24].mxu1  ;;  %v9014_v19 = vpop.f32.mrb[25].mxu0 }
 0x328   :  { %v8974_v3 = vpop.f32.mrb[25].mxu1  ;;  %v9015_v28 = vadd.f32 %v9014_v19, %v9013_v42  ;;  %v9016_v62 = vpop.f32.mrb[26].mxu0 }
 0x329   :  { %v8975_v37 = vadd.f32 %v8974_v3, %v8973_v36  ;;  %v8976_v58 = vpop.f32.mrb[26].mxu1  ;;  %v9017_v26 = vpop.f32.mrb[27].mxu0 }
 0x32a   :  { %v8977_v47 = vpop.f32.mrb[27].mxu1  ;;  %v9018_v45 = vadd.f32 %v9017_v26, %v9016_v62  ;;  %v13269_v19 = vadd.f32 %v9015_v28, %v12994_v15  ;;  %v10375_v15 = vld [vmem:[%s14242_s0 + $0xd28] ss:$28 sps:$4 sm:$0xff]  }
 0x32b   :  { %v13272_v2 = vadd.f32 %v8975_v37, %v13177_v55  ;;  %v8978_v46 = vadd.f32 %v8977_v47, %v8976_v58  ;;  %5653 = vmatmul.mubr.bf16.gmra.mrb[132].mxu0 %v10372_v33  ;;  %v10378_v33 = vld [vmem:[%s14242_s0 + $0xa90] ss:$28 sps:$4 sm:$0xff]  }
 0x32c   :  { %5524 = vmatmul.mubr.bf16.gmra.mrb[132].mxu1 %v10369_v38  ;;  %5660 = vmatprep.mubr.bf16.mxu0 %v10377_v34  ;;  %v13275_v42 = vadd.f32 %v9018_v45, %v12997_v54  ;;  %v10383_v54 = vld [vmem:[%s14242_s0 + $0xd64] ss:$28 sps:$4 sm:$0xff]   ;;  %v10386_v58 = vld [vmem:[%s14242_s0 + $0xacc] ss:$28 sps:$4 sm:$0xff]  }
 0x32d   :  { %v13278_v36 = vadd.f32 %v8978_v46, %v13182_v41  ;;  %5725 = vmatprep.mubr.bf16.mxu1 %v10380_v6 }
 0x32e   :  { %v9019_v3 = vpop.f32.mrb[28].mxu0 }
 0x32f   :  { %14362 = vst [vmem:[#allocation53_spill] sm:$0xff] %v13278_v36  ;;  %v8979_v9 = vpop.f32.mrb[28].mxu1  ;;  %v9020_v62 = vpop.f32.mrb[29].mxu0 }
 0x330   :  { %v8980_v55 = vpop.f32.mrb[29].mxu1  ;;  %v9021_v28 = vadd.f32 %v9020_v62, %v9019_v3  ;;  %v9022_v37 = vpop.f32.mrb[30].mxu0 }
 0x331   :  { %v8981_v41 = vadd.f32 %v8980_v55, %v8979_v9  ;;  %v8982_v38 = vpop.f32.mrb[30].mxu1  ;;  %v9023_v34 = vpop.f32.mrb[31].mxu0 }
 0x332   :  { %v8983_v26 = vpop.f32.mrb[31].mxu1  ;;  %v9024_v6 = vadd.f32 %v9023_v34, %v9022_v37  ;;  %v4323_v47 = vadd.f32 %v9021_v28, %v13025_v31  ;;  %v10381_v31 = vld [vmem:[%s14242_s0 + $0xd60] ss:$28 sps:$4 sm:$0xff]  }
 0x333   :  { %v13294_v45 = vadd.f32 %v8981_v41, %v13199_v57  ;;  %v8984_v46 = vadd.f32 %v8983_v26, %v8982_v38  ;;  %5661 = vmatmul.mubr.bf16.gmra.mrb[136].mxu0 %v10375_v15  ;;  %v10384_v15 = vld [vmem:[%s14242_s0 + $0xac8] ss:$28 sps:$4 sm:$0xff]  }
 0x334   :  { %5726 = vmatmul.mubr.bf16.vlgmr.msra.gmra.mrb[136].mxu1 %v10378_v33  ;;  %5668 = vmatprep.mubr.bf16.mxu0 %v10383_v54  ;;  %v13297_v3 = vadd.f32 %v9024_v6, %v13028_v39  ;;  %v10389_v39 = vld [vmem:[%s14242_s0 + $0xd9c] ss:$28 sps:$4 sm:$0xff]   ;;  %v10392_v41 = vld [vmem:[%s14242_s0 + $0xb04] ss:$28 sps:$4 sm:$0xff]  }
 0x335   :  { %v13300_v9 = vadd.f32 %v8984_v46, %v13204_v7  ;;  %5733 = vmatprep.mubr.bf16.mxu1 %v10386_v58 }
 0x336   :  { %v9025_v62 = vpop.f32.mrb[32].mxu0 }
 0x337   :  { %v8985_v55 = vpop.f32.mrb[32].mxu1  ;;  %v9026_v36 = vpop.f32.mrb[33].mxu0 }
 0x338   :  { %v8986_v57 = vpop.f32.mrb[33].mxu1  ;;  %v9027_v28 = vadd.f32 %v9026_v36, %v9025_v62  ;;  %v9028_v37 = vpop.f32.mrb[34].mxu0 }
 0x339   :  { %v8987_v7 = vadd.f32 %v8986_v57, %v8985_v55  ;;  %v8988_v33 = vpop.f32.mrb[34].mxu1  ;;  %v9029_v54 = vpop.f32.mrb[35].mxu0 }
 0x33a   :  { %v8989_v38 = vpop.f32.mrb[35].mxu1  ;;  %v9030_v34 = vadd.f32 %v9029_v54, %v9028_v37  ;;  %v13315_v36 = vadd.f32 %v9027_v28, %v13053_v63  ;;  %v10387_v63 = vld [vmem:[%s14242_s0 + $0xd98] ss:$28 sps:$4 sm:$0xff]  }
 0x33b   :  { %v13318_v58 = vadd.f32 %v8987_v7, %v13218_v30  ;;  %v8990_v26 = vadd.f32 %v8989_v38, %v8988_v33  ;;  %5669 = vmatmul.mubr.bf16.gmra.mrb[140].mxu0 %v10381_v31  ;;  %v10390_v31 = vld [vmem:[%s14242_s0 + $0xb00] ss:$28 sps:$4 sm:$0xff]  }
 0x33c   :  { %5734 = vmatmul.mubr.bf16.gmra.mrb[140].mxu1 %v10384_v15  ;;  %5676 = vmatprep.mubr.bf16.mxu0 %v10389_v39  ;;  %v13321_v6 = vadd.f32 %v9030_v34, %v13056_v10  ;;  %v10395_v10 = vld [vmem:[%s14242_s0 + $0xdd4] ss:$28 sps:$4 sm:$0xff]   ;;  %v10398_v7 = vld [vmem:[%s14242_s0 + $0xb3c] ss:$28 sps:$4 sm:$0xff]  }
 0x33d   :  { %v13324_v46 = vadd.f32 %v8990_v26, %v13226_v5  ;;  %5741 = vmatprep.mubr.bf16.mxu1 %v10392_v41 }
 0x33e   :  { %v9031_v62 = vpop.f32.mrb[36].mxu0 }
 0x33f   :  { %v8991_v55 = vpop.f32.mrb[36].mxu1  ;;  %v9032_v57 = vpop.f32.mrb[37].mxu0 }
 0x340   :  { %v8992_v30 = vpop.f32.mrb[37].mxu1  ;;  %v9033_v28 = vadd.f32 %v9032_v57, %v9031_v62  ;;  %v9034_v37 = vpop.f32.mrb[38].mxu0 }
 0x341   :  { %v8993_v5 = vadd.f32 %v8992_v30, %v8991_v55  ;;  %v8994_v15 = vpop.f32.mrb[38].mxu1  ;;  %v9035_v39 = vpop.f32.mrb[39].mxu0 }
 0x342   :  { %v8995_v33 = vpop.f32.mrb[39].mxu1  ;;  %v9036_v54 = vadd.f32 %v9035_v39, %v9034_v37  ;;  %v4339_v41 = vadd.f32 %v9033_v28, %v13075_v25  ;;  %v10393_v25 = vld [vmem:[%s14242_s0 + $0xdd0] ss:$28 sps:$4 sm:$0xff]  }
 0x343   :  { %v13340_v38 = vadd.f32 %v8993_v5, %v13240_v44  ;;  %v8996_v34 = vadd.f32 %v8995_v33, %v8994_v15  ;;  %5677 = vmatmul.mubr.bf16.gmra.mrb[144].mxu0 %v10387_v63  ;;  %v10396_v63 = vld [vmem:[%s14242_s0 + $0xb38] ss:$28 sps:$4 sm:$0xff]  }
 0x344   :  { %5742 = vmatmul.mubr.bf16.gmra.mrb[144].mxu1 %v10390_v31  ;;  %5684 = vmatprep.mubr.bf16.mxu0 %v10395_v10  ;;  %v4342_v26 = vadd.f32 %v9036_v54, %v13078_v49  ;;  %v10402_v49 = vld [vmem:[%s14242_s0 + $0xa98] ss:$28 sps:$4 sm:$0xff]  }
 0x345   :  { %v13344_v62 = vadd.f32 %v8996_v34, %v13248_v40  ;;  %5749 = vmatprep.mubr.bf16.mxu1 %v10398_v7  ;;  %v10401_v15 = vld [vmem:[%s14242_s0 + $0xb74] ss:$28 sps:$4 sm:$0xff]  }
 0x346   :  { %v9037_v55 = vpop.f32.mrb[40].mxu0 }
 0x347   :  { %v9656_v57 = vpop.f32.mrb[40].mxu1  ;;  %v9038_v30 = vpop.f32.mrb[41].mxu0 }
 0x348   :  { %v4484_v28 = vadd.f32 %v9656_v57, %v4323_v47  ;;  %v9039_v44 = vadd.f32 %v9038_v30, %v9037_v55  ;;  %v4475_v37 = vpop.f32.mrb[41].mxu1  ;;  %v9040_v5 = vpop.f32.mrb[42].mxu0  ;;  %v14363_v47 = vmax.f32 %v11699_v51, %v12514_v14  ;;  %v14365_v30 = vmax.f32 %v11715_v0, %v12529_v13  ;;  %v10403_v0 = vld [vmem:[%s14242_s0 + $0xad0] ss:$28 sps:$4 sm:$0xff]  }
 0x349   :  { %v4476_v40 = vadd.f32 %v4475_v37, %v13269_v19  ;;  %v9657_v31 = vpop.f32.mrb[42].mxu1  ;;  %v9041_v10 = vpop.f32.mrb[43].mxu0  ;;  %v14364_v19 = vmax.f32 %v11707_v60, %v12520_v50 }
 0x34a   :  { %v13362_v39 = vmax.f32 %v14363_v47, %v4484_v28  ;;  %v4487_v7 = vadd.f32 %v9657_v31, %v13297_v3  ;;  %v9042_v33 = vadd.f32 %v9041_v10, %v9040_v5  ;;  %v4478_v54 = vpop.f32.mrb[43].mxu1  ;;  %v4347_v34 = vadd.f32 %v9039_v44, %v13097_v27 }
 0x34b   :  { %v13369_v55 = vmax.f32 %v14364_v19, %v4476_v40  ;;  %v4479_v57 = vadd.f32 %v4478_v54, %v13275_v42  ;;  %5685 = vmatmul.mubr.bf16.gmra.mrb[148].mxu0 %v10393_v25  ;;  %v14366_v27 = vmax.f32 %v11721_v12, %v12540_v24  ;;  %v10407_v12 = vld [vmem:[%s14242_s0 + $0xb08] ss:$28 sps:$4 sm:$0xff]   ;;  %v14368_v47 = vmax.f32 %v11740_v35, %v12566_v20 }
 0x34c   :  { %v13375_v51 = vmax.f32 %v14365_v30, %v4487_v7  ;;  %5750 = vmatmul.mubr.bf16.gmra.mrb[148].mxu1 %v10396_v63  ;;  %9690 = vmatprep.mubr.msk.bf16.mxu0 %vm1115_vm0, %v10402_v49  ;;  %v4350_v14 = vadd.f32 %v9042_v33, %v13100_v21  ;;  %v10399_v21 = vld [vmem:[%s14242_s0 + $0xb70] ss:$28 sps:$4 sm:$0xff]   ;;  %v14369_v33 = vmax.f32 %v11763_v59, %v12574_v32  ;;  %v10408_v59 = vld [vmem:[%s14242_s0 + $0xb40] ss:$28 sps:$4 sm:$0xff]  }
 0x34d   :  { %v13382_v3 = vmax.f32 %v14366_v27, %v4479_v57  ;;  %5757 = vmatprep.mubr.bf16.mxu1 %v10401_v15  ;;  %v10406_v63 = vld [vmem:[%s14242_s0 + $0xbac] ss:$28 sps:$4 sm:$0xff]  }
 0x34e   :  { %v9043_v60 = vpop.f32.mrb[44].mxu0 }
 0x34f   :  { %v9660_v50 = vpop.f32.mrb[44].mxu1  ;;  %v9044_v42 = vpop.f32.mrb[45].mxu0 }
 0x350   :  { %v4500_v13 = vadd.f32 %v9660_v50, %v4339_v41  ;;  %v9045_v25 = vadd.f32 %v9044_v42, %v9043_v60  ;;  %v4491_v28 = vpop.f32.mrb[45].mxu1  ;;  %v9046_v44 = vpop.f32.mrb[46].mxu0  ;;  %v14367_v41 = vmax.f32 %v11755_v56, %v12560_v16  ;;  %v10411_v60 = vld [vmem:[%s14242_s0 + $0xbe4] ss:$28 sps:$4 sm:$0xff]   ;;  %v14371_v50 = vmax.f32 %v11823_v8, %v12604_v53 }
 0x351   :  { %v4492_v24 = vadd.f32 %v4491_v28, %v13315_v36  ;;  %v9661_v37 = vpop.f32.mrb[46].mxu1  ;;  %v9047_v5 = vpop.f32.mrb[47].mxu0  ;;  %v14374_v53 = vld [vmem:[#allocation27_spill] sm:$0xff] }
 0x352   :  { %v13400_v49 = vmax.f32 %v14367_v41, %v4500_v13  ;;  %v4503_v40 = vadd.f32 %v9661_v37, %v4342_v26  ;;  %v9048_v31 = vadd.f32 %v9047_v5, %v9046_v44  ;;  %v4494_v10 = vpop.f32.mrb[47].mxu1  ;;  %v4355_v15 = vadd.f32 %v9045_v25, %v13119_v11 }
 0x353   :  { %v13406_v36 = vmax.f32 %v14368_v47, %v4492_v24  ;;  %v4495_v7 = vadd.f32 %v4494_v10, %v13321_v6  ;;  %9691 = vmatmul.mubr.msk.bf16.vlgmr.msra.gmra.mrb[152].mxu0 %vm1115_vm0, %v10403_v0  ;;  %v14370_v11 = vmax.f32 %v11750_v52, %v12585_v4  ;;  %v10412_v52 = vld [vmem:[%s14242_s0 + $0xb78] ss:$28 sps:$4 sm:$0xff]   ;;  %v14372_v44 = vmax.f32 %v11785_v22, %v12609_v23 }
 0x354   :  { %v13413_v56 = vmax.f32 %v14369_v33, %v4503_v40  ;;  %5758 = vmatmul.mubr.bf16.gmra.mrb[152].mxu1 %v10399_v21  ;;  %v4358_v16 = vadd.f32 %v9048_v31, %v13122_v61  ;;  %9694 = vmatprep.mubr.msk.bf16.mxu0 %vm1115_vm0, %v10407_v12  ;;  %v10404_v61 = vld [vmem:[%s14242_s0 + $0xba8] ss:$28 sps:$4 sm:$0xff]   ;;  %v14373_v12 = vmax.f32 %v11831_v17, %v12617_v18  ;;  %v10413_v17 = vld [vmem:[%s14242_s0 + $0xbb0] ss:$28 sps:$4 sm:$0xff]   ;;  %v10416_v10 = vld [vmem:[%s14242_s0 + $0xc1c] ss:$28 sps:$4 sm:$0xff]  }
 0x355   :  { %v13420_v35 = vmax.f32 %v14370_v11, %v4495_v7  ;;  %5765 = vmatprep.mubr.bf16.mxu1 %v10406_v63  ;;  %v14378_v11 = vld [vmem:[#allocation28_spill] sm:$0xff] }
 0x356   :  { %v9049_v20 = vpop.f32.mrb[48].mxu0 }
 0x357   :  { %v9664_v6 = vpop.f32.mrb[48].mxu1  ;;  %v9050_v26 = vpop.f32.mrb[49].mxu0 }
 0x358   :  { %v4516_v32 = vadd.f32 %v9664_v6, %v4355_v15  ;;  %v9051_v54 = vadd.f32 %v9050_v26, %v9049_v20  ;;  %v4507_v19 = vpop.f32.mrb[49].mxu1  ;;  %v9052_v57 = vpop.f32.mrb[50].mxu0  ;;  %v14376_v15 = vld [vmem:[#allocation44_spill] sm:$0xff] }
 0x359   :  { %v4508_v4 = vadd.f32 %v4507_v19, %v4347_v34  ;;  %v9665_v30 = vpop.f32.mrb[50].mxu1  ;;  %v9053_v27 = vpop.f32.mrb[51].mxu0  ;;  %v14381_v19 = vld [vmem:[#allocation4_spill] sm:$0xff] }
 0x35a   :  { %v13437_v42 = vmax.f32 %v14371_v50, %v4516_v32  ;;  %v4519_v0 = vadd.f32 %v9665_v30, %v4358_v16  ;;  %v9054_v13 = vadd.f32 %v9053_v27, %v9052_v57  ;;  %v4510_v25 = vpop.f32.mrb[51].mxu1  ;;  %v4363_v28 = vadd.f32 %v9051_v54, %v13141_v1  ;;  %v14377_v16 = vld [vmem:[#allocation3_spill] sm:$0xff]  ;;  %v14380_v32 = vld [vmem:[#allocation45_spill] sm:$0xff]  ;;  %v14385_v30 = vld [vmem:[#allocation30_spill] sm:$0xff] }
 0x35b   :  { %v13443_v34 = vmax.f32 %v14372_v44, %v4508_v4  ;;  %v4511_v21 = vadd.f32 %v4510_v25, %v4350_v14  ;;  %9695 = vmatmul.mubr.msk.bf16.gmra.mrb[156].mxu0 %vm1115_vm0, %v10408_v59  ;;  %v14375_v1 = vmax.f32 %v11792_v29, %v14374_v53  ;;  %v10417_v29 = vld [vmem:[%s14242_s0 + $0xbe8] ss:$28 sps:$4 sm:$0xff]   ;;  %v14379_v20 = vmax.f32 %v14377_v16, %v14378_v11  ;;  %v14382_v57 = vld [vmem:[#allocation29_spill] sm:$0xff]  ;;  %v14387_v44 = vld [vmem:[#allocation6_spill] sm:$0xff] }
 0x35c   :  { %v13449_v24 = vmax.f32 %v14373_v12, %v4519_v0  ;;  %5766 = vmatmul.mubr.bf16.gmra.mrb[156].mxu1 %v10404_v61  ;;  %v4366_v8 = vadd.f32 %v9054_v13, %v13144_v48  ;;  %9698 = vmatprep.mubr.msk.bf16.mxu0 %vm1115_vm0, %v10412_v52  ;;  %v10409_v48 = vld [vmem:[%s14242_s0 + $0xbe0] ss:$28 sps:$4 sm:$0xff]   ;;  %v14383_v61 = vmax.f32 %v14381_v19, %v14382_v57  ;;  %v14384_v4 = vld [vmem:[#allocation5_spill] sm:$0xff] }
 0x35d   :  { %v13456_v37 = vmax.f32 %v14375_v1, %v4511_v21  ;;  %5773 = vmatprep.mubr.bf16.mxu1 %v10411_v60  ;;  %v14386_v27 = vmax.f32 %v14384_v4, %v14385_v30  ;;  %v14388_v21 = vld [vmem:[#allocation31_spill] sm:$0xff] }
 0x35e   :  { %v9055_v22 = vpop.f32.mrb[52].mxu0  ;;  %v14389_v12 = vmax.f32 %v14387_v44, %v14388_v21  ;;  %v14398_v44 = vld [vmem:[#allocation48_spill] sm:$0xff] }
 0x35f   :  { %v9668_v23 = vpop.f32.mrb[52].mxu1  ;;  %v9056_v14 = vpop.f32.mrb[53].mxu0 }
 0x360   :  { %v9057_v18 = vadd.f32 %v9056_v14, %v9055_v22  ;;  %v4523_v5 = vpop.f32.mrb[53].mxu1  ;;  %v9058_v63 = vpop.f32.mrb[54].mxu0  ;;  %v10422_v14 = vld [vmem:[%s14242_s0 + $0xc58] ss:$28 sps:$4 sm:$0xff]  }
 0x361   :  { %v4524_v41 = vadd.f32 %v4523_v5, %v4363_v28  ;;  %v9669_v40 = vpop.f32.mrb[54].mxu1  ;;  %v9059_v31 = vpop.f32.mrb[55].mxu0  ;;  %v10418_v28 = vld [vmem:[%s14242_s0 + $0xc20] ss:$28 sps:$4 sm:$0xff]   ;;  %v10421_v5 = vld [vmem:[%s14242_s0 + $0xc54] ss:$28 sps:$4 sm:$0xff]  }
 0x362   :  { %v4371_v47 = vadd.f32 %v9057_v18, %v14376_v15  ;;  %v9060_v7 = vadd.f32 %v9059_v31, %v9058_v63  ;;  %v4526_v33 = vpop.f32.mrb[55].mxu1  ;;  %v14390_v63 = vld [vmem:[#allocation46_spill] sm:$0xff]  ;;  %v14391_v31 = vld [vmem:[#allocation47_spill] sm:$0xff] }
 0x363   :  { %v13474_v6 = vmax.f32 %v14379_v20, %v4524_v41  ;;  %v4527_v26 = vadd.f32 %v4526_v33, %v4366_v8  ;;  %9699 = vmatmul.mubr.msk.bf16.gmra.mrb[160].mxu0 %vm1115_vm0, %v10413_v17  ;;  %v14392_v15 = vld [vmem:[#allocation7_spill] sm:$0xff] }
 0x364   :  { %v4532_v59 = vadd.f32 %v9668_v23, %v4371_v47  ;;  %v4374_v54 = vadd.f32 %v9060_v7, %v14380_v32  ;;  %5774 = vmatmul.mubr.bf16.gmra.mrb[160].mxu1 %v10409_v48  ;;  %9702 = vmatprep.mubr.msk.bf16.mxu0 %vm1115_vm0, %v10417_v29  ;;  %v10414_v23 = vld [vmem:[%s14242_s0 + $0xc18] ss:$28 sps:$4 sm:$0xff]   ;;  %v14393_v47 = vld [vmem:[#allocation32_spill] sm:$0xff] }
 0x365   :  { %v13482_v52 = vmax.f32 %v14383_v61, %v4527_v26  ;;  %5781 = vmatprep.mubr.bf16.mxu1 %v10416_v10  ;;  %v14394_v7 = vmax.f32 %v14392_v15, %v14393_v47  ;;  %v14395_v32 = vld [vmem:[#allocation8_spill] sm:$0xff] }
 0x366   :  { %v13487_v60 = vmax.f32 %v14386_v27, %v4532_v59  ;;  %v4535_v50 = vadd.f32 %v9669_v40, %v4374_v54  ;;  %v9061_v0 = vpop.f32.mrb[56].mxu0  ;;  %v10423_v59 = vld [vmem:[%s14242_s0 + $0xc90] ss:$28 sps:$4 sm:$0xff]  }
 0x367   :  { %v9672_v13 = vpop.f32.mrb[56].mxu1  ;;  %v9062_v25 = vpop.f32.mrb[57].mxu0  ;;  %v14396_v54 = vld [vmem:[#allocation33_spill] sm:$0xff] }
 0x368   :  { %v13495_v8 = vmax.f32 %v14389_v12, %v4535_v50  ;;  %v9063_v53 = vadd.f32 %v9062_v25, %v9061_v0  ;;  %v4539_v1 = vpop.f32.mrb[57].mxu1  ;;  %v9064_v22 = vpop.f32.mrb[58].mxu0  ;;  %v14397_v19 = vmax.f32 %v14395_v32, %v14396_v54  ;;  %v10419_v27 = vld [vmem:[%s14242_s0 + $0xc50] ss:$28 sps:$4 sm:$0xff]   ;;  %v10430_v50 = vld [vmem:[%s14242_s0 + $0xcc8] ss:$28 sps:$4 sm:$0xff]  }
 0x369   :  { %v9673_v17 = vpop.f32.mrb[58].mxu1  ;;  %v9065_v18 = vpop.f32.mrb[59].mxu0  ;;  %v10429_v54 = vld [vmem:[%s14242_s0 + $0xcc4] ss:$28 sps:$4 sm:$0xff]  }
 0x36a   :  { %v4379_v48 = vadd.f32 %v9063_v53, %v14390_v63  ;;  %v9066_v29 = vadd.f32 %v9065_v18, %v9064_v22  ;;  %v4542_v41 = vpop.f32.mrb[59].mxu1  ;;  %v14399_v22 = vld [vmem:[#allocation49_spill] sm:$0xff]  ;;  %v14401_v18 = vld [vmem:[#allocation34_spill] sm:$0xff] }
 0x36b   :  { %9703 = vmatmul.mubr.msk.bf16.gmra.mrb[164].mxu0 %vm1115_vm0, %v10418_v28  ;;  %v10426_v28 = vld [vmem:[%s14242_s0 + $0xc8c] ss:$28 sps:$4 sm:$0xff]  }
 0x36c   :  { %v4540_v40 = vadd.f32 %v4539_v1, %v4379_v48  ;;  %v4382_v10 = vadd.f32 %v9066_v29, %v14391_v31  ;;  %5782 = vmatmul.mubr.bf16.gmra.mrb[164].mxu1 %v10414_v23  ;;  %9706 = vmatprep.mubr.msk.bf16.mxu0 %vm1115_vm0, %v10422_v14  ;;  %v14400_v14 = vld [vmem:[#allocation13_spill] sm:$0xff]  ;;  %v14404_v31 = vld [vmem:[#allocation14_spill] sm:$0xff] }
 0x36d   :  { %5789 = vmatprep.mubr.bf16.mxu1 %v10421_v5  ;;  %v14402_v5 = vmax.f32 %v14400_v14, %v14401_v18 }
 0x36e   :  { %v13513_v33 = vmax.f32 %v14394_v7, %v4540_v40  ;;  %v4543_v16 = vadd.f32 %v4542_v41, %v4382_v10  ;;  %v9067_v11 = vpop.f32.mrb[60].mxu0  ;;  %v14405_v10 = vld [vmem:[#allocation23_spill] sm:$0xff] }
 0x36f   :  { %v13515_v20 = vpop.f32.mrb[60].mxu1  ;;  %v9068_v26 = vpop.f32.mrb[61].mxu0  ;;  %v14406_v15 = vmax.f32 %v14404_v31, %v14405_v10  ;;  %v14415_v31 = vld [vmem:[#allocation25_spill] sm:$0xff] }
 0x370   :  { %v13523_v57 = vmax.f32 %v14397_v19, %v4543_v16  ;;  %v9069_v61 = vadd.f32 %v9068_v26, %v9067_v11  ;;  %v4555_v4 = vpop.f32.mrb[61].mxu1  ;;  %v9070_v30 = vpop.f32.mrb[62].mxu0  ;;  %v10438_v26 = vld [vmem:[%s14242_s0 + $0xd38] ss:$28 sps:$4 sm:$0xff]  }
 0x371   :  { %v9677_v0 = vpop.f32.mrb[62].mxu1  ;;  %v9071_v25 = vpop.f32.mrb[63].mxu0  ;;  %v14408_v19 = vld [vmem:[#allocation50_spill] sm:$0xff] }
 0x372   :  { %v4387_v21 = vadd.f32 %v9069_v61, %v14398_v44  ;;  %v9072_v12 = vadd.f32 %v9071_v25, %v9070_v30  ;;  %v4558_v53 = vpop.f32.mrb[63].mxu1  ;;  %v14409_v25 = vld [vmem:[#allocation51_spill] sm:$0xff] }
 0x373   :  { %9707 = vmatmul.mubr.msk.bf16.gmra.mrb[168].mxu0 %vm1115_vm0, %v10423_v59 }
 0x374   :  { %v4548_v1 = vadd.f32 %v9672_v13, %v4387_v21  ;;  %v4390_v23 = vadd.f32 %v9072_v12, %v14399_v22  ;;  %5790 = vmatmul.mubr.bf16.gmra.mrb[168].mxu1 %v10419_v27  ;;  %9710 = vmatprep.mubr.msk.bf16.mxu0 %vm1115_vm0, %v10430_v50  ;;  %v10431_v13 = vld [vmem:[%s14242_s0 + $0xd00] ss:$28 sps:$4 sm:$0xff]  }
 0x375   :  { %5797 = vmatprep.mubr.bf16.mxu1 %v10426_v28  ;;  %v14410_v12 = vld [vmem:[#allocation15_spill] sm:$0xff] }
 0x376   :  { %v13541_v63 = vmax.f32 %v14402_v5, %v4548_v1  ;;  %v4551_v48 = vadd.f32 %v9673_v17, %v4390_v23  ;;  %v9073_v29 = vpop.f32.mrb[64].mxu0  ;;  %v10424_v17 = vld [vmem:[%s14242_s0 + $0xc88] ss:$28 sps:$4 sm:$0xff]  }
 0x377   :  { %v13543_v41 = vpop.f32.mrb[64].mxu1  ;;  %v9074_v40 = vpop.f32.mrb[65].mxu0  ;;  %v14411_v1 = vld [vmem:[#allocation24_spill] sm:$0xff] }
 0x378   :  { %14403 = vst [vmem:[#allocation27_spill] sm:$0xff] %v13541_v63  ;;  %v13551_v47 = vmax.f32 %v14406_v15, %v4551_v48  ;;  %v9075_v7 = vadd.f32 %v9074_v40, %v9073_v29  ;;  %v4571_v16 = vpop.f32.mrb[65].mxu1  ;;  %v9076_v11 = vpop.f32.mrb[66].mxu0  ;;  %v14412_v22 = vmax.f32 %v14410_v12, %v14411_v1  ;;  %v10446_v40 = vld [vmem:[%s14242_s0 + $0xda8] ss:$28 sps:$4 sm:$0xff]  }
 0x379   :  { %v13559_v59 = vpop.f32.mrb[66].mxu1  ;;  %v9077_v32 = vpop.f32.mrb[67].mxu0 }
 0x37a   :  { %14407 = vst [vmem:[#allocation44_spill] sm:$0xff] %v13551_v47  ;;  %v4395_v61 = vadd.f32 %v9075_v7, %v14408_v19  ;;  %v9078_v30 = vadd.f32 %v9077_v32, %v9076_v11  ;;  %v4574_v27 = vpop.f32.mrb[67].mxu1 }
 0x37b   :  { %9711 = vmatmul.mubr.msk.bf16.gmra.mrb[172].mxu0 %vm1115_vm0, %v10431_v13  ;;  %v14414_v13 = vld [vmem:[#allocation16_spill] sm:$0xff] }
 0x37c   :  { %v4556_v50 = vadd.f32 %v4555_v4, %v4395_v61  ;;  %v4398_v28 = vadd.f32 %v9078_v30, %v14409_v25  ;;  %5798 = vmatmul.mubr.bf16.gmra.mrb[172].mxu1 %v10424_v17  ;;  %9714 = vmatprep.mubr.msk.bf16.mxu0 %vm1115_vm0, %v10438_v26  ;;  %v10439_v4 = vld [vmem:[%s14242_s0 + $0xd70] ss:$28 sps:$4 sm:$0xff]   ;;  %v14416_v10 = vmax.f32 %v14414_v13, %v14415_v31  ;;  %v10434_v17 = vld [vmem:[%s14242_s0 + $0xcfc] ss:$28 sps:$4 sm:$0xff]   ;;  %v14420_v25 = vld [vmem:[#allocation35_spill] sm:$0xff] }
 0x37d   :  { %5805 = vmatprep.mubr.bf16.mxu1 %v10429_v54  ;;  %v14418_v61 = vld [vmem:[#allocation52_spill] sm:$0xff]  ;;  %v10432_v13 = vld [vmem:[%s14242_s0 + $0xcf8] ss:$28 sps:$4 sm:$0xff]  }
 0x37e   :  { %v4559_v44 = vadd.f32 %v4558_v53, %v4398_v28  ;;  %v9079_v21 = vpop.f32.mrb[68].mxu0  ;;  %v13571_v23 = vmax.f32 %v14412_v22, %v4556_v50  ;;  %v10427_v53 = vld [vmem:[%s14242_s0 + $0xcc0] ss:$28 sps:$4 sm:$0xff]   ;;  %v14419_v50 = vld [vmem:[#allocation17_spill] sm:$0xff] }
 0x37f   :  { %v13573_v14 = vpop.f32.mrb[68].mxu1  ;;  %v9080_v18 = vpop.f32.mrb[69].mxu0  ;;  %v14421_v28 = vmax.f32 %v14419_v50, %v14420_v25  ;;  %v10447_v22 = vld [vmem:[%s14242_s0 + $0xde0] ss:$28 sps:$4 sm:$0xff]  }
 0x380   :  { %14413 = vst [vmem:[#allocation3_spill] sm:$0xff] %v13571_v23  ;;  %v9081_v5 = vadd.f32 %v9080_v18, %v9079_v21  ;;  %v13578_v48 = vpop.f32.mrb[69].mxu1  ;;  %v9082_v29 = vpop.f32.mrb[70].mxu0  ;;  %v13589_v15 = vmax.f32 %v14416_v10, %v4559_v44  ;;  %v14424_v18 = vld [vmem:[#allocation26_spill] sm:$0xff] }
 0x381   :  { %v13591_v7 = vpop.f32.mrb[70].mxu1  ;;  %v9083_v11 = vpop.f32.mrb[71].mxu0 }
 0x382   :  { %14417 = vst [vmem:[#allocation28_spill] sm:$0xff] %v13589_v15  ;;  %v4403_v26 = vadd.f32 %v9081_v5, %v13251_v43  ;;  %v9084_v32 = vadd.f32 %v9083_v11, %v9082_v29  ;;  %v13597_v54 = vpop.f32.mrb[71].mxu1  ;;  %v10437_v11 = vld [vmem:[%s14242_s0 + $0xd34] ss:$28 sps:$4 sm:$0xff]  }
 0x383   :  { %9715 = vmatmul.mubr.msk.bf16.gmra.mrb[176].mxu0 %vm1115_vm0, %v10439_v4 }
 0x384   :  { %v4564_v19 = vadd.f32 %v13515_v20, %v4403_v26  ;;  %v4406_v30 = vadd.f32 %v9084_v32, %v14418_v61  ;;  %5806 = vmatmul.mubr.bf16.gmra.mrb[176].mxu1 %v10427_v53  ;;  %9718 = vmatprep.mubr.msk.bf16.mxu0 %vm1115_vm0, %v10446_v40  ;;  %v14423_v20 = vld [vmem:[#allocation18_spill] sm:$0xff] }
 0x385   :  { %5813 = vmatprep.mubr.bf16.mxu1 %v10434_v17  ;;  %v14425_v4 = vmax.f32 %v14423_v20, %v14424_v18 }
 0x386   :  { %v13606_v44 = vmax.f32 %v14421_v28, %v4564_v19  ;;  %v4567_v21 = vadd.f32 %v9677_v0, %v4406_v30  ;;  %v9085_v43 = vpop.f32.mrb[72].mxu0  ;;  %v14427_v30 = vld [vmem:[#allocation53_spill] sm:$0xff] }
 0x387   :  { %v9143_v12 = vpop.f32.mrb[72].mxu1  ;;  %v9086_v1 = vpop.f32.mrb[73].mxu0 }
 0x388   :  { %14422 = vst [vmem:[#allocation45_spill] sm:$0xff] %v13606_v44  ;;  %v13614_v5 = vmax.f32 %v14425_v4, %v4567_v21  ;;  %v9087_v29 = vadd.f32 %v9086_v1, %v9085_v43  ;;  %v9144_v53 = vpop.f32.mrb[73].mxu1  ;;  %v9088_v40 = vpop.f32.mrb[74].mxu0  ;;  %v14428_v21 = vld [vmem:[#allocation19_spill] sm:$0xff]  ;;  %v14429_v43 = vld [vmem:[#allocation36_spill] sm:$0xff] }
 0x389   :  { %v13619_v0 = vadd.f32 %v9144_v53, %v9143_v12  ;;  %v9146_v31 = vpop.f32.mrb[74].mxu1  ;;  %v9089_v10 = vpop.f32.mrb[75].mxu0  ;;  %v14430_v12 = vmax.f32 %v14428_v21, %v14429_v43  ;;  %v14433_v53 = vld [vmem:[#allocation37_spill] sm:$0xff] }
 0x38a   :  { %14426 = vst [vmem:[#allocation4_spill] sm:$0xff] %v13614_v5  ;;  %v4411_v17 = vadd.f32 %v9087_v29, %v13272_v2  ;;  %v9090_v26 = vadd.f32 %v9089_v10, %v9088_v40  ;;  %v9147_v32 = vpop.f32.mrb[75].mxu1 }
 0x38b   :  { %v13625_v19 = vadd.f32 %v9147_v32, %v9146_v31  ;;  %9719 = vmatmul.mubr.msk.bf16.gmra.mrb[180].mxu0 %vm1115_vm0, %v10447_v22  ;;  %v14432_v22 = vld [vmem:[#allocation20_spill] sm:$0xff] }
 0x38c   :  { %v4572_v61 = vadd.f32 %v4571_v16, %v4411_v17  ;;  %v4414_v50 = vadd.f32 %v9090_v26, %v14427_v30  ;;  %5814 = vmatmul.mubr.bf16.gmra.mrb[180].mxu1 %v10432_v13  ;;  %v10435_v16 = vld [vmem:[%s14242_s0 + $0xd30] ss:$28 sps:$4 sm:$0xff]   ;;  %v14434_v40 = vmax.f32 %v14432_v22, %v14433_v53 }
 0x38d   :  { %5821 = vmatprep.mubr.bf16.mxu1 %v10437_v11  ;;  %v10442_v11 = vld [vmem:[%s14242_s0 + $0xd6c] ss:$28 sps:$4 sm:$0xff]  }
 0x38e   :  { %v4575_v25 = vadd.f32 %v4574_v27, %v4414_v50  ;;  %v9091_v28 = vpop.f32.mrb[76].mxu0  ;;  %v13632_v1 = vmax.f32 %v14430_v12, %v4572_v61 }
 0x38f   :  { %v9149_v20 = vpop.f32.mrb[76].mxu1  ;;  %v9092_v2 = vpop.f32.mrb[77].mxu0 }
 0x390   :  { %14431 = vst [vmem:[#allocation29_spill] sm:$0xff] %v13632_v1  ;;  %v9093_v18 = vadd.f32 %v9092_v2, %v9091_v28  ;;  %v9150_v4 = vpop.f32.mrb[77].mxu1  ;;  %v9094_v29 = vpop.f32.mrb[78].mxu0  ;;  %v13640_v13 = vmax.f32 %v14434_v40, %v4575_v25  ;;  %v14436_v25 = vld [vmem:[#allocation21_spill] sm:$0xff]  ;;  %v14437_v28 = vld [vmem:[#allocation38_spill] sm:$0xff] }
 0x391   :  { %v13642_v27 = vadd.f32 %v9150_v4, %v9149_v20  ;;  %v9152_v31 = vpop.f32.mrb[78].mxu1  ;;  %v9095_v10 = vpop.f32.mrb[79].mxu0  ;;  %v14438_v21 = vmax.f32 %v14436_v25, %v14437_v28  ;;  %v14441_v4 = vld [vmem:[#allocation39_spill] sm:$0xff] }
 0x392   :  { %14435 = vst [vmem:[#allocation5_spill] sm:$0xff] %v13640_v13  ;;  %v4419_v17 = vadd.f32 %v9093_v18, %v13294_v45  ;;  %v9096_v26 = vadd.f32 %v9095_v10, %v9094_v29  ;;  %v9153_v32 = vpop.f32.mrb[79].mxu1  ;;  %v14440_v18 = vld [vmem:[#allocation22_spill] sm:$0xff] }
 0x393   :  { %v13648_v61 = vadd.f32 %v9153_v32, %v9152_v31  ;;  %v14442_v29 = vmax.f32 %v14440_v18, %v14441_v4 }
 0x394   :  { %v4580_v30 = vadd.f32 %v13543_v41, %v4419_v17  ;;  %v4422_v50 = vadd.f32 %v9096_v26, %v13300_v9  ;;  %5822 = vmatmul.mubr.bf16.gmra.mrb[184].mxu1 %v10435_v16  ;;  %v10440_v16 = vld [vmem:[%s14242_s0 + $0xd68] ss:$28 sps:$4 sm:$0xff]  }
 0x395   :  { %5829 = vmatprep.mubr.bf16.mxu1 %v10442_v11 }
 0x396   :  { %v13655_v43 = vmax.f32 %v14438_v21, %v4580_v30  ;;  %v4583_v12 = vadd.f32 %v13559_v59, %v4422_v50  ;;  %v9097_v20 = vpop.f32.mrb[80].mxu0  ;;  %v10445_v59 = vld [vmem:[%s14242_s0 + $0xda4] ss:$28 sps:$4 sm:$0xff]   ;;  %v14444_v21 = vld [vmem:[#allocation10_spill] sm:$0xff] }
 0x397   :  { %v9155_v2 = vpop.f32.mrb[80].mxu1  ;;  %v9098_v45 = vpop.f32.mrb[81].mxu0 }
 0x398   :  { %14439 = vst [vmem:[#allocation30_spill] sm:$0xff] %v13655_v43  ;;  %v13661_v22 = vmax.f32 %v14442_v29, %v4583_v12  ;;  %v9099_v41 = vadd.f32 %v9098_v45, %v9097_v20  ;;  %v9156_v53 = vpop.f32.mrb[81].mxu1  ;;  %v9100_v9 = vpop.f32.mrb[82].mxu0  ;;  %v14445_v12 = vld [vmem:[#allocation40_spill] sm:$0xff] }
 0x399   :  { %v13666_v40 = vadd.f32 %v9156_v53, %v9155_v2  ;;  %v9158_v31 = vpop.f32.mrb[82].mxu1  ;;  %v9101_v10 = vpop.f32.mrb[83].mxu0  ;;  %v14446_v20 = vmax.f32 %v14444_v21, %v14445_v12 }
 0x39a   :  { %14443 = vst [vmem:[#allocation6_spill] sm:$0xff] %v13661_v22  ;;  %v4427_v11 = vadd.f32 %v9099_v41, %v13318_v58  ;;  %v9102_v17 = vadd.f32 %v9101_v10, %v9100_v9  ;;  %v9159_v26 = vpop.f32.mrb[83].mxu1  ;;  %v14449_v41 = vld [vmem:[#allocation41_spill] sm:$0xff]  ;;  %v10450_v10 = vld [vmem:[%s14242_s0 + $0xddc] ss:$28 sps:$4 sm:$0xff]  }
 0x39b   :  { %v13672_v32 = vadd.f32 %v9159_v26, %v9158_v31 }
 0x39c   :  { %v4588_v30 = vadd.f32 %v13578_v48, %v4427_v11  ;;  %v4430_v50 = vadd.f32 %v9102_v17, %v13324_v46  ;;  %5830 = vmatmul.mubr.bf16.gmra.mrb[188].mxu1 %v10440_v16  ;;  %v10443_v48 = vld [vmem:[%s14242_s0 + $0xda0] ss:$28 sps:$4 sm:$0xff]   ;;  %v14448_v46 = vld [vmem:[#allocation12_spill] sm:$0xff] }
 0x39d   :  { %5837 = vmatprep.mubr.bf16.mxu1 %v10445_v59  ;;  %v14450_v53 = vmax.f32 %v14448_v46, %v14449_v41 }
 0x39e   :  { %v4591_v25 = vadd.f32 %v13597_v54, %v4430_v50  ;;  %v9103_v28 = vpop.f32.mrb[84].mxu0  ;;  %v13680_v2 = vmax.f32 %v14446_v20, %v4588_v30 }
 0x39f   :  { %v9161_v45 = vpop.f32.mrb[84].mxu1  ;;  %v9104_v58 = vpop.f32.mrb[85].mxu0 }
 0x3a0   :  { %14447 = vst [vmem:[#allocation31_spill] sm:$0xff] %v13680_v2  ;;  %v9105_v18 = vadd.f32 %v9104_v58, %v9103_v28  ;;  %v9162_v4 = vpop.f32.mrb[85].mxu1  ;;  %v9106_v29 = vpop.f32.mrb[86].mxu0  ;;  %v13688_v9 = vmax.f32 %v14450_v53, %v4591_v25  ;;  %v14452_v25 = vld [vmem:[#allocation9_spill] sm:$0xff]  ;;  %v14453_v28 = vld [vmem:[#allocation42_spill] sm:$0xff] }
 0x3a1   :  { %v13690_v54 = vadd.f32 %v9162_v4, %v9161_v45  ;;  %v9164_v16 = vpop.f32.mrb[86].mxu1  ;;  %v9107_v31 = vpop.f32.mrb[87].mxu0  ;;  %v14454_v21 = vmax.f32 %v14452_v25, %v14453_v28  ;;  %v14457_v4 = vld [vmem:[#allocation43_spill] sm:$0xff] }
 0x3a2   :  { %14451 = vst [vmem:[#allocation46_spill] sm:$0xff] %v13688_v9  ;;  %v4435_v59 = vadd.f32 %v9105_v18, %v13340_v38  ;;  %v9108_v11 = vadd.f32 %v9107_v31, %v9106_v29  ;;  %v9165_v17 = vpop.f32.mrb[87].mxu1  ;;  %v14456_v18 = vld [vmem:[#allocation11_spill] sm:$0xff] }
 0x3a3   :  { %v13696_v26 = vadd.f32 %v9165_v17, %v9164_v16  ;;  %v14458_v29 = vmax.f32 %v14456_v18, %v14457_v4 }
 0x3a4   :  { %v4596_v30 = vadd.f32 %v13573_v14, %v4435_v59  ;;  %v4438_v50 = vadd.f32 %v9108_v11, %v13344_v62  ;;  %5838 = vmatmul.mubr.bf16.gmra.mrb[192].mxu1 %v10443_v48  ;;  %v10448_v48 = vld [vmem:[%s14242_s0 + $0xdd8] ss:$28 sps:$4 sm:$0xff]  }
 0x3a5   :  { %5845 = vmatprep.mubr.bf16.mxu1 %v10450_v10 }
 0x3a6   :  { %v13703_v12 = vmax.f32 %v14454_v21, %v4596_v30  ;;  %v4599_v20 = vadd.f32 %v13591_v7, %v4438_v50  ;;  %v9255_v45 = vpop.f32.mrb[88].mxu0 }
 0x3a7   :  { %v9167_v58 = vpop.f32.mrb[88].mxu1  ;;  %v9256_v38 = vpop.f32.mrb[89].mxu0 }
 0x3a8   :  { %14455 = vst [vmem:[#allocation47_spill] sm:$0xff] %v13703_v12  ;;  %v13709_v46 = vmax.f32 %v14458_v29, %v4599_v20  ;;  %v9168_v14 = vpop.f32.mrb[89].mxu1  ;;  %v9257_v41 = vadd.f32 %v9256_v38, %v9255_v45  ;;  %v9258_v62 = vpop.f32.mrb[90].mxu0 }
 0x3a9   :  { %v9169_v53 = vadd.f32 %v9168_v14, %v9167_v58  ;;  %v9170_v16 = vpop.f32.mrb[90].mxu1  ;;  %v9259_v31 = vpop.f32.mrb[91].mxu0 }
 0x3aa   :  { %14459 = vst [vmem:[#allocation7_spill] sm:$0xff] %v13709_v46  ;;  %v13715_v7 = vadd.f32 %v9257_v41, %v13619_v0  ;;  %v9171_v10 = vpop.f32.mrb[91].mxu1  ;;  %v9260_v59 = vadd.f32 %v9259_v31, %v9258_v62 }
 0x3ab   :  { %v9172_v11 = vadd.f32 %v9171_v10, %v9170_v16 }
 0x3ac   :  { %v13718_v17 = vadd.f32 %v9260_v59, %v13625_v19  ;;  %5846 = vmatmul.mubr.bf16.gmra.mrb[196].mxu1 %v10448_v48 }
 0x3ae   :  { %v9261_v30 = vpop.f32.mrb[92].mxu0 }
 0x3af   :  { %v9173_v50 = vpop.f32.mrb[92].mxu1  ;;  %v9262_v25 = vpop.f32.mrb[93].mxu0 }
 0x3b0   :  { %v9174_v28 = vpop.f32.mrb[93].mxu1  ;;  %v9263_v21 = vadd.f32 %v9262_v25, %v9261_v30  ;;  %v9264_v20 = vpop.f32.mrb[94].mxu0 }
 0x3b1   :  { %v9175_v45 = vadd.f32 %v9174_v28, %v9173_v50  ;;  %v9176_v58 = vpop.f32.mrb[94].mxu1  ;;  %v9265_v38 = vpop.f32.mrb[95].mxu0 }
 0x3b2   :  { %v13721_v18 = vadd.f32 %v9263_v21, %v13642_v27  ;;  %v9177_v0 = vpop.f32.mrb[95].mxu1  ;;  %v9266_v4 = vadd.f32 %v9265_v38, %v9264_v20 }
 0x3b3   :  { %v9178_v29 = vadd.f32 %v9177_v0, %v9176_v58 }
 0x3b4   :  { %v13724_v14 = vadd.f32 %v9266_v4, %v13648_v61 }
 0x3b6   :  { %v9267_v19 = vpop.f32.mrb[96].mxu0 }
 0x3b7   :  { %v9179_v41 = vpop.f32.mrb[96].mxu1  ;;  %v9268_v62 = vpop.f32.mrb[97].mxu0 }
 0x3b8   :  { %v9180_v48 = vpop.f32.mrb[97].mxu1  ;;  %v9269_v16 = vadd.f32 %v9268_v62, %v9267_v19  ;;  %v9270_v31 = vpop.f32.mrb[98].mxu0 }
 0x3b9   :  { %v9181_v10 = vadd.f32 %v9180_v48, %v9179_v41  ;;  %v9182_v59 = vpop.f32.mrb[98].mxu1  ;;  %v9271_v30 = vpop.f32.mrb[99].mxu0 }
 0x3ba   :  { %v13727_v50 = vadd.f32 %v9269_v16, %v13666_v40  ;;  %v9183_v27 = vpop.f32.mrb[99].mxu1  ;;  %v9272_v25 = vadd.f32 %v9271_v30, %v9270_v31 }
 0x3bb   :  { %v9184_v28 = vadd.f32 %v9183_v27, %v9182_v59 }
 0x3bc   :  { %v13730_v21 = vadd.f32 %v9272_v25, %v13672_v32 }
 0x3be   :  { %v9273_v61 = vpop.f32.mrb[100].mxu0 }
 0x3bf   :  { %v9185_v20 = vpop.f32.mrb[100].mxu1  ;;  %v9274_v58 = vpop.f32.mrb[101].mxu0 }
 0x3c0   :  { %v9186_v38 = vpop.f32.mrb[101].mxu1  ;;  %v9275_v0 = vadd.f32 %v9274_v58, %v9273_v61  ;;  %v9276_v4 = vpop.f32.mrb[102].mxu0 }
 0x3c1   :  { %v9187_v19 = vadd.f32 %v9186_v38, %v9185_v20  ;;  %v9188_v62 = vpop.f32.mrb[102].mxu1  ;;  %v9277_v41 = vpop.f32.mrb[103].mxu0 }
 0x3c2   :  { %v13733_v48 = vadd.f32 %v9275_v0, %v13690_v54  ;;  %v9189_v40 = vpop.f32.mrb[103].mxu1  ;;  %v9278_v16 = vadd.f32 %v9277_v41, %v9276_v4 }
 0x3c3   :  { %v9190_v46 = vadd.f32 %v9189_v40, %v9188_v62 }
 0x3c4   :  { %v13736_v31 = vadd.f32 %v9278_v16, %v13696_v26 }
 0x3c6   :  { %v9279_v32 = vpop.f32.mrb[104].mxu0 }
 0x3c7   :  { %v9191_v59 = vpop.f32.mrb[104].mxu1  ;;  %v9280_v30 = vpop.f32.mrb[105].mxu0 }
 0x3c8   :  { %v9192_v27 = vpop.f32.mrb[105].mxu1  ;;  %v9281_v25 = vadd.f32 %v9280_v30, %v9279_v32  ;;  %v9282_v12 = vpop.f32.mrb[106].mxu0 }
 0x3c9   :  { %v9193_v61 = vadd.f32 %v9192_v27, %v9191_v59  ;;  %v9194_v58 = vpop.f32.mrb[106].mxu1  ;;  %v9283_v20 = vpop.f32.mrb[107].mxu0 }
 0x3ca   :  { %v13738_v38 = vadd.f32 %v9281_v25, %v9169_v53  ;;  %v9195_v9 = vpop.f32.mrb[107].mxu1  ;;  %v9284_v54 = vadd.f32 %v9283_v20, %v9282_v12 }
 0x3cb   :  { %v9196_v0 = vadd.f32 %v9195_v9, %v9194_v58 }
 0x3cc   :  { %v13740_v2 = vadd.f32 %v9284_v54, %v9172_v11 }
 0x3ce   :  { %v9285_v4 = vpop.f32.mrb[108].mxu0 }
 0x3cf   :  { %v9197_v62 = vpop.f32.mrb[108].mxu1  ;;  %v9286_v26 = vpop.f32.mrb[109].mxu0 }
 0x3d0   :  { %v9198_v41 = vpop.f32.mrb[109].mxu1  ;;  %v9287_v40 = vadd.f32 %v9286_v26, %v9285_v4  ;;  %v9288_v16 = vpop.f32.mrb[110].mxu0 }
 0x3d1   :  { %v9199_v22 = vadd.f32 %v9198_v41, %v9197_v62  ;;  %v9200_v43 = vpop.f32.mrb[110].mxu1  ;;  %v9289_v32 = vpop.f32.mrb[111].mxu0 }
 0x3d2   :  { %v13742_v30 = vadd.f32 %v9287_v40, %v9175_v45  ;;  %v9201_v59 = vpop.f32.mrb[111].mxu1  ;;  %v9290_v27 = vadd.f32 %v9289_v32, %v9288_v16 }
 0x3d3   :  { %v9202_v53 = vadd.f32 %v9201_v59, %v9200_v43 }
 0x3d4   :  { %v13744_v25 = vadd.f32 %v9290_v27, %v9178_v29 }
 0x3d6   :  { %v9291_v12 = vpop.f32.mrb[112].mxu0 }
 0x3d7   :  { %v9203_v9 = vpop.f32.mrb[112].mxu1  ;;  %v9292_v11 = vpop.f32.mrb[113].mxu0 }
 0x3d8   :  { %v9204_v58 = vpop.f32.mrb[113].mxu1  ;;  %v9293_v20 = vadd.f32 %v9292_v11, %v9291_v12  ;;  %v9294_v54 = vpop.f32.mrb[114].mxu0 }
 0x3d9   :  { %v13746_v13 = vadd.f32 %v9204_v58, %v9203_v9  ;;  %v9206_v4 = vpop.f32.mrb[114].mxu1  ;;  %v9295_v26 = vpop.f32.mrb[115].mxu0 }
 0x3da   :  { %v13748_v62 = vadd.f32 %v9293_v20, %v9181_v10  ;;  %v9207_v41 = vpop.f32.mrb[115].mxu1  ;;  %v9296_v45 = vadd.f32 %v9295_v26, %v9294_v54 }
 0x3db   :  { %v9208_v40 = vadd.f32 %v9207_v41, %v9206_v4 }
 0x3dc   :  { %v13750_v1 = vadd.f32 %v9296_v45, %v9184_v28 }
 0x3de   :  { %v9297_v43 = vpop.f32.mrb[116].mxu0 }
 0x3df   :  { %v9209_v29 = vpop.f32.mrb[116].mxu1  ;;  %v9298_v16 = vpop.f32.mrb[117].mxu0 }
 0x3e0   :  { %v9210_v32 = vpop.f32.mrb[117].mxu1  ;;  %v9299_v59 = vadd.f32 %v9298_v16, %v9297_v43  ;;  %v9300_v27 = vpop.f32.mrb[118].mxu0 }
 0x3e1   :  { %v13752_v5 = vadd.f32 %v9210_v32, %v9209_v29  ;;  %v9212_v12 = vpop.f32.mrb[118].mxu1  ;;  %v9301_v9 = vpop.f32.mrb[119].mxu0 }
 0x3e2   :  { %v13754_v11 = vadd.f32 %v9299_v59, %v9187_v19  ;;  %v9213_v58 = vpop.f32.mrb[119].mxu1  ;;  %v9302_v10 = vadd.f32 %v9301_v9, %v9300_v27 }
 0x3e3   :  { %v9214_v20 = vadd.f32 %v9213_v58, %v9212_v12 }
 0x3e4   :  { %v13756_v44 = vadd.f32 %v9302_v10, %v9190_v46 }
 0x3e6   :  { %v9303_v54 = vpop.f32.mrb[120].mxu0 }
 0x3e7   :  { %v9215_v28 = vpop.f32.mrb[120].mxu1  ;;  %v9304_v4 = vpop.f32.mrb[121].mxu0 }
 0x3e8   :  { %v9216_v26 = vpop.f32.mrb[121].mxu1  ;;  %v9305_v41 = vadd.f32 %v9304_v4, %v9303_v54  ;;  %v9306_v45 = vpop.f32.mrb[122].mxu0 }
 0x3e9   :  { %v13758_v15 = vadd.f32 %v9216_v26, %v9215_v28  ;;  %v9218_v43 = vpop.f32.mrb[122].mxu1  ;;  %v9307_v29 = vpop.f32.mrb[123].mxu0 }
 0x3ea   :  { %v13760_v16 = vadd.f32 %v9305_v41, %v9193_v61  ;;  %v9219_v32 = vpop.f32.mrb[123].mxu1  ;;  %v9308_v19 = vadd.f32 %v9307_v29, %v9306_v45 }
 0x3eb   :  { %v13762_v59 = vadd.f32 %v9219_v32, %v9218_v43  ;;  %v10451_v43 = vld [vmem:[%s14243_s3 + $0xc0] sm:$0xff]  }
 0x3ec   :  { %v13764_v27 = vadd.f32 %v9308_v19, %v9196_v0  ;;  %9503 = vmatprep.subr.bf16.mxu1 %v10451_v43 }
 0x3ee   :  { %v9309_v46 = vpop.f32.mrb[124].mxu0 }
 0x3ef   :  { %v9221_v12 = vpop.f32.mrb[124].mxu1  ;;  %v9310_v9 = vpop.f32.mrb[125].mxu0 }
 0x3f0   :  { %v9222_v58 = vpop.f32.mrb[125].mxu1  ;;  %v9311_v10 = vadd.f32 %v9310_v9, %v9309_v46  ;;  %v9312_v23 = vpop.f32.mrb[126].mxu0 }
 0x3f1   :  { %v13766_v54 = vadd.f32 %v9222_v58, %v9221_v12  ;;  %v9224_v28 = vpop.f32.mrb[126].mxu1  ;;  %v9313_v4 = vpop.f32.mrb[127].mxu0 }
 0x3f2   :  { %v13768_v26 = vadd.f32 %v9311_v10, %v9199_v22  ;;  %v9225_v61 = vpop.f32.mrb[127].mxu1  ;;  %v9314_v41 = vadd.f32 %v9313_v4, %v9312_v23  ;;  %v10452_v22 = vld [vmem:[%s14243_s3 + $0x80] sm:$0xff]  }
 0x3f3   :  { %v13770_v47 = vadd.f32 %v9225_v61, %v9224_v28  ;;  %9504 = vmatpush3.bf16.msra.mxu1 %v10452_v22 }
 0x3f4   :  { %14460 = vst [vmem:[#allocation32_spill] sm:$0xff] %v13768_v26  ;;  %v13772_v45 = vadd.f32 %v9314_v41, %v9202_v53 }
 0x3f6   :  { %14461 = vst [vmem:[#allocation8_spill] sm:$0xff] %v13772_v45  ;;  %v9315_v0 = vpop.f32.mrb[128].mxu0 }
 0x3f7   :  { %v9227_v29 = vpop.f32.mrb[128].mxu1  ;;  %v9316_v32 = vpop.f32.mrb[129].mxu0 }
 0x3f8   :  { %v9228_v19 = vpop.f32.mrb[129].mxu1  ;;  %v9317_v46 = vadd.f32 %v9316_v32, %v9315_v0  ;;  %v9318_v12 = vpop.f32.mrb[130].mxu0 }
 0x3f9   :  { %v13780_v23 = vadd.f32 %v9228_v19, %v9227_v29  ;;  %v9230_v9 = vpop.f32.mrb[130].mxu1  ;;  %v9319_v53 = vpop.f32.mrb[131].mxu0 }
 0x3fa   :  { %v13783_v58 = vadd.f32 %v9317_v46, %v13746_v13  ;;  %v9231_v10 = vpop.f32.mrb[131].mxu1  ;;  %v9320_v28 = vadd.f32 %v9319_v53, %v9318_v12 }
 0x3fb   :  { %v13785_v4 = vadd.f32 %v9231_v10, %v9230_v9 }
 0x3fc   :  { %v13787_v61 = vadd.f32 %v9320_v28, %v9208_v40  ;;  %v10453_v40 = vld [vmem:[%s14243_s3 + $0xc8] sm:$0xff]  }
 0x3fd   :  { %9505 = vmatprep.subr.bf16.mxu1 %v10453_v40 }
 0x3fe   :  { %v9321_v41 = vpop.f32.mrb[132].mxu0 }
 0x3ff   :  { %v9233_v0 = vpop.f32.mrb[132].mxu1  ;;  %v9322_v43 = vpop.f32.mrb[133].mxu0 }
 0x400   :  { %v9234_v32 = vpop.f32.mrb[133].mxu1  ;;  %v9323_v63 = vadd.f32 %v9322_v43, %v9321_v41  ;;  %v9324_v45 = vpop.f32.mrb[134].mxu0  ;;  %v10454_v41 = vld [vmem:[%s14243_s3 + $0x88] sm:$0xff]  }
 0x401   :  { %v13789_v29 = vadd.f32 %v9234_v32, %v9233_v0  ;;  %v9236_v19 = vpop.f32.mrb[134].mxu1  ;;  %v9325_v26 = vpop.f32.mrb[135].mxu0  ;;  %9506 = vmatpush3.bf16.msra.mxu1 %v10454_v41 }
 0x402   :  { %v13792_v13 = vadd.f32 %v9323_v63, %v13752_v5  ;;  %v9237_v46 = vpop.f32.mrb[135].mxu1  ;;  %v9326_v12 = vadd.f32 %v9325_v26, %v9324_v45 }
 0x403   :  { %v13794_v22 = vadd.f32 %v9237_v46, %v9236_v19 }
 0x404   :  { %v13796_v9 = vadd.f32 %v9326_v12, %v9214_v20 }
 0x406   :  { %v9327_v53 = vpop.f32.mrb[136].mxu0 }
 0x407   :  { %v9367_v10 = vpop.f32.mrb[136].mxu1  ;;  %v9328_v28 = vpop.f32.mrb[137].mxu0 }
 0x408   :  { %v9329_v63 = vadd.f32 %v9328_v28, %v9327_v53  ;;  %v9368_v5 = vpop.f32.mrb[137].mxu1  ;;  %v9330_v0 = vpop.f32.mrb[138].mxu0 }
 0x409   :  { %v9369_v26 = vadd.f32 %v9368_v5, %v9367_v10  ;;  %v9370_v45 = vpop.f32.mrb[138].mxu1  ;;  %v9331_v43 = vpop.f32.mrb[139].mxu0 }
 0x40a   :  { %v13805_v20 = vadd.f32 %v9329_v63, %v13758_v15  ;;  %v9332_v32 = vadd.f32 %v9331_v43, %v9330_v0  ;;  %v9371_v19 = vpop.f32.mrb[139].mxu1  ;;  %v10455_v15 = vld [vmem:[%s14243_s3 + $0xd0] sm:$0xff]  }
 0x40b   :  { %v9372_v46 = vadd.f32 %v9371_v19, %v9370_v45  ;;  %v13808_v12 = vadd.f32 %v9369_v26, %v13715_v7  ;;  %9507 = vmatprep.subr.bf16.mxu1 %v10455_v15  ;;  %v10461_v15 = vld [vmem:[%s14243_s3 + $0xd8] sm:$0xff]  }
 0x40c   :  { %v13811_v40 = vadd.f32 %v9332_v32, %v13762_v59  ;;  %v10456_v59 = vld [vmem:[%s14243_s3 + $0x90] sm:$0xff]  }
 0x40d   :  { %v13814_v53 = vadd.f32 %v9372_v46, %v13718_v17  ;;  %9508 = vmatpush3.bf16.msra.mxu1 %v10456_v59 }
 0x40e   :  { %v9333_v28 = vpop.f32.mrb[140].mxu0  ;;  %9509 = vmatprep.subr.bf16.mxu1 %v10461_v15 }
 0x40f   :  { %v9373_v10 = vpop.f32.mrb[140].mxu1  ;;  %v9334_v5 = vpop.f32.mrb[141].mxu0 }
 0x410   :  { %v9335_v41 = vadd.f32 %v9334_v5, %v9333_v28  ;;  %v9374_v63 = vpop.f32.mrb[141].mxu1  ;;  %v9336_v0 = vpop.f32.mrb[142].mxu0  ;;  %v10457_v28 = vld [vmem:[%s14243_s3 + $0x40] sm:$0xff]   ;;  %v10459_v5 = vld [vmem:[%s14243_s3 + $0x48] sm:$0xff]  }
 0x411   :  { %v9375_v45 = vadd.f32 %v9374_v63, %v9373_v10  ;;  %v9376_v43 = vpop.f32.mrb[142].mxu1  ;;  %v9337_v7 = vpop.f32.mrb[143].mxu0  ;;  %v10458_v10 = vld [vmem:[%s14243_s3] sm:$0xff]   ;;  %9481 = vmatprep.subr.bf16.mxu0 %v10457_v28  ;;  %v10463_v63 = vld [vmem:[%s14243_s3 + $0x98] sm:$0xff]  }
 0x412   :  { %v13823_v17 = vadd.f32 %v9335_v41, %v13766_v54  ;;  %v9338_v26 = vadd.f32 %v9337_v7, %v9336_v0  ;;  %v9377_v32 = vpop.f32.mrb[143].mxu1  ;;  %9482 = vmatpush3.bf16.msra.mxu0 %v10458_v10  ;;  %9510 = vmatpush3.bf16.msra.mxu1 %v10463_v63 }
 0x413   :  { %v9378_v19 = vadd.f32 %v9377_v32, %v9376_v43  ;;  %v5736_v46 = vadd.f32 %v9375_v45, %v13721_v18  ;;  %v10460_v18 = vld [vmem:[%s14243_s3 + $0x8] sm:$0xff]   ;;  %9483 = vmatprep.subr.bf16.mxu0 %v10459_v5 }
 0x414   :  { %14462 = vst [vmem:[#allocation33_spill] sm:$0xff] %v13823_v17  ;;  %v13836_v54 = vadd.f32 %v9338_v26, %v13770_v47  ;;  %v10462_v47 = vld [vmem:[%s14243_s3 + $0x50] sm:$0xff]  }
 0x415   :  { %v5739_v41 = vadd.f32 %v9378_v19, %v13724_v14 }
 0x416   :  { %14463 = vst [vmem:[#allocation48_spill] sm:$0xff] %v13836_v54  ;;  %v9339_v0 = vpop.f32.mrb[144].mxu0  ;;  %9484 = vmatpush3.bf16.msra.mxu0 %v10460_v18 }
 0x417   :  { %v9379_v45 = vpop.f32.mrb[144].mxu1  ;;  %v9340_v43 = vpop.f32.mrb[145].mxu0  ;;  %9485 = vmatprep.subr.bf16.mxu0 %v10462_v47 }
 0x418   :  { %v9341_v7 = vadd.f32 %v9340_v43, %v9339_v0  ;;  %v9380_v59 = vpop.f32.mrb[145].mxu1  ;;  %v9342_v26 = vpop.f32.mrb[146].mxu0 }
 0x419   :  { %v9381_v14 = vadd.f32 %v9380_v59, %v9379_v45  ;;  %v9382_v32 = vpop.f32.mrb[146].mxu1  ;;  %v9343_v19 = vpop.f32.mrb[147].mxu0 }
 0x41a   :  { %v13852_v28 = vadd.f32 %v9341_v7, %v13780_v23  ;;  %v9344_v54 = vadd.f32 %v9343_v19, %v9342_v26  ;;  %v9383_v10 = vpop.f32.mrb[147].mxu1 }
 0x41b   :  { %v9384_v15 = vadd.f32 %v9383_v10, %v9382_v32  ;;  %v13855_v17 = vadd.f32 %v9381_v14, %v13727_v50  ;;  %v10464_v50 = vld [vmem:[%s14243_s3 + $0x10] sm:$0xff]   ;;  %v10465_v10 = vld [vmem:[%s14243_s3 + $0x58] sm:$0xff]  }
 0x41c   :  { %v13858_v5 = vadd.f32 %v9344_v54, %v13785_v4  ;;  %9486 = vmatpush3.bf16.msra.mxu0 %v10464_v50 }
 0x41d   :  { %v13861_v63 = vadd.f32 %v9384_v15, %v13730_v21  ;;  %9487 = vmatprep.subr.bf16.mxu0 %v10465_v10 }
 0x41e   :  { %v9345_v0 = vpop.f32.mrb[148].mxu0 }
 0x41f   :  { %v9385_v45 = vpop.f32.mrb[148].mxu1  ;;  %v9346_v43 = vpop.f32.mrb[149].mxu0 }
 0x420   :  { %v9347_v59 = vadd.f32 %v9346_v43, %v9345_v0  ;;  %v9386_v23 = vpop.f32.mrb[149].mxu1  ;;  %v9348_v7 = vpop.f32.mrb[150].mxu0 }
 0x421   :  { %v9387_v26 = vadd.f32 %v9386_v23, %v9385_v45  ;;  %v9388_v19 = vpop.f32.mrb[150].mxu1  ;;  %v9349_v18 = vpop.f32.mrb[151].mxu0  ;;  %v13883_v45 = vld [vmem:[%s14244_s2] ss:$0 sm:$0xff] }
 0x422   :  { %v13867_v47 = vadd.f32 %v9347_v59, %v13789_v29  ;;  %v9350_v4 = vadd.f32 %v9349_v18, %v9348_v7  ;;  %v9389_v54 = vpop.f32.mrb[151].mxu1  ;;  %v10466_v29 = vld [vmem:[%s14243_s3 + $0x18] sm:$0xff]  }
 0x423   :  { %v9390_v21 = vadd.f32 %v9389_v54, %v9388_v19  ;;  %v5752_v14 = vadd.f32 %v9387_v26, %v13733_v48  ;;  %9488 = vmatpush3.bf16.msra.mxu0 %v10466_v29 }
 0x424   :  { %v13871_v32 = vadd.f32 %v9350_v4, %v13794_v22 }
 0x425   :  { %v5755_v15 = vadd.f32 %v9390_v21, %v13736_v31  ;;  %v10467_v31 = vld [vmem:[%s14243_s3 + $0x60] sm:$0xff]  }
 0x426   :  { %v9692_v0 = vpop.f32.mrb[152].mxu0  ;;  %9489 = vmatprep.subr.bf16.mxu0 %v10467_v31 }
 0x427   :  { %v9391_v48 = vpop.f32.mrb[152].mxu1  ;;  %v5897_v22 = vadd.f32 %v9692_v0, %v5736_v46  ;;  %v5888_v43 = vpop.f32.mrb[153].mxu0  ;;  %v10468_v46 = vld [vmem:[%s14243_s3 + $0x20] sm:$0xff]  }
 0x428   :  { %v9392_v59 = vpop.f32.mrb[153].mxu1  ;;  %v5889_v23 = vadd.f32 %v5888_v43, %v13808_v12  ;;  %v9693_v7 = vpop.f32.mrb[154].mxu0  ;;  %9490 = vmatpush3.bf16.msra.mxu0 %v10468_v46 }
 0x429   :  { %v6017_v26 = vmax.f32 %v13362_v39, %v5897_v22  ;;  %v9393_v19 = vadd.f32 %v9392_v59, %v9391_v48  ;;  %v9394_v18 = vpop.f32.mrb[154].mxu1  ;;  %v5900_v50 = vadd.f32 %v9693_v7, %v5739_v41  ;;  %v5891_v4 = vpop.f32.mrb[155].mxu0  ;;  %v10472_v7 = vld [vmem:[%s14243_s3 + $0x70] sm:$0xff]  }
 0x42a   :  { %v6015_v54 = vmax.f32 %v13369_v55, %v5889_v23  ;;  %v9395_v21 = vpop.f32.mrb[155].mxu1  ;;  %v5892_v12 = vadd.f32 %v5891_v4, %v13814_v53  ;;  %v10469_v55 = vld [vmem:[%s14243_s3 + $0x68] sm:$0xff]  }
 0x42b   :  { %v6018_v10 = vmax.f32 %v13375_v51, %v5900_v50  ;;  %v9396_v29 = vadd.f32 %v9395_v21, %v9394_v18  ;;  %v6056_v0 = vadd.f32 %v13883_v45, %v6017_v26  ;;  %v13898_v39 = vadd.f32 %v9393_v19, %v13738_v38  ;;  %v10470_v38 = vld [vmem:[%s14243_s3 + $0x28] sm:$0xff]   ;;  %9491 = vmatprep.subr.bf16.mxu0 %v10469_v55  ;;  %v10474_v50 = vld [vmem:[%s14243_s3 + $0x30] sm:$0xff]  }
 0x42c   :  { %v6054_v41 = vadd.f32 %v13883_v45, %v6015_v54  ;;  %v6016_v48 = vmax.f32 %v13382_v3, %v5892_v12  ;;  %v10471_v3 = vld [vmem:[%s14243_s3 + $0xe0] sm:$0xff]   ;;  %9492 = vmatpush3.bf16.msra.mxu0 %v10470_v38 }
 0x42d   :  { %v6088_v53 = vmax.f32 %v6056_v0, 0.0  ;;  %v6057_v22 = vadd.f32 %v13883_v45, %v6018_v10  ;;  %v13907_v51 = vadd.f32 %v9396_v29, %v13740_v2  ;;  %v10473_v2 = vld [vmem:[%s14243_s3 + $0xa0] sm:$0xff]   ;;  %9511 = vmatprep.subr.bf16.mxu1 %v10471_v3  ;;  %9493 = vmatprep.subr.bf16.mxu0 %v10472_v7 }
 0x42e   :  { %v6086_v43 = vmax.f32 %v6054_v41, 0.0  ;;  %v6055_v59 = vadd.f32 %v13883_v45, %v6016_v48  ;;  %v9696_v23 = vpop.f32.mrb[156].mxu0  ;;  %9512 = vmatpush3.bf16.msra.mxu1 %v10473_v2 }
 0x42f   :  { %v9397_v31 = vpop.f32.mrb[156].mxu1  ;;  %v5913_v26 = vadd.f32 %v9696_v23, %v5752_v14  ;;  %v5904_v19 = vpop.f32.mrb[157].mxu0  ;;  %6123 = vrot.lane.b32.xlu1 %v6088_v53, %s10671_s17  ;;  %v6089_v18 = vmax.f32 %v6057_v22, 0.0  ;;  %v10475_v14 = vld [vmem:[%s14243_s3 + $0x78] sm:$0xff]  }
 0x430   :  { %v6087_v4 = vmax.f32 %v6055_v59, 0.0  ;;  %v9398_v46 = vpop.f32.mrb[157].mxu1  ;;  %v5905_v54 = vadd.f32 %v5904_v19, %v13855_v17  ;;  %v9697_v21 = vpop.f32.mrb[158].mxu0  ;;  %6119 = vst.msk [vmem:[#allocation2] sm:$0xff] %vm6118_vm1, %v6086_v43  ;;  %v10476_v53 = vld [vmem:[%s14243_s3 + $0x38] sm:$0xff]   ;;  %9494 = vmatpush3.bf16.msra.mxu0 %v10474_v50 }
 0x431   :  { %v6021_v12 = vmax.f32 %v13400_v49, %v5913_v26  ;;  %v9399_v10 = vadd.f32 %v9398_v46, %v9397_v31  ;;  %v9400_v29 = vpop.f32.mrb[158].mxu1  ;;  %v5916_v0 = vadd.f32 %v9697_v21, %v5755_v15  ;;  %v5907_v41 = vpop.f32.mrb[159].mxu0  ;;  %9495 = vmatprep.subr.bf16.mxu0 %v10475_v14 }
 0x432   :  { %v6019_v48 = vmax.f32 %v13406_v36, %v5905_v54  ;;  %v9401_v55 = vpop.f32.mrb[159].mxu1  ;;  %v5908_v17 = vadd.f32 %v5907_v41, %v13861_v63  ;;  %6120 = vst.msk [vmem:[#allocation2 + $0x40] sm:$0xff] %vm6118_vm1, %v6087_v4 }
 0x433   :  { %v6022_v22 = vmax.f32 %v13413_v56, %v5916_v0  ;;  %v9402_v38 = vadd.f32 %v9401_v55, %v9400_v29  ;;  %6125 = vrot.lane.b32.xlu1 %v6089_v18, %s10671_s17  ;;  %v5768_v49 = vadd.f32 %v9399_v10, %v13742_v30  ;;  %v6060_v15 = vadd.f32 %v13883_v45, %v6021_v12 }
 0x434   :  { %v6058_v36 = vadd.f32 %v13883_v45, %v6019_v48  ;;  %v6020_v43 = vmax.f32 %v13420_v35, %v5908_v17  ;;  %9496 = vmatpush3.bf16.msra.mxu0 %v10476_v53 }
 0x435   :  { %v6092_v63 = vmax.f32 %v6060_v15, 0.0  ;;  %v5771_v59 = vadd.f32 %v9402_v38, %v13744_v25  ;;  %v6061_v23 = vadd.f32 %v13883_v45, %v6022_v22 }
 0x436   :  { %v6090_v3 = vmax.f32 %v6058_v36, 0.0  ;;  %v6059_v56 = vadd.f32 %v13883_v45, %v6020_v43  ;;  %v9700_v7 = vpop.f32.mrb[160].mxu0 }
 0x437   :  { %v9403_v2 = vpop.f32.mrb[160].mxu1  ;;  %v13947_v31 = vadd.f32 %v9700_v7, %v5768_v49  ;;  %v5920_v30 = vpop.f32.mrb[161].mxu0  ;;  %6136 = vrot.lane.b32.xlu0 %v6092_v63, %s10671_s17  ;;  %v6093_v21 = vmax.f32 %v6061_v23, 0.0 }
 0x438   :  { %v6091_v26 = vmax.f32 %v6059_v56, 0.0  ;;  %v9404_v19 = vpop.f32.mrb[161].mxu1  ;;  %v5921_v35 = vadd.f32 %v5920_v30, %v13898_v39  ;;  %v9701_v18 = vpop.f32.mrb[162].mxu0  ;;  %6132 = vst.msk [vmem:[#allocation2 + $0x8] sm:$0xff] %vm6118_vm1, %v6090_v3  ;;  %v10478_v3 = vld [vmem:[%s14243_s3 + $0xa8] sm:$0xff]  }
 0x439   :  { %v6025_v25 = vmax.f32 %v13437_v42, %v13947_v31  ;;  %v9405_v50 = vadd.f32 %v9404_v19, %v9403_v2  ;;  %v9406_v4 = vpop.f32.mrb[162].mxu1  ;;  %v13954_v46 = vadd.f32 %v9701_v18, %v5771_v59  ;;  %v5923_v54 = vpop.f32.mrb[163].mxu0  ;;  %v10483_v42 = vld [vmem:[%s14243_s3 + $0x140] sm:$0xff]  }
 0x43a   :  { %v6023_v14 = vmax.f32 %v13443_v34, %v5921_v35  ;;  %v9407_v12 = vpop.f32.mrb[163].mxu1  ;;  %v5924_v10 = vadd.f32 %v5923_v54, %v13907_v51  ;;  %6133 = vst.msk [vmem:[#allocation2 + $0x48] sm:$0xff] %vm6118_vm1, %v6091_v26  ;;  %9525 = vmatprep.subr.bf16.mxu0 %v10483_v42 }
 0x43b   :  { %v6026_v39 = vmax.f32 %v13449_v24, %v13954_v46  ;;  %v9408_v29 = vadd.f32 %v9407_v12, %v9406_v4  ;;  %6138 = vrot.lane.b32.xlu0 %v6093_v21, %s10671_s17  ;;  %v5776_v0 = vadd.f32 %v9405_v50, %v13748_v62  ;;  %v10477_v62 = vld [vmem:[%s14243_s3 + $0xe8] sm:$0xff]   ;;  %v10479_v50 = vld [vmem:[%s14243_s3 + $0xf0] sm:$0xff]  }
 0x43c   :  { %v6062_v41 = vadd.f32 %v13883_v45, %v6023_v14  ;;  %v6024_v48 = vmax.f32 %v13456_v37, %v5924_v10  ;;  %9513 = vmatprep.subr.bf16.mxu1 %v10477_v62 }
 0x43d   :  { %v5779_v55 = vadd.f32 %v9408_v29, %v13750_v1  ;;  %9514 = vmatpush3.bf16.msra.mxu1 %v10478_v3 }
 0x43e   :  { %v6094_v34 = vmax.f32 %v6062_v41, 0.0  ;;  %v6063_v17 = vadd.f32 %v13883_v45, %v6024_v48  ;;  %v9704_v51 = vpop.f32.mrb[164].mxu0  ;;  %9515 = vmatprep.subr.bf16.mxu1 %v10479_v50 }
 0x43f   :  { %v9409_v53 = vpop.f32.mrb[164].mxu1  ;;  %v5936_v22 = vpop.f32.mrb[165].mxu0 }
 0x440   :  { %v6095_v38 = vmax.f32 %v6063_v17, 0.0  ;;  %v9410_v49 = vpop.f32.mrb[165].mxu1  ;;  %v5937_v15 = vadd.f32 %v5936_v22, %v5776_v0  ;;  %v9705_v36 = vpop.f32.mrb[166].mxu0  ;;  %6144 = vst.msk [vmem:[#allocation2 + $0x10] sm:$0xff] %vm6118_vm1, %v6094_v34  ;;  %v10481_v34 = vld [vmem:[%s14243_s3 + $0xf8] sm:$0xff]  }
 0x441   :  { %v9411_v43 = vadd.f32 %v9410_v49, %v9409_v53  ;;  %v9412_v37 = vpop.f32.mrb[166].mxu1  ;;  %v5939_v63 = vpop.f32.mrb[167].mxu0 }
 0x442   :  { %v6027_v1 = vmax.f32 %v13474_v6, %v5937_v15  ;;  %v9413_v59 = vpop.f32.mrb[167].mxu1  ;;  %v5940_v23 = vadd.f32 %v5939_v63, %v5779_v55  ;;  %6145 = vst.msk [vmem:[#allocation2 + $0x50] sm:$0xff] %vm6118_vm1, %v6095_v38 }
 0x443   :  { %v5784_v56 = vadd.f32 %v9411_v43, %v13754_v11  ;;  %v9414_v7 = vadd.f32 %v9413_v59, %v9412_v37 }
 0x444   :  { %v6066_v2 = vadd.f32 %v13883_v45, %v6027_v1  ;;  %v6028_v30 = vmax.f32 %v13482_v52, %v5940_v23  ;;  %v10480_v52 = vld [vmem:[%s14243_s3 + $0xb0] sm:$0xff]  }
 0x445   :  { %v5945_v26 = vadd.f32 %v9704_v51, %v5784_v56  ;;  %v5787_v6 = vadd.f32 %v9414_v7, %v13756_v44  ;;  %9516 = vmatpush3.bf16.msra.mxu1 %v10480_v52  ;;  %v14464_v7 = vld [vmem:[#allocation32_spill] sm:$0xff] }
 0x446   :  { %v6098_v19 = vmax.f32 %v6066_v2, 0.0  ;;  %v6067_v35 = vadd.f32 %v13883_v45, %v6028_v30  ;;  %v9708_v18 = vpop.f32.mrb[168].mxu0  ;;  %9517 = vmatprep.subr.bf16.mxu1 %v10481_v34 }
 0x447   :  { %v5948_v4 = vadd.f32 %v9705_v36, %v5787_v6  ;;  %v9415_v54 = vpop.f32.mrb[168].mxu1  ;;  %v5952_v11 = vpop.f32.mrb[169].mxu0  ;;  %v6029_v21 = vmax.f32 %v13487_v60, %v5945_v26  ;;  %v6064_v60 = vadd.f32 %v13883_v45, %v6025_v25 }
 0x448   :  { %v6099_v14 = vmax.f32 %v6067_v35, 0.0  ;;  %v9416_v12 = vpop.f32.mrb[169].mxu1  ;;  %v9709_v44 = vpop.f32.mrb[170].mxu0  ;;  %6156 = vst.msk [vmem:[#allocation2 + $0x18] sm:$0xff] %vm6118_vm1, %v6098_v19  ;;  %v14465_v19 = vld [vmem:[#allocation8_spill] sm:$0xff] }
 0x449   :  { %v9417_v10 = vadd.f32 %v9416_v12, %v9415_v54  ;;  %v9418_v29 = vpop.f32.mrb[170].mxu1  ;;  %v6068_v0 = vadd.f32 %v13883_v45, %v6029_v21  ;;  %v5955_v41 = vpop.f32.mrb[171].mxu0  ;;  %v6030_v48 = vmax.f32 %v13495_v8, %v5948_v4  ;;  %v10482_v8 = vld [vmem:[%s14243_s3 + $0xb8] sm:$0xff]   ;;  %v6096_v43 = vmax.f32 %v6064_v60, 0.0  ;;  %v14466_v54 = vld [vmem:[#allocation27_spill] sm:$0xff] }
 0x44a   :  { %v9419_v55 = vpop.f32.mrb[171].mxu1  ;;  %6157 = vst.msk [vmem:[#allocation2 + $0x58] sm:$0xff] %vm6118_vm1, %v6099_v14  ;;  %9518 = vmatpush3.bf16.msra.mxu1 %v10482_v8  ;;  %v14468_v8 = vld [vmem:[#allocation3_spill] sm:$0xff] }
 0x44b   :  { %v9420_v17 = vadd.f32 %v9419_v55, %v9418_v29  ;;  %v5792_v51 = vadd.f32 %v9417_v10, %v13760_v16  ;;  %v6100_v53 = vmax.f32 %v6068_v0, 0.0  ;;  %v6069_v22 = vadd.f32 %v13883_v45, %v6030_v48  ;;  %v14467_v29 = vld [vmem:[#allocation44_spill] sm:$0xff] }
 0x44c   :  { %v6065_v16 = vadd.f32 %v13883_v45, %v6026_v39 }
 0x44d   :  { %v5953_v31 = vadd.f32 %v5952_v11, %v5792_v51  ;;  %6160 = vrot.lane.b32.xlu0 %v6100_v53, %s10671_s17  ;;  %v5795_v25 = vadd.f32 %v9420_v17, %v13764_v27  ;;  %v6101_v38 = vmax.f32 %v6069_v22, 0.0 }
 0x44e   :  { %v14013_v49 = vpop.f32.mrb[172].mxu0  ;;  %v6097_v59 = vmax.f32 %v6065_v16, 0.0 }
 0x44f   :  { %v6031_v15 = vmax.f32 %v13513_v33, %v5953_v31  ;;  %v5956_v36 = vadd.f32 %v5955_v41, %v5795_v25  ;;  %v9421_v62 = vpop.f32.mrb[172].mxu1  ;;  %6162 = vrot.lane.b32.xlu1 %v6101_v38, %s10671_s17  ;;  %v5968_v37 = vpop.f32.mrb[173].mxu0 }
 0x450   :  { %v9422_v63 = vpop.f32.mrb[173].mxu1  ;;  %v9713_v27 = vpop.f32.mrb[174].mxu0 }
 0x451   :  { %v6070_v1 = vadd.f32 %v13883_v45, %v6031_v15  ;;  %v6032_v24 = vmax.f32 %v13523_v57, %v5956_v36  ;;  %v9423_v46 = vadd.f32 %v9422_v63, %v9421_v62  ;;  %v9424_v39 = vpop.f32.mrb[174].mxu1  ;;  %6148 = vrot.lane.b32.xlu0 %v6096_v43, %s10671_s17  ;;  %v5971_v23 = vpop.f32.mrb[175].mxu0  ;;  %v14469_v36 = vld [vmem:[#allocation28_spill] sm:$0xff] }
 0x452   :  { %v9425_v3 = vpop.f32.mrb[175].mxu1 }
 0x453   :  { %v6102_v33 = vmax.f32 %v6070_v1, 0.0  ;;  %v6071_v56 = vadd.f32 %v13883_v45, %v6032_v24  ;;  %v5800_v2 = vadd.f32 %v9423_v46, %v14464_v7  ;;  %v9426_v30 = vadd.f32 %v9425_v3, %v9424_v39  ;;  %6150 = vrot.lane.b32.xlu1 %v6097_v59, %s10671_s17  ;;  %v14470_v7 = vld [vmem:[#allocation45_spill] sm:$0xff] }
 0x455   :  { %v6103_v26 = vmax.f32 %v6071_v56, 0.0  ;;  %v5961_v6 = vadd.f32 %v9708_v18, %v5800_v2  ;;  %v5803_v35 = vadd.f32 %v9426_v30, %v14465_v19  ;;  %6168 = vst.msk [vmem:[#allocation2 + $0x20] sm:$0xff] %vm6118_vm1, %v6102_v33 }
 0x456   :  { %v14025_v57 = vpop.f32.mrb[176].mxu0 }
 0x457   :  { %v5964_v50 = vadd.f32 %v9709_v44, %v5803_v35  ;;  %v9427_v4 = vpop.f32.mrb[176].mxu1  ;;  %v6033_v11 = vmax.f32 %v14466_v54, %v5961_v6  ;;  %v5984_v21 = vpop.f32.mrb[177].mxu0  ;;  %6169 = vst.msk [vmem:[#allocation2 + $0x60] sm:$0xff] %vm6118_vm1, %v6103_v26 }
 0x458   :  { %v9428_v52 = vpop.f32.mrb[177].mxu1  ;;  %v14029_v14 = vpop.f32.mrb[178].mxu0 }
 0x459   :  { %v9429_v12 = vadd.f32 %v9428_v52, %v9427_v4  ;;  %v9430_v10 = vpop.f32.mrb[178].mxu1  ;;  %v6072_v18 = vadd.f32 %v13883_v45, %v6033_v11  ;;  %v6034_v0 = vmax.f32 %v14467_v29, %v5964_v50  ;;  %v5987_v41 = vpop.f32.mrb[179].mxu0 }
 0x45a   :  { %v9431_v48 = vpop.f32.mrb[179].mxu1 }
 0x45b   :  { %v9432_v55 = vadd.f32 %v9431_v48, %v9430_v10  ;;  %v5808_v44 = vadd.f32 %v9429_v12, %v13783_v58  ;;  %v6104_v60 = vmax.f32 %v6072_v18, 0.0  ;;  %v6073_v34 = vadd.f32 %v13883_v45, %v6034_v0  ;;  %v10499_v12 = vld [vmem:[%s14243_s3 + $0x1c0] sm:$0xff]   ;;  %v14472_v10 = vld [vmem:[#allocation29_spill] sm:$0xff] }
 0x45c   :  { %9547 = vmatprep.subr.bf16.mxu1 %v10499_v12 }
 0x45d   :  { %v5969_v17 = vadd.f32 %v5968_v37, %v5808_v44  ;;  %6172 = vrot.lane.b32.xlu0 %v6104_v60, %s10671_s17  ;;  %v5811_v51 = vadd.f32 %v9432_v55, %v13787_v61  ;;  %v6105_v53 = vmax.f32 %v6073_v34, 0.0 }
 0x45e   :  { %v14037_v22 = vpop.f32.mrb[180].mxu0 }
 0x45f   :  { %v6035_v42 = vmax.f32 %v14468_v8, %v5969_v17  ;;  %v5972_v31 = vadd.f32 %v5971_v23, %v5811_v51  ;;  %v9433_v25 = vpop.f32.mrb[180].mxu1  ;;  %6174 = vrot.lane.b32.xlu1 %v6105_v53, %s10671_s17  ;;  %v14041_v38 = vpop.f32.mrb[181].mxu0  ;;  %v14474_v51 = vld [vmem:[#allocation33_spill] sm:$0xff] }
 0x460   :  { %v9434_v58 = vpop.f32.mrb[181].mxu1  ;;  %v14043_v16 = vpop.f32.mrb[182].mxu0 }
 0x461   :  { %v6074_v15 = vadd.f32 %v13883_v45, %v6035_v42  ;;  %v6036_v62 = vmax.f32 %v14469_v36, %v5972_v31  ;;  %v9435_v43 = vadd.f32 %v9434_v58, %v9433_v25  ;;  %v9436_v61 = vpop.f32.mrb[182].mxu1  ;;  %v6003_v37 = vpop.f32.mrb[183].mxu0  ;;  %v14475_v31 = vld [vmem:[#allocation48_spill] sm:$0xff]  ;;  %v14476_v36 = vld [vmem:[#allocation30_spill] sm:$0xff] }
 0x462   :  { %v9437_v63 = vpop.f32.mrb[183].mxu1 }
 0x463   :  { %v6106_v1 = vmax.f32 %v6074_v15, 0.0  ;;  %v6075_v24 = vadd.f32 %v13883_v45, %v6036_v62  ;;  %v5816_v46 = vadd.f32 %v9435_v43, %v13792_v13  ;;  %v9438_v39 = vadd.f32 %v9437_v63, %v9436_v61  ;;  %v14471_v13 = vld [vmem:[#allocation4_spill] sm:$0xff] }
 0x465   :  { %v6107_v59 = vmax.f32 %v6075_v24, 0.0  ;;  %v5977_v23 = vadd.f32 %v14013_v49, %v5816_v46  ;;  %v5819_v3 = vadd.f32 %v9438_v39, %v13796_v9  ;;  %6180 = vst.msk [vmem:[#allocation2 + $0x28] sm:$0xff] %vm6118_vm1, %v6106_v1  ;;  %v14477_v1 = vld [vmem:[#allocation6_spill] sm:$0xff] }
 0x467   :  { %v5980_v33 = vadd.f32 %v9713_v27, %v5819_v3  ;;  %v9439_v56 = vpop.f32.mrb[184].mxu1  ;;  %v6037_v2 = vmax.f32 %v14470_v7, %v5977_v23  ;;  %6181 = vst.msk [vmem:[#allocation2 + $0x68] sm:$0xff] %vm6118_vm1, %v6107_v59  ;;  %v14478_v3 = vld [vmem:[#allocation31_spill] sm:$0xff] }
 0x468   :  { %v9440_v30 = vpop.f32.mrb[185].mxu1 }
 0x469   :  { %v9441_v26 = vadd.f32 %v9440_v30, %v9439_v56  ;;  %v9442_v6 = vpop.f32.mrb[186].mxu1  ;;  %v6076_v19 = vadd.f32 %v13883_v45, %v6037_v2  ;;  %v6038_v35 = vmax.f32 %v14471_v13, %v5980_v33  ;;  %v14479_v30 = vld [vmem:[#allocation46_spill] sm:$0xff] }
 0x46a   :  { %v9443_v50 = vpop.f32.mrb[187].mxu1 }
 0x46b   :  { %v9444_v4 = vadd.f32 %v9443_v50, %v9442_v6  ;;  %v5824_v49 = vadd.f32 %v9441_v26, %v13805_v20  ;;  %v6108_v9 = vmax.f32 %v6076_v19, 0.0  ;;  %v6077_v54 = vadd.f32 %v13883_v45, %v6038_v35 }
 0x46d   :  { %v5985_v27 = vadd.f32 %v5984_v21, %v5824_v49  ;;  %6184 = vrot.lane.b32.xlu0 %v6108_v9, %s10671_s17  ;;  %v5827_v11 = vadd.f32 %v9444_v4, %v13811_v40  ;;  %v6109_v52 = vmax.f32 %v6077_v54, 0.0  ;;  %v14473_v21 = vld [vmem:[#allocation5_spill] sm:$0xff]  ;;  %v14480_v9 = vld [vmem:[#allocation47_spill] sm:$0xff] }
 0x46f   :  { %v6039_v18 = vmax.f32 %v14472_v10, %v5985_v27  ;;  %v5988_v29 = vadd.f32 %v5987_v41, %v5827_v11  ;;  %v9445_v0 = vpop.f32.mrb[188].mxu1  ;;  %6186 = vrot.lane.b32.xlu1 %v6109_v52, %s10671_s17  ;;  %v14481_v11 = vld [vmem:[#allocation7_spill] sm:$0xff] }
 0x470   :  { %v9446_v20 = vpop.f32.mrb[189].mxu1 }
 0x471   :  { %v6078_v48 = vadd.f32 %v13883_v45, %v6039_v18  ;;  %v6040_v55 = vmax.f32 %v14473_v21, %v5988_v29  ;;  %v9447_v44 = vadd.f32 %v9446_v20, %v9445_v0  ;;  %v9448_v60 = vpop.f32.mrb[190].mxu1 }
 0x472   :  { %v9449_v40 = vpop.f32.mrb[191].mxu1 }
 0x473   :  { %v6110_v34 = vmax.f32 %v6078_v48, 0.0  ;;  %v6079_v17 = vadd.f32 %v13883_v45, %v6040_v55  ;;  %v5832_v53 = vadd.f32 %v9447_v44, %v14474_v51  ;;  %v9450_v8 = vadd.f32 %v9449_v40, %v9448_v60  ;;  %v10484_v40 = vld [vmem:[%s14243_s3 + $0x100] sm:$0xff]   ;;  %v10486_v51 = vld [vmem:[%s14243_s3 + $0x108] sm:$0xff]  }
 0x475   :  { %v6111_v42 = vmax.f32 %v6079_v17, 0.0  ;;  %v5993_v41 = vadd.f32 %v14025_v57, %v5832_v53  ;;  %v5835_v25 = vadd.f32 %v9450_v8, %v14475_v31  ;;  %6192 = vst.msk [vmem:[#allocation2 + $0x30] sm:$0xff] %vm6118_vm1, %v6110_v34  ;;  %v10485_v17 = vld [vmem:[%s14243_s3 + $0x148] sm:$0xff]   ;;  %v10487_v53 = vld [vmem:[%s14243_s3 + $0x150] sm:$0xff]  }
 0x476   :  { %v10488_v8 = vld [vmem:[%s14243_s3 + $0x110] sm:$0xff]  }
 0x477   :  { %v5996_v58 = vadd.f32 %v14029_v14, %v5835_v25  ;;  %v9451_v15 = vpop.f32.mrb[192].mxu1  ;;  %v6041_v62 = vmax.f32 %v14476_v36, %v5993_v41  ;;  %6193 = vst.msk [vmem:[#allocation2 + $0x70] sm:$0xff] %vm6118_vm1, %v6111_v42  ;;  %v10489_v41 = vld [vmem:[%s14243_s3 + $0x158] sm:$0xff]  }
 0x478   :  { %v9452_v43 = vpop.f32.mrb[193].mxu1  ;;  %v10490_v25 = vld [vmem:[%s14243_s3 + $0x118] sm:$0xff]  }
 0x479   :  { %v9453_v61 = vadd.f32 %v9452_v43, %v9451_v15  ;;  %v9454_v63 = vpop.f32.mrb[194].mxu1  ;;  %v6042_v24 = vmax.f32 %v14477_v1, %v5996_v58  ;;  %v6080_v10 = vadd.f32 %v13883_v45, %v6041_v62  ;;  %v10491_v15 = vld [vmem:[%s14243_s3 + $0x160] sm:$0xff]   ;;  %v10493_v43 = vld [vmem:[%s14243_s3 + $0x168] sm:$0xff]  }
 0x47a   :  { %v9455_v46 = vpop.f32.mrb[195].mxu1  ;;  %v10492_v62 = vld [vmem:[%s14243_s3 + $0x120] sm:$0xff]  }
 0x47b   :  { %v9456_v39 = vadd.f32 %v9455_v46, %v9454_v63  ;;  %v5840_v57 = vadd.f32 %v9453_v61, %v13852_v28  ;;  %v10495_v46 = vld [vmem:[%s14243_s3 + $0x170] sm:$0xff]  }
 0x47d   :  { %v6001_v59 = vadd.f32 %v14041_v38, %v5840_v57  ;;  %v5843_v23 = vadd.f32 %v9456_v39, %v13858_v5 }
 0x47f   :  { %v6043_v14 = vmax.f32 %v14478_v3, %v6001_v59  ;;  %v6004_v33 = vadd.f32 %v6003_v37, %v5843_v23  ;;  %v9457_v56 = vpop.f32.mrb[196].mxu1  ;;  %v10500_v59 = vld [vmem:[%s14243_s3 + $0x180] sm:$0xff]   ;;  %v10496_v3 = vld [vmem:[%s14243_s3 + $0x130] sm:$0xff]  }
 0x480   :  { %v9458_v7 = vpop.f32.mrb[197].mxu1 }
 0x481   :  { %v6082_v2 = vadd.f32 %v13883_v45, %v6043_v14  ;;  %v6044_v26 = vmax.f32 %v14479_v30, %v6004_v33  ;;  %v9459_v6 = vadd.f32 %v9458_v7, %v9457_v56  ;;  %v9460_v19 = vpop.f32.mrb[198].mxu1  ;;  %v10501_v14 = vld [vmem:[%s14243_s3 + $0x1c8] sm:$0xff]   ;;  %v10497_v56 = vld [vmem:[%s14243_s3 + $0x178] sm:$0xff]  }
 0x482   :  { %v9461_v13 = vpop.f32.mrb[199].mxu1  ;;  %v10498_v30 = vld [vmem:[%s14243_s3 + $0x138] sm:$0xff]  }
 0x483   :  { %v6114_v35 = vmax.f32 %v6082_v2, 0.0  ;;  %v6083_v50 = vadd.f32 %v13883_v45, %v6044_v26  ;;  %v5848_v28 = vadd.f32 %v9459_v6, %v13867_v47  ;;  %v9462_v38 = vadd.f32 %v9461_v13, %v9460_v19  ;;  %v10502_v2 = vld [vmem:[%s14243_s3 + $0x188] sm:$0xff]   ;;  %v10503_v26 = vld [vmem:[%s14243_s3 + $0x1d0] sm:$0xff]   ;;  %v10505_v19 = vld [vmem:[%s14243_s3 + $0x1d8] sm:$0xff]  }
 0x484   :  { %v10504_v6 = vld [vmem:[%s14243_s3 + $0x190] sm:$0xff]   ;;  %v10506_v13 = vld [vmem:[%s14243_s3 + $0x198] sm:$0xff]  }
 0x485   :  { %v6115_v4 = vmax.f32 %v6083_v50, 0.0  ;;  %v6009_v5 = vadd.f32 %v14037_v22, %v5848_v28  ;;  %v5851_v37 = vadd.f32 %v9462_v38, %v13871_v32  ;;  %6204 = vst.msk [vmem:[#allocation2 + $0x38] sm:$0xff] %vm6118_vm1, %v6114_v35  ;;  %v6081_v22 = vadd.f32 %v13883_v45, %v6042_v24  ;;  %v10494_v24 = vld [vmem:[%s14243_s3 + $0x128] sm:$0xff]   ;;  %v10507_v35 = vld [vmem:[%s14243_s3 + $0x1e0] sm:$0xff]  }
 0x486   :  { %v10508_v50 = vld [vmem:[%s14243_s3 + $0x1a0] sm:$0xff]   ;;  %v10509_v28 = vld [vmem:[%s14243_s3 + $0x1e8] sm:$0xff]  }
 0x487   :  { %v6012_v49 = vadd.f32 %v14043_v16, %v5851_v37  ;;  %v6045_v54 = vmax.f32 %v14480_v9, %v6009_v5  ;;  %6205 = vst.msk [vmem:[#allocation2 + $0x78] sm:$0xff] %vm6118_vm1, %v6115_v4  ;;  %v6112_v16 = vmax.f32 %v6080_v10, 0.0  ;;  %v6113_v18 = vmax.f32 %v6081_v22, 0.0  ;;  %v10510_v5 = vld [vmem:[%s14243_s3 + $0x1a8] sm:$0xff]   ;;  %v10511_v37 = vld [vmem:[%s14243_s3 + $0x1f0] sm:$0xff]   ;;  %v10513_v9 = vld [vmem:[%s14243_s3 + $0x1f8] sm:$0xff]  }
 0x489   :  { %v6084_v27 = vadd.f32 %v13883_v45, %v6045_v54  ;;  %v6046_v52 = vmax.f32 %v14481_v11, %v6012_v49  ;;  %v10512_v49 = vld [vmem:[%s14243_s3 + $0x1b0] sm:$0xff]  }
 0x48b   :  { %v6116_v12 = vmax.f32 %v6084_v27, 0.0  ;;  %v6085_v47 = vadd.f32 %v13883_v45, %v6046_v52  ;;  %v10514_v52 = vld [vmem:[%s14243_s3 + $0x1b8] sm:$0xff]  }
 0x48d   :  { %6208 = vrot.lane.b32.xlu0 %v6116_v12, %s10671_s17  ;;  %v6117_v32 = vmax.f32 %v6085_v47, 0.0 }
 0x48f   :  { %6210 = vrot.lane.b32.xlu1 %v6117_v32, %s10671_s17 }
 0x491   :  { %6196 = vrot.lane.b32.xlu0 %v6112_v16, %s10671_s17 }
 0x493   :  { %6198 = vrot.lane.b32.xlu1 %v6113_v18, %s10671_s17 }
 0x4a1   :  { %v6124_v29 = vpop.permute.xlu1 %6123 }
 0x4a2   :  { %6130 = vst.msk [vmem:[#allocation2] sm:$0xff] %vm6129_vm2, %v6124_v29 }
 0x4a5   :  { %v6126_v0 = vpop.permute.xlu1 %6125 }
 0x4a6   :  { %6131 = vst.msk [vmem:[#allocation2 + $0x40] sm:$0xff] %vm6129_vm2, %v6126_v0 }
 0x4a9   :  { %v6137_v20 = vpop.permute.xlu0 %6136  ;;  %v6216_v44 = vld [vmem:[#allocation2] sm:$0xff] }
 0x4aa   :  { %6142 = vst.msk [vmem:[#allocation2 + $0x8] sm:$0xff] %vm6129_vm2, %v6137_v20 }
 0x4ad   :  { %v6139_v48 = vpop.permute.xlu0 %6138  ;;  %v6224_v45 = vld [vmem:[#allocation2 + $0x40] sm:$0xff] }
 0x4ae   :  { %6143 = vst.msk [vmem:[#allocation2 + $0x48] sm:$0xff] %vm6129_vm2, %v6139_v48  ;;  %v6232_v34 = vpack.c.bf16 %v6224_v45, %v6216_v44  ;;  %v10515_v44 = vld [vmem:[%s14245_s5] sm:$0xff]  }
 0x4b1   :  { %v6217_v21 = vld [vmem:[#allocation2 + $0x8] sm:$0xff] }
 0x4b5   :  { %v6225_v55 = vld [vmem:[#allocation2 + $0x48] sm:$0xff] }
 0x4b6   :  { %v6233_v60 = vpack.c.bf16 %v6225_v55, %v6217_v21  ;;  %v10672_v55 = vmov 0.0  }
 0x4b8   :  { %6791 = vmatprep.mubr.bf16.mxu0 %v6233_v60  ;;  %v10516_v60 = vld [vmem:[%s14245_s5 + $0x8] sm:$0xff]  }
 0x4b9   :  { %6792 = vmatmul.mubr.bf16.vlgmr.msra.gmra.mrb[184].mxu0 %v6232_v34  ;;  %v10518_v34 = vld [vmem:[%s14245_s5 + $0x18] sm:$0xff]  }
 0x4ba   :  { %9526 = vmatpush3.bf16.msra.mxu0 %v10484_v40  ;;  %v10517_v40 = vld [vmem:[%s14245_s5 + $0x10] sm:$0xff]  }
 0x4bb   :  { %9527 = vmatprep.subr.bf16.mxu0 %v10485_v17  ;;  %v10519_v17 = vld [vmem:[%s14245_s5 + $0x20] sm:$0xff]  }
 0x4be   :  { %9528 = vmatpush3.bf16.msra.mxu0 %v10486_v51  ;;  %v10520_v51 = vld [vmem:[%s14245_s5 + $0x28] sm:$0xff]  }
 0x4bf   :  { %v6161_v42 = vpop.permute.xlu0 %6160  ;;  %9529 = vmatprep.subr.bf16.mxu0 %v10487_v53  ;;  %v10521_v53 = vld [vmem:[%s14245_s5 + $0x30] sm:$0xff]  }
 0x4c0   :  { %6166 = vst.msk [vmem:[#allocation2 + $0x18] sm:$0xff] %vm6129_vm2, %v6161_v42 }
 0x4c1   :  { %v6163_v31 = vpop.permute.xlu1 %6162 }
 0x4c2   :  { %6167 = vst.msk [vmem:[#allocation2 + $0x58] sm:$0xff] %vm6129_vm2, %v6163_v31  ;;  %9530 = vmatpush3.bf16.msra.mxu0 %v10488_v8  ;;  %v10522_v8 = vld [vmem:[%s14245_s5 + $0x38] sm:$0xff]  }
 0x4c3   :  { %v6149_v58 = vpop.permute.xlu0 %6148  ;;  %9531 = vmatprep.subr.bf16.mxu0 %v10489_v41 }
 0x4c4   :  { %6154 = vst.msk [vmem:[#allocation2 + $0x10] sm:$0xff] %vm6129_vm2, %v6149_v58 }
 0x4c5   :  { %v6151_v36 = vpop.permute.xlu1 %6150 }
 0x4c6   :  { %6155 = vst.msk [vmem:[#allocation2 + $0x50] sm:$0xff] %vm6129_vm2, %v6151_v36  ;;  %9532 = vmatpush3.bf16.msra.mxu0 %v10490_v25  ;;  %v7991_v36 = vld [vmem:[%s14246_s4] ss:$0 sm:$0xff] }
 0x4c7   :  { %9533 = vmatprep.subr.bf16.mxu0 %v10491_v15  ;;  %v6219_v61 = vld [vmem:[#allocation2 + $0x18] sm:$0xff] }
 0x4c9   :  { %v6227_v63 = vld [vmem:[#allocation2 + $0x58] sm:$0xff] }
 0x4ca   :  { %v6235_v1 = vpack.c.bf16 %v6227_v63, %v6219_v61  ;;  %9534 = vmatpush3.bf16.msra.mxu0 %v10492_v62 }
 0x4cb   :  { %9535 = vmatprep.subr.bf16.mxu0 %v10493_v43  ;;  %v6218_v39 = vld [vmem:[#allocation2 + $0x10] sm:$0xff] }
 0x4cc   :  { %6832 = vmatprep.mubr.bf16.mxu1 %v6235_v1 }
 0x4cd   :  { %v6226_v57 = vld [vmem:[#allocation2 + $0x50] sm:$0xff] }
 0x4ce   :  { %v6234_v23 = vpack.c.bf16 %v6226_v57, %v6218_v39  ;;  %9536 = vmatpush3.bf16.msra.mxu0 %v10494_v24 }
 0x4cf   :  { %v6173_v33 = vpop.permute.xlu0 %6172  ;;  %9537 = vmatprep.subr.bf16.mxu0 %v10495_v46 }
 0x4d0   :  { %6178 = vst.msk [vmem:[#allocation2 + $0x20] sm:$0xff] %vm6129_vm2, %v6173_v33  ;;  %6833 = vmatmul.mubr.bf16.vlgmr.msra.gmra.mrb[200].mxu1 %v6234_v23 }
 0x4d1   :  { %v6175_v7 = vpop.permute.xlu1 %6174  ;;  %9548 = vmatpush3.bf16.msra.mxu1 %v10500_v59 }
 0x4d2   :  { %6179 = vst.msk [vmem:[#allocation2 + $0x60] sm:$0xff] %vm6129_vm2, %v6175_v7  ;;  %9538 = vmatpush3.bf16.msra.mxu0 %v10496_v3  ;;  %9549 = vmatprep.subr.bf16.mxu1 %v10501_v14 }
 0x4d3   :  { %9539 = vmatprep.subr.bf16.mxu0 %v10497_v56 }
 0x4d5   :  { %9550 = vmatpush3.bf16.msra.mxu1 %v10502_v2 }
 0x4d6   :  { %9540 = vmatpush3.bf16.msra.mxu0 %v10498_v30  ;;  %9551 = vmatprep.subr.bf16.mxu1 %v10503_v26 }
 0x4d7   :  { %v6220_v47 = vld [vmem:[#allocation2 + $0x20] sm:$0xff]  ;;  %9722 = vmatprep.subr.bf16.mxu0 %v10672_v55 }
 0x4d9   :  { %9552 = vmatpush3.bf16.msra.mxu1 %v10504_v6  ;;  %v6228_v54 = vld [vmem:[#allocation2 + $0x60] sm:$0xff] }
 0x4da   :  { %9553 = vmatprep.subr.bf16.mxu1 %v10505_v19  ;;  %v6236_v10 = vpack.c.bf16 %v6228_v54, %v6220_v47 }
 0x4dd   :  { %9554 = vmatpush3.bf16.msra.mxu1 %v10506_v13 }
 0x4de   :  { %9555 = vmatprep.subr.bf16.mxu1 %v10507_v35 }
 0x4df   :  { %v6185_v38 = vpop.permute.xlu0 %6184 }
 0x4e0   :  { %6190 = vst.msk [vmem:[#allocation2 + $0x28] sm:$0xff] %vm6129_vm2, %v6185_v38 }
 0x4e1   :  { %v6187_v4 = vpop.permute.xlu1 %6186  ;;  %9556 = vmatpush3.bf16.msra.mxu1 %v10508_v50 }
 0x4e2   :  { %6191 = vst.msk [vmem:[#allocation2 + $0x68] sm:$0xff] %vm6129_vm2, %v6187_v4  ;;  %9557 = vmatprep.subr.bf16.mxu1 %v10509_v28 }
 0x4e5   :  { %9558 = vmatpush3.bf16.msra.mxu1 %v10510_v5 }
 0x4e6   :  { %9559 = vmatprep.subr.bf16.mxu1 %v10511_v37 }
 0x4e7   :  { %v6221_v27 = vld [vmem:[#allocation2 + $0x28] sm:$0xff] }
 0x4e9   :  { %v6229_v11 = vld [vmem:[#allocation2 + $0x68] sm:$0xff]  ;;  %9560 = vmatpush3.bf16.msra.mxu1 %v10512_v49  ;;  %v8056_v49 = vld [vmem:[%s14247_s6] ss:$0 sm:$0xff] }
 0x4ea   :  { %v6237_v12 = vpack.c.bf16 %v6229_v11, %v6221_v27  ;;  %9561 = vmatprep.subr.bf16.mxu1 %v10513_v9 }
 0x4ec   :  { %6873 = vmatprep.mubr.bf16.mxu0 %v6237_v12 }
 0x4ed   :  { %6874 = vmatmul.mubr.bf16.vlgmr.msra.gmra.mrb[188].mxu0 %v6236_v10  ;;  %9562 = vmatpush3.bf16.msra.mxu1 %v10514_v52 }
 0x4ee   :  { %9723 = vmatpush3.bf16.msra.mxu0 %v10515_v44  ;;  %9738 = vmatprep.mubr.msk.bf16.mxu0 %vm10673_vm3, %v10672_v55 }
 0x4ef   :  { %9724 = vmatprep.subr.bf16.mxu0 %v10672_v55 }
 0x4f2   :  { %9725 = vmatpush3.bf16.msra.mxu0 %v10516_v60 }
 0x4f3   :  { %9726 = vmatprep.subr.bf16.mxu0 %v10672_v55 }
 0x4f6   :  { %9727 = vmatpush3.bf16.msra.mxu0 %v10517_v40 }
 0x4f7   :  { %9728 = vmatprep.subr.bf16.mxu0 %v10672_v55 }
 0x4fa   :  { %9729 = vmatpush3.bf16.msra.mxu0 %v10518_v34 }
 0x4fb   :  { %9730 = vmatprep.subr.bf16.mxu0 %v10672_v55 }
 0x4fe   :  { %9731 = vmatpush3.bf16.msra.mxu0 %v10519_v17 }
 0x4ff   :  { %v6209_v32 = vpop.permute.xlu0 %6208  ;;  %9732 = vmatprep.subr.bf16.mxu0 %v10672_v55 }
 0x500   :  { %6214 = vst.msk [vmem:[#allocation2 + $0x38] sm:$0xff] %vm6129_vm2, %v6209_v32 }
 0x501   :  { %v6211_v22 = vpop.permute.xlu1 %6210 }
 0x502   :  { %6215 = vst.msk [vmem:[#allocation2 + $0x78] sm:$0xff] %vm6129_vm2, %v6211_v22  ;;  %9733 = vmatpush3.bf16.msra.mxu0 %v10520_v51 }
 0x503   :  { %v6197_v16 = vpop.permute.xlu0 %6196  ;;  %9734 = vmatprep.subr.bf16.mxu0 %v10672_v55 }
 0x504   :  { %6202 = vst.msk [vmem:[#allocation2 + $0x30] sm:$0xff] %vm6129_vm2, %v6197_v16 }
 0x505   :  { %v6199_v18 = vpop.permute.xlu1 %6198 }
 0x506   :  { %6203 = vst.msk [vmem:[#allocation2 + $0x70] sm:$0xff] %vm6129_vm2, %v6199_v18  ;;  %9735 = vmatpush3.bf16.msra.mxu0 %v10521_v53 }
 0x507   :  { %v6223_v29 = vld [vmem:[#allocation2 + $0x38] sm:$0xff]  ;;  %9736 = vmatprep.subr.bf16.mxu0 %v10672_v55 }
 0x509   :  { %v6231_v0 = vld [vmem:[#allocation2 + $0x78] sm:$0xff] }
 0x50a   :  { %v6239_v20 = vpack.c.bf16 %v6231_v0, %v6223_v29  ;;  %9737 = vmatpush3.bf16.msra.mxu0 %v10522_v8 }
 0x50b   :  { %v6222_v48 = vld [vmem:[#allocation2 + $0x30] sm:$0xff] }
 0x50c   :  { %6914 = vmatprep.mubr.bf16.mxu1 %v6239_v20 }
 0x50d   :  { %v6230_v45 = vld [vmem:[#allocation2 + $0x70] sm:$0xff] }
 0x50e   :  { %v6238_v21 = vpack.c.bf16 %v6230_v45, %v6222_v48 }
 0x510   :  { %6915 = vmatmul.mubr.bf16.vlgmr.msra.gmra.mrb[204].mxu1 %v6238_v21 }
 0x58c   :  { %v9497_v42 = vpop.f32.mrb[184].mxu0 }
 0x58d   :  { %v9498_v41 = vpop.f32.mrb[185].mxu0 }
 0x58e   :  { %v9499_v31 = vadd.f32 %v9498_v41, %v9497_v42  ;;  %v9500_v25 = vpop.f32.mrb[186].mxu0 }
 0x58f   :  { %v9501_v58 = vpop.f32.mrb[187].mxu0 }
 0x590   :  { %v9502_v15 = vadd.f32 %v9501_v58, %v9500_v25  ;;  %v6794_v61 = vadd.f32 %v9499_v31, %v7991_v36 }
 0x592   :  { %v6797_v46 = vadd.f32 %v9502_v15, %v7991_v36 }
 0x5a3   :  { %v9519_v62 = vpop.f32.mrb[200].mxu1 }
 0x5a4   :  { %v9520_v43 = vpop.f32.mrb[201].mxu1 }
 0x5a5   :  { %v9521_v63 = vadd.f32 %v9520_v43, %v9519_v62  ;;  %v9522_v1 = vpop.f32.mrb[202].mxu1 }
 0x5a6   :  { %v9523_v24 = vpop.f32.mrb[203].mxu1 }
 0x5a7   :  { %v6835_v39 = vadd.f32 %v9521_v63, %v6794_v61  ;;  %v9524_v57 = vadd.f32 %v9523_v24, %v9522_v1 }
 0x5a9   :  { %v6838_v59 = vadd.f32 %v9524_v57, %v6797_v46 }
 0x5c0   :  { %v9541_v23 = vpop.f32.mrb[188].mxu0 }
 0x5c1   :  { %v9542_v3 = vpop.f32.mrb[189].mxu0 }
 0x5c2   :  { %v9543_v14 = vadd.f32 %v9542_v3, %v9541_v23  ;;  %v9544_v33 = vpop.f32.mrb[190].mxu0 }
 0x5c3   :  { %v9545_v56 = vpop.f32.mrb[191].mxu0 }
 0x5c4   :  { %v6876_v7 = vadd.f32 %v9543_v14, %v6835_v39  ;;  %v9546_v2 = vadd.f32 %v9545_v56, %v9544_v33 }
 0x5c6   :  { %v6879_v30 = vadd.f32 %v9546_v2, %v6838_v59 }
 0x5e3   :  { %v9563_v26 = vpop.f32.mrb[204].mxu1 }
 0x5e4   :  { %v9564_v6 = vpop.f32.mrb[205].mxu1 }
 0x5e5   :  { %v9565_v19 = vadd.f32 %v9564_v6, %v9563_v26  ;;  %v9566_v13 = vpop.f32.mrb[206].mxu1 }
 0x5e6   :  { %v9567_v35 = vpop.f32.mrb[207].mxu1 }
 0x5e7   :  { %v6917_v50 = vadd.f32 %v9565_v19, %v6876_v7  ;;  %v9568_v28 = vadd.f32 %v9567_v35, %v9566_v13 }
 0x5e9   :  { %v6920_v38 = vadd.f32 %v9568_v28, %v6879_v30  ;;  %v6923_v4 = vmax.f32 %v6917_v50, 0.0 }
 0x5eb   :  { %v6924_v5 = vmax.f32 %v6920_v38, 0.0 }
 0x5ed   :  { %v6925_v37 = vpack.c.bf16 %v6924_v5, %v6923_v4 }
 0x5ef   :  { %9739 = vmatmul.mubr.bf16.vlgmr.msra.gmra.mrb[192].mxu0 %v6925_v37 }
 0x6c2   :  { %v7031_v9 = vpop.f32.mrb[192].mxu0 }
 0x6c3   :  { %v7032_v54 = vadd.f32 %v8056_v49, %v7031_v9  ;;  %v9740_v27 = vpop.f32.mrb[193].mxu0 }
 0x6c4   :  { %v7034_v11 = vpop.f32.mrb[194].mxu0 }
 0x6c5   :  { %7038 = vst [vmem:[%s14248_s7] sm:$0xff] %v7032_v54  ;;  %v7035_v52 = vadd.f32 %v8056_v49, %v7034_v11  ;;  %v9741_v12 = vpop.f32.mrb[195].mxu0 }
 0x6c7   :  { %7039 = vst [vmem:[%s14248_s7 + $0x8] sm:$0xff] %v7035_v52 }

</bundles_post_ra>
